<compile_context>
chip_gen: v7x
topology: tpu7x:2x2x1
jax: 0.10.0
libtpu: 0.0.40
codegen_flags: <defaults>
</compile_context>

<pallas_src>
import functools

import jax
import jax.numpy as jnp
from jax.experimental import pallas as pl
from jax.experimental.pallas import tpu as pltpu

_LANE = 128
_SUBLANE = 8


def _round_up(n, m):
    return ((n + m - 1) // m) * m


def _pad2(a, rows, cols):
    return jnp.pad(a, ((0, rows - a.shape[0]), (0, cols - a.shape[1])))


def _num_tensorcores():
    """Best-effort TensorCore-per-chip detection (v7x has 2, v5e/v6e have 1)."""
    try:
        kind = (jax.devices()[0].device_kind or "").lower()
        if "v7" in kind:
            return 2
    except Exception:
        pass
    return 1


def _choose_batch_tile(B, block_b, num_cores):
    """Pick (tile_rows, padded_batch).

    Single-TC chips: one grid step when the batch fits in a tile (per-step
    overhead dominates at small B).  Multi-TC (v7x): at least `num_cores`
    steps so the "parallel" batch axis splits across cores.
    """
    if num_cores <= 1:
        tb = _round_up(B, _SUBLANE) if B <= block_b else block_b
    else:
        per_core = (B + num_cores - 1) // num_cores
        tb = min(block_b, _round_up(per_core, _SUBLANE))
    tb = max(tb, _SUBLANE)
    return tb, _round_up(B, tb)


def _sinnet_kernel(x_ref, w1_ref, b1_ref, w2_ref, b2_ref, w3_ref, b3_ref,
                   o_ref, x_pad_ref):
    """One batch tile per grid step; weights/biases VMEM-resident.

    Zero lane-padding is exact: padded bias lanes are 0, so bias-add + ReLU
    keep the padded lanes at 0 through every contraction.
    """
    mxu_dtype = w1_ref.dtype
    d_in = x_ref.shape[1]
    d_out = o_ref.shape[1]

    # Lane-pad the unpadded (tb, d_in) x tile to (tb, dp_in) inside VMEM.
    if d_in == x_pad_ref.shape[1]:
        x = x_ref[...].astype(mxu_dtype)
    else:
        x_pad_ref[...] = jnp.zeros_like(x_pad_ref)
        x_pad_ref[:, :d_in] = x_ref[...].astype(mxu_dtype)  # cast only tb*d_in elems
        x = x_pad_ref[...]

    h = jnp.dot(x, w1_ref[...], preferred_element_type=jnp.float32)
    h = jnp.maximum(h + b1_ref[...], 0.0)                    # f32 bias + ReLU

    h = jnp.dot(h.astype(mxu_dtype), w2_ref[...],
                preferred_element_type=jnp.float32)
    h = jnp.maximum(h + b2_ref[...], 0.0)

    h = jnp.dot(h.astype(mxu_dtype), w3_ref[...],
                preferred_element_type=jnp.float32)
    y = h + b3_ref[...]
    if d_out != y.shape[1]:
        y = y[:, :d_out]                                      # lane-masked store
    o_ref[...] = y.astype(o_ref.dtype)


def prepare_params(w1, b1, w2, b2, w3, b3, *, use_bf16=True):
    """Pad & (optionally) bf16-cast parameters ONCE, outside the forward path.

    Weights stored [in, out], biases [1, out].  All feature dims are padded to
    multiples of 128 so the in-kernel math is lane-dense; the padding columns
    of the biases are zero so the math stays exact.
    """
    d_in, d_h1 = w1.shape
    d_h2 = w2.shape[1]
    d_out = w3.shape[1]
    dp_in, dp_h1, dp_h2, dp_out = (_round_up(d, _LANE)
                                   for d in (d_in, d_h1, d_h2, d_out))

    w_dtype = jnp.bfloat16 if use_bf16 else jnp.float32
    w1p = _pad2(w1, dp_in, dp_h1).astype(w_dtype)
    w2p = _pad2(w2, dp_h1, dp_h2).astype(w_dtype)
    w3p = _pad2(w3, dp_h2, dp_out).astype(w_dtype)
    b1p = _pad2(b1, 1, dp_h1).astype(jnp.float32)
    b2p = _pad2(b2, 1, dp_h2).astype(jnp.float32)
    b3p = _pad2(b3, 1, dp_out).astype(jnp.float32)
    return w1p, b1p, w2p, b2p, w3p, b3p


@functools.partial(jax.jit, static_argnames=("block_b", "num_cores", "d_out"))
def sinnet_forward(x, w1p, b1p, w2p, b2p, w3p, b3p, *,
                   d_out, block_b=1024, num_cores=1):
    """x: [B, d_in] (f32 or bf16); params from prepare_params(); out: [B, d_out]."""
    B, d_in = x.shape
    dp_in, dp_h1 = w1p.shape
    dp_h2, dp_out = w3p.shape[0], w3p.shape[1]

    tb, b_pad = _choose_batch_tile(B, block_b, num_cores)
    if b_pad != B:
        x = jnp.pad(x, ((0, b_pad - B), (0, 0)))

    def resident(shape):
        return pl.BlockSpec(shape, lambda i: (0,) * len(shape))

    out = pl.pallas_call(
        _sinnet_kernel,
        out_shape=jax.ShapeDtypeStruct((b_pad, d_out), jnp.float32),
        grid=(b_pad // tb,),
        in_specs=[
            pl.BlockSpec((tb, d_in), lambda i: (i, 0)),      # unpadded x tile
            resident((dp_in, dp_h1)), resident((1, dp_h1)),  # VMEM-resident params
            resident((dp_h1, dp_h2)), resident((1, dp_h2)),
            resident((dp_h2, dp_out)), resident((1, dp_out)),
        ],
        out_specs=pl.BlockSpec((tb, d_out), lambda i: (i, 0)),  # unpadded output
        scratch_shapes=[pltpu.VMEM((tb, dp_in), w1p.dtype)],    # in-VMEM x lane pad
        compiler_params=pltpu.CompilerParams(
            dimension_semantics=("parallel",)),
    )(x, w1p, b1p, w2p, b2p, w3p, b3p)

    return out[:B] if b_pad != B else out


def init_params(key, input_dims, hidden_dims, output_dims):
    """nn.Linear-style init (uniform +/- 1/sqrt(fan_in)); weights as [in, out]."""
    def linear(key, fan_in, fan_out):
        kw, kb = jax.random.split(key)
        bound = 1.0 / jnp.sqrt(fan_in)
        w = jax.random.uniform(kw, (fan_in, fan_out), jnp.float32,
                               minval=-bound, maxval=bound)
        b = jax.random.uniform(kb, (1, fan_out), jnp.float32,
                               minval=-bound, maxval=bound)
        return w, b

    k1, k2, k3 = jax.random.split(key, 3)
    w1, b1 = linear(k1, input_dims, hidden_dims)
    w2, b2 = linear(k2, hidden_dims, hidden_dims * 2)
    w3, b3 = linear(k3, hidden_dims * 2, output_dims)
    return w1, b1, w2, b2, w3, b3


def reference_forward(x, w1, b1, w2, b2, w3, b3):
    h = jnp.maximum(x @ w1 + b1, 0.0)
    h = jnp.maximum(h @ w2 + b2, 0.0)
    return h @ w3 + b3


if __name__ == "__main__":
    input_dims, hidden_dims, output_dims = 4, 32, 4
    batch = 1024   # single grid step on v5e/v6e, 2 even steps on v7x

    key = jax.random.PRNGKey(0)
    k_params, k_x = jax.random.split(key)
    raw = init_params(k_params, input_dims, hidden_dims, output_dims)
    x = jax.random.normal(k_x, (batch, input_dims), jnp.float32)

    ref = reference_forward(x, *raw)
    n_cores = _num_tensorcores()

    # f32-operand MXU path: matches the jnp reference tightly.
    p_f32 = prepare_params(*raw, use_bf16=False)
    out_f32 = jax.block_until_ready(
        sinnet_forward(x, *p_f32, d_out=output_dims,
                       block_b=1024, num_cores=n_cores))
    assert out_f32.shape == (batch, output_dims)
    assert jnp.allclose(out_f32, ref, atol=1e-5, rtol=1e-5)

    # bf16-operand MXU path (f32 accumulation + f32 bias/ReLU): looser tolerance
    # for bf16 operand rounding.
    p_bf16 = prepare_params(*raw, use_bf16=True)
    out_bf16 = jax.block_until_ready(
        sinnet_forward(x, *p_bf16, d_out=output_dims,
                       block_b=1024, num_cores=n_cores))
    assert out_bf16.shape == (batch, output_dims)
    assert jnp.allclose(out_bf16, ref, atol=5e-2, rtol=5e-2)

    print("KERNEL_OK")
</pallas_src>

<mosaic_0001>
module attributes {stable_mosaic.version = 11 : i64} {
  func.func @_sinnet_kernel(%arg0: i32, %arg1: memref<1024x4xf32, #tpu.memory_space<vmem>>, %arg2: memref<128x128xf32, #tpu.memory_space<vmem>>, %arg3: memref<1x128xf32, #tpu.memory_space<vmem>>, %arg4: memref<128x128xf32, #tpu.memory_space<vmem>>, %arg5: memref<1x128xf32, #tpu.memory_space<vmem>>, %arg6: memref<128x128xf32, #tpu.memory_space<vmem>>, %arg7: memref<1x128xf32, #tpu.memory_space<vmem>>, %arg8: memref<1024x4xf32, #tpu.memory_space<vmem>>, %arg9: memref<1024x128xf32, #tpu.memory_space<vmem>>) attributes {dimension_semantics = [#tpu.dimension_semantics<parallel>], iteration_bounds = array<i64: 1>, scalar_prefetch = 0 : i64, scratch_operands = 1 : i64, tpu.core_type = #tpu.core_type<tc>, window_params = [{transform_indices = @transform_0, window_bounds = array<i64: 1024, 4>}, {pipeline_mode = #tpu.pipeline_mode<synchronous>, transform_indices = @transform_1, window_bounds = array<i64: 128, 128>}, {pipeline_mode = #tpu.pipeline_mode<synchronous>, transform_indices = @transform_2, window_bounds = array<i64: 1, 128>}, {pipeline_mode = #tpu.pipeline_mode<synchronous>, transform_indices = @transform_3, window_bounds = array<i64: 128, 128>}, {pipeline_mode = #tpu.pipeline_mode<synchronous>, transform_indices = @transform_4, window_bounds = array<i64: 1, 128>}, {pipeline_mode = #tpu.pipeline_mode<synchronous>, transform_indices = @transform_5, window_bounds = array<i64: 128, 128>}, {pipeline_mode = #tpu.pipeline_mode<synchronous>, transform_indices = @transform_6, window_bounds = array<i64: 1, 128>}, {transform_indices = @transform_7, window_bounds = array<i64: 1024, 4>}]} {
    %cst = arith.constant 0.000000e+00 : f32
    %0 = vector.broadcast %cst : f32 to vector<1024x128xf32>
    %c0 = arith.constant 0 : index
    %c0_0 = arith.constant 0 : index
    %1 = vector.load %arg9[%c0, %c0_0] : memref<1024x128xf32, #tpu.memory_space<vmem>>, vector<1024x128xf32>
    tpu.vector_store %arg9[%c0, %c0_0], %0 {strides = array<i32>} : memref<1024x128xf32, #tpu.memory_space<vmem>>, vector<1024x128xf32>,
    %c0_1 = arith.constant 0 : index
    %c0_2 = arith.constant 0 : index
    %2 = vector.load %arg1[%c0_1, %c0_2] : memref<1024x4xf32, #tpu.memory_space<vmem>>, vector<1024x4xf32>
    %c0_3 = arith.constant 0 : index
    %c0_4 = arith.constant 0 : index
    %3 = vector.load %arg9[%c0_3, %c0_4] : memref<1024x128xf32, #tpu.memory_space<vmem>>, vector<1024x4xf32>
    tpu.vector_store %arg9[%c0_3, %c0_4], %2 {strides = array<i32>} : memref<1024x128xf32, #tpu.memory_space<vmem>>, vector<1024x4xf32>,
    %c0_5 = arith.constant 0 : index
    %c0_6 = arith.constant 0 : index
    %4 = vector.load %arg9[%c0_5, %c0_6] : memref<1024x128xf32, #tpu.memory_space<vmem>>, vector<1024x128xf32>
    %c0_7 = arith.constant 0 : index
    %c0_8 = arith.constant 0 : index
    %5 = vector.load %arg2[%c0_7, %c0_8] : memref<128x128xf32, #tpu.memory_space<vmem>>, vector<128x128xf32>
    %cst_9 = arith.constant dense<0.000000e+00> : vector<1024x128xf32>
    %6 = tpu.matmul %4, %5, %cst_9 {dimension_numbers = #tpu.dot_dimension_numbers<[1], [0], [0], [1], [0, 0, 1, 1], [], []>} : vector<1024x128xf32>, vector<128x128xf32>, vector<1024x128xf32> -> vector<1024x128xf32>
    %c0_10 = arith.constant 0 : index
    %c0_11 = arith.constant 0 : index
    %7 = vector.load %arg3[%c0_10, %c0_11] : memref<1x128xf32, #tpu.memory_space<vmem>>, vector<1x128xf32>
    %8 = vector.broadcast %7 : vector<1x128xf32> to vector<1024x128xf32>
    %9 = arith.addf %6, %8 : vector<1024x128xf32>
    %cst_12 = arith.constant 0.000000e+00 : f32
    %10 = vector.broadcast %cst_12 : f32 to vector<1024x128xf32>
    %11 = arith.maximumf %9, %10 : vector<1024x128xf32>
    %c0_13 = arith.constant 0 : index
    %c0_14 = arith.constant 0 : index
    %12 = vector.load %arg4[%c0_13, %c0_14] : memref<128x128xf32, #tpu.memory_space<vmem>>, vector<128x128xf32>
    %cst_15 = arith.constant dense<0.000000e+00> : vector<1024x128xf32>
    %13 = tpu.matmul %11, %12, %cst_15 {dimension_numbers = #tpu.dot_dimension_numbers<[1], [0], [0], [1], [0, 0, 1, 1], [], []>} : vector<1024x128xf32>, vector<128x128xf32>, vector<1024x128xf32> -> vector<1024x128xf32>
    %c0_16 = arith.constant 0 : index
    %c0_17 = arith.constant 0 : index
    %14 = vector.load %arg5[%c0_16, %c0_17] : memref<1x128xf32, #tpu.memory_space<vmem>>, vector<1x128xf32>
    %15 = vector.broadcast %14 : vector<1x128xf32> to vector<1024x128xf32>
    %16 = arith.addf %13, %15 : vector<1024x128xf32>
    %cst_18 = arith.constant 0.000000e+00 : f32
    %17 = vector.broadcast %cst_18 : f32 to vector<1024x128xf32>
    %18 = arith.maximumf %16, %17 : vector<1024x128xf32>
    %c0_19 = arith.constant 0 : index
    %c0_20 = arith.constant 0 : index
    %19 = vector.load %arg6[%c0_19, %c0_20] : memref<128x128xf32, #tpu.memory_space<vmem>>, vector<128x128xf32>
    %cst_21 = arith.constant dense<0.000000e+00> : vector<1024x128xf32>
    %20 = tpu.matmul %18, %19, %cst_21 {dimension_numbers = #tpu.dot_dimension_numbers<[1], [0], [0], [1], [0, 0, 1, 1], [], []>} : vector<1024x128xf32>, vector<128x128xf32>, vector<1024x128xf32> -> vector<1024x128xf32>
    %c0_22 = arith.constant 0 : index
    %c0_23 = arith.constant 0 : index
    %21 = vector.load %arg7[%c0_22, %c0_23] : memref<1x128xf32, #tpu.memory_space<vmem>>, vector<1x128xf32>
    %22 = vector.broadcast %21 : vector<1x128xf32> to vector<1024x128xf32>
    %23 = arith.addf %20, %22 : vector<1024x128xf32>
    %24 = vector.extract_strided_slice %23 {offsets = [0, 0], sizes = [1024, 4], strides = [1, 1]} : vector<1024x128xf32> to vector<1024x4xf32>
    %c0_24 = arith.constant 0 : index
    %c0_25 = arith.constant 0 : index
    %25 = vector.load %arg8[%c0_24, %c0_25] : memref<1024x4xf32, #tpu.memory_space<vmem>>, vector<1024x4xf32>
    tpu.vector_store %arg8[%c0_24, %c0_25], %24 {strides = array<i32>} : memref<1024x4xf32, #tpu.memory_space<vmem>>, vector<1024x4xf32>,
    return
  }
  func.func @transform_0(%arg0: i32) -> (i32, i32) {
    %c0_i32 = arith.constant 0 : i32
    %c0_i32_0 = arith.constant 0 : i32
    return %arg0, %c0_i32 : i32, i32
  }
  func.func @transform_1(%arg0: i32) -> (i32, i32) {
    %c0_i32 = arith.constant 0 : i32
    %c0_i32_0 = arith.constant 0 : i32
    %c0_i32_1 = arith.constant 0 : i32
    return %c0_i32, %c0_i32_0 : i32, i32
  }
  func.func @transform_2(%arg0: i32) -> (i32, i32) {
    %c0_i32 = arith.constant 0 : i32
    %c0_i32_0 = arith.constant 0 : i32
    %c0_i32_1 = arith.constant 0 : i32
    return %c0_i32, %c0_i32_0 : i32, i32
  }
  func.func @transform_3(%arg0: i32) -> (i32, i32) {
    %c0_i32 = arith.constant 0 : i32
    %c0_i32_0 = arith.constant 0 : i32
    %c0_i32_1 = arith.constant 0 : i32
    return %c0_i32, %c0_i32_0 : i32, i32
  }
  func.func @transform_4(%arg0: i32) -> (i32, i32) {
    %c0_i32 = arith.constant 0 : i32
    %c0_i32_0 = arith.constant 0 : i32
    %c0_i32_1 = arith.constant 0 : i32
    return %c0_i32, %c0_i32_0 : i32, i32
  }
  func.func @transform_5(%arg0: i32) -> (i32, i32) {
    %c0_i32 = arith.constant 0 : i32
    %c0_i32_0 = arith.constant 0 : i32
    %c0_i32_1 = arith.constant 0 : i32
    return %c0_i32, %c0_i32_0 : i32, i32
  }
  func.func @transform_6(%arg0: i32) -> (i32, i32) {
    %c0_i32 = arith.constant 0 : i32
    %c0_i32_0 = arith.constant 0 : i32
    %c0_i32_1 = arith.constant 0 : i32
    return %c0_i32, %c0_i32_0 : i32, i32
  }
  func.func @transform_7(%arg0: i32) -> (i32, i32) {
    %c0_i32 = arith.constant 0 : i32
    %c0_i32_0 = arith.constant 0 : i32
    return %arg0, %c0_i32 : i32, i32
  }
}

</mosaic_0001>

<bundles_post_ra>
// kernel: sinnet_forward.1
= control target key start
LH: loop header
LB: loop body
LE: loop exit
PB: predicated region body
PF: predicated region fallthrough
CT: control target
= control target key end

     0   :  { %v4333_v3 = vmov 0.0   ;;  %vm282_vm0 = vcmask 31744   ;;  %s6280_s1 = inlined_call_operand.vmem [shape: f32[128,128], index: 1, kind: input, shape index: {}]   ;;  %s6281_s0 = inlined_call_operand.vmem [shape: f32[1024,4], index: 0, kind: input, shape index: {}]   ;;  %s6282_s3 = inlined_call_operand.vmem [shape: f32[128,128], index: 3, kind: input, shape index: {}]   ;;  %s6283_s5 = inlined_call_operand.vmem [shape: f32[128,128], index: 5, kind: input, shape index: {}]   ;;  %s6284_s2 = inlined_call_operand.vmem [shape: f32[1,128], index: 2, kind: input, shape index: {}]   ;;  %s6285_s4 = inlined_call_operand.vmem [shape: f32[1,128], index: 4, kind: input, shape index: {}]   ;;  %s6286_s6 = inlined_call_operand.vmem [shape: f32[1,128], index: 6, kind: input, shape index: {}]   ;;  %s6287_s7 = inlined_call_operand.vmem [shape: f32[1024,4], index: 7, kind: output, shape index: {}]  }
   0x1   :  { %v4377_v0 = vld [vmem:[%s6280_s1] sm:$0xff]  ;;  %v4382_v1 = vld [vmem:[%s6280_s1 + $0x8] sm:$0xff]  ;;  %v4387_v2 = vld [vmem:[%s6280_s1 + $0x10] sm:$0xff]  ;;  %26 = vst [vmem:[#allocation2] sm:$0xff] %v4333_v3 }
   0x2   :  { %27 = vst [vmem:[#allocation2 + $0x8] sm:$0xff] %v4333_v3  ;;  %28 = vst [vmem:[#allocation2 + $0x10] sm:$0xff] %v4333_v3  ;;  %v4218_v4 = vpack.c.bf16 %v4382_v1, %v4377_v0  ;;  %v542_v5 = vld [vmem:[%s6280_s1 + $0x18] sm:$0xff]  ;;  %v543_v7 = vld [vmem:[%s6280_s1 + $0x20] sm:$0xff] }
   0x3   :  { %29 = vst [vmem:[#allocation2 + $0x18] sm:$0xff] %v4333_v3  ;;  %30 = vst [vmem:[#allocation2 + $0x20] sm:$0xff] %v4333_v3  ;;  %v4222_v6 = vpack.c.bf16 %v542_v5, %v4387_v2  ;;  %v544_v8 = vld [vmem:[%s6280_s1 + $0x28] sm:$0xff]  ;;  %v545_v9 = vld [vmem:[%s6280_s1 + $0x30] sm:$0xff] }
   0x4   :  { %31 = vst [vmem:[#allocation2 + $0x28] sm:$0xff] %v4333_v3  ;;  %32 = vst [vmem:[#allocation2 + $0x30] sm:$0xff] %v4333_v3  ;;  %4219 = vmatprep.subr.bf16.mxu0 %v4218_v4  ;;  %4314 = vmatprep.subr.bf16.mxu1 %v4218_v4  ;;  %v4226_v10 = vpack.c.bf16 %v544_v8, %v543_v7  ;;  %v546_v11 = vld [vmem:[%s6280_s1 + $0x38] sm:$0xff]  ;;  %v154_v12 = vld [vmem:[%s6281_s0] sm:$0xff] }
   0x5   :  { %33 = vst [vmem:[#allocation2 + $0x38] sm:$0xff] %v4333_v3  ;;  %34 = vst [vmem:[#allocation2 + $0x40] sm:$0xff] %v4333_v3  ;;  %4221 = vmatpush3.bf16.msra.mxu0 %v4218_v4  ;;  %4322 = vmatpush3.bf16.msra.mxu1 %v4218_v4  ;;  %v155_v13 = vld [vmem:[%s6281_s0 + $0x8] sm:$0xff]  ;;  %v156_v14 = vld [vmem:[%s6281_s0 + $0x10] sm:$0xff]  ;;  %v4230_v25 = vpack.c.bf16 %v546_v11, %v545_v9 }
   0x6   :  { %35 = vst [vmem:[#allocation2 + $0x48] sm:$0xff] %v4333_v3  ;;  %36 = vst [vmem:[#allocation2 + $0x50] sm:$0xff] %v4333_v3  ;;  %4223 = vmatprep.subr.bf16.mxu0 %v4222_v6  ;;  %4315 = vmatprep.subr.bf16.mxu1 %v4222_v6  ;;  %v157_v15 = vld [vmem:[%s6281_s0 + $0x18] sm:$0xff]  ;;  %v158_v16 = vld [vmem:[%s6281_s0 + $0x20] sm:$0xff] }
   0x7   :  { %37 = vst [vmem:[#allocation2 + $0x58] sm:$0xff] %v4333_v3  ;;  %38 = vst [vmem:[#allocation2 + $0x60] sm:$0xff] %v4333_v3  ;;  %v159_v17 = vld [vmem:[%s6281_s0 + $0x28] sm:$0xff]  ;;  %v160_v18 = vld [vmem:[%s6281_s0 + $0x30] sm:$0xff] }
   0x8   :  { %39 = vst [vmem:[#allocation2 + $0x68] sm:$0xff] %v4333_v3  ;;  %40 = vst [vmem:[#allocation2 + $0x70] sm:$0xff] %v4333_v3  ;;  %v161_v19 = vld [vmem:[%s6281_s0 + $0x38] sm:$0xff]  ;;  %v547_v20 = vld [vmem:[%s6280_s1 + $0x40] sm:$0xff] }
   0x9   :  { %41 = vst [vmem:[#allocation2 + $0x78] sm:$0xff] %v4333_v3  ;;  %42 = vst [vmem:[#allocation2 + $0x80] sm:$0xff] %v4333_v3  ;;  %4225 = vmatpush3.bf16.msra.mxu0 %v4222_v6  ;;  %v548_v21 = vld [vmem:[%s6280_s1 + $0x48] sm:$0xff]  ;;  %v162_v22 = vld [vmem:[%s6281_s0 + $0x40] sm:$0xff]  ;;  %4323 = vmatpush3.bf16.msra.mxu1 %v4222_v6 }
   0xa   :  { %43 = vst [vmem:[#allocation2 + $0x88] sm:$0xff] %v4333_v3  ;;  %44 = vst [vmem:[#allocation2 + $0x90] sm:$0xff] %v4333_v3  ;;  %v163_v23 = vld [vmem:[%s6281_s0 + $0x48] sm:$0xff]  ;;  %v164_v24 = vld [vmem:[%s6281_s0 + $0x50] sm:$0xff]  ;;  %4227 = vmatprep.subr.bf16.mxu0 %v4226_v10  ;;  %4316 = vmatprep.subr.bf16.mxu1 %v4226_v10  ;;  %v4234_v38 = vpack.c.bf16 %v548_v21, %v547_v20 }
   0xb   :  { %45 = vst [vmem:[#allocation2 + $0x98] sm:$0xff] %v4333_v3  ;;  %46 = vst [vmem:[#allocation2 + $0xa0] sm:$0xff] %v4333_v3  ;;  %v165_v26 = vld [vmem:[%s6281_s0 + $0x58] sm:$0xff]  ;;  %v166_v27 = vld [vmem:[%s6281_s0 + $0x60] sm:$0xff] }
   0xc   :  { %47 = vst [vmem:[#allocation2 + $0xa8] sm:$0xff] %v4333_v3  ;;  %48 = vst [vmem:[#allocation2 + $0xb0] sm:$0xff] %v4333_v3  ;;  %v167_v28 = vld [vmem:[%s6281_s0 + $0x68] sm:$0xff]  ;;  %v168_v29 = vld [vmem:[%s6281_s0 + $0x70] sm:$0xff] }
   0xd   :  { %49 = vst [vmem:[#allocation2 + $0xb8] sm:$0xff] %v4333_v3  ;;  %50 = vst [vmem:[#allocation2 + $0xc0] sm:$0xff] %v4333_v3  ;;  %v169_v30 = vld [vmem:[%s6281_s0 + $0x78] sm:$0xff]  ;;  %v170_v31 = vld [vmem:[%s6281_s0 + $0x80] sm:$0xff]  ;;  %4229 = vmatpush3.bf16.msra.mxu0 %v4226_v10  ;;  %4324 = vmatpush3.bf16.msra.mxu1 %v4226_v10 }
   0xe   :  { %51 = vst [vmem:[#allocation2 + $0xc8] sm:$0xff] %v4333_v3  ;;  %52 = vst [vmem:[#allocation2 + $0xd0] sm:$0xff] %v4333_v3  ;;  %v171_v32 = vld [vmem:[%s6281_s0 + $0x88] sm:$0xff]  ;;  %v172_v33 = vld [vmem:[%s6281_s0 + $0x90] sm:$0xff]  ;;  %4231 = vmatprep.subr.bf16.mxu0 %v4230_v25  ;;  %4317 = vmatprep.subr.bf16.mxu1 %v4230_v25 }
   0xf   :  { %53 = vst [vmem:[#allocation2 + $0xd8] sm:$0xff] %v4333_v3  ;;  %54 = vst [vmem:[#allocation2 + $0xe0] sm:$0xff] %v4333_v3  ;;  %v173_v34 = vld [vmem:[%s6281_s0 + $0x98] sm:$0xff]  ;;  %v174_v35 = vld [vmem:[%s6281_s0 + $0xa0] sm:$0xff] }
  0x10   :  { %55 = vst [vmem:[#allocation2 + $0xe8] sm:$0xff] %v4333_v3  ;;  %56 = vst [vmem:[#allocation2 + $0xf0] sm:$0xff] %v4333_v3  ;;  %v175_v36 = vld [vmem:[%s6281_s0 + $0xa8] sm:$0xff]  ;;  %v176_v37 = vld [vmem:[%s6281_s0 + $0xb0] sm:$0xff] }
  0x11   :  { %57 = vst [vmem:[#allocation2 + $0xf8] sm:$0xff] %v4333_v3  ;;  %58 = vst [vmem:[#allocation2 + $0x100] sm:$0xff] %v4333_v3  ;;  %v177_v40 = vld [vmem:[%s6281_s0 + $0xb8] sm:$0xff]  ;;  %v549_v41 = vld [vmem:[%s6280_s1 + $0x50] sm:$0xff]  ;;  %4233 = vmatpush3.bf16.msra.mxu0 %v4230_v25  ;;  %4325 = vmatpush3.bf16.msra.mxu1 %v4230_v25 }
  0x12   :  { %59 = vst [vmem:[#allocation2 + $0x108] sm:$0xff] %v4333_v3  ;;  %60 = vst [vmem:[#allocation2 + $0x110] sm:$0xff] %v4333_v3  ;;  %v550_v42 = vld [vmem:[%s6280_s1 + $0x58] sm:$0xff]  ;;  %4235 = vmatprep.subr.bf16.mxu0 %v4234_v38  ;;  %4318 = vmatprep.subr.bf16.mxu1 %v4234_v38  ;;  %v551_v44 = vld [vmem:[%s6280_s1 + $0x60] sm:$0xff] }
  0x13   :  { %61 = vst [vmem:[#allocation2 + $0x118] sm:$0xff] %v4333_v3  ;;  %62 = vst [vmem:[#allocation2 + $0x120] sm:$0xff] %v4333_v3  ;;  %v4238_v43 = vpack.c.bf16 %v550_v42, %v549_v41  ;;  %v552_v45 = vld [vmem:[%s6280_s1 + $0x68] sm:$0xff]  ;;  %v553_v46 = vld [vmem:[%s6280_s1 + $0x70] sm:$0xff] }
  0x14   :  { %63 = vst [vmem:[#allocation2 + $0x128] sm:$0xff] %v4333_v3  ;;  %64 = vst [vmem:[#allocation2 + $0x130] sm:$0xff] %v4333_v3  ;;  %v4242_v47 = vpack.c.bf16 %v552_v45, %v551_v44  ;;  %v554_v48 = vld [vmem:[%s6280_s1 + $0x78] sm:$0xff]  ;;  %v178_v49 = vld [vmem:[%s6281_s0 + $0xc0] sm:$0xff] }
  0x15   :  { %65 = vst [vmem:[#allocation2 + $0x138] sm:$0xff] %v4333_v3  ;;  %66 = vst [vmem:[#allocation2 + $0x140] sm:$0xff] %v4333_v3  ;;  %4237 = vmatpush3.bf16.msra.mxu0 %v4234_v38  ;;  %4326 = vmatpush3.bf16.msra.mxu1 %v4234_v38  ;;  %v179_v50 = vld [vmem:[%s6281_s0 + $0xc8] sm:$0xff]  ;;  %v180_v51 = vld [vmem:[%s6281_s0 + $0xd0] sm:$0xff]  ;;  %v4246_v60 = vpack.c.bf16 %v554_v48, %v553_v46 }
  0x16   :  { %67 = vst [vmem:[#allocation2 + $0x148] sm:$0xff] %v4333_v3  ;;  %68 = vst [vmem:[#allocation2 + $0x150] sm:$0xff] %v4333_v3  ;;  %4239 = vmatprep.subr.bf16.mxu0 %v4238_v43  ;;  %4319 = vmatprep.subr.bf16.mxu1 %v4238_v43  ;;  %v181_v52 = vld [vmem:[%s6281_s0 + $0xd8] sm:$0xff]  ;;  %v182_v53 = vld [vmem:[%s6281_s0 + $0xe0] sm:$0xff] }
  0x17   :  { %69 = vst [vmem:[#allocation2 + $0x158] sm:$0xff] %v4333_v3  ;;  %70 = vst [vmem:[#allocation2 + $0x160] sm:$0xff] %v4333_v3  ;;  %v183_v54 = vld [vmem:[%s6281_s0 + $0xe8] sm:$0xff]  ;;  %v184_v55 = vld [vmem:[%s6281_s0 + $0xf0] sm:$0xff] }
  0x18   :  { %71 = vst [vmem:[#allocation2 + $0x168] sm:$0xff] %v4333_v3  ;;  %72 = vst [vmem:[#allocation2 + $0x170] sm:$0xff] %v4333_v3  ;;  %v185_v56 = vld [vmem:[%s6281_s0 + $0xf8] sm:$0xff]  ;;  %v186_v57 = vld [vmem:[%s6281_s0 + $0x100] sm:$0xff] }
  0x19   :  { %73 = vst [vmem:[#allocation2 + $0x178] sm:$0xff] %v4333_v3  ;;  %74 = vst [vmem:[#allocation2 + $0x180] sm:$0xff] %v4333_v3  ;;  %4241 = vmatpush3.bf16.msra.mxu0 %v4238_v43  ;;  %v187_v58 = vld [vmem:[%s6281_s0 + $0x108] sm:$0xff]  ;;  %v188_v59 = vld [vmem:[%s6281_s0 + $0x110] sm:$0xff]  ;;  %4327 = vmatpush3.bf16.msra.mxu1 %v4238_v43 }
  0x1a   :  { %75 = vst [vmem:[#allocation2 + $0x188] sm:$0xff] %v4333_v3  ;;  %76 = vst [vmem:[#allocation2 + $0x190] sm:$0xff] %v4333_v3  ;;  %4243 = vmatprep.subr.bf16.mxu0 %v4242_v47  ;;  %v189_v61 = vld [vmem:[%s6281_s0 + $0x118] sm:$0xff]  ;;  %v190_v62 = vld [vmem:[%s6281_s0 + $0x120] sm:$0xff]  ;;  %4320 = vmatprep.subr.bf16.mxu1 %v4242_v47 }
  0x1b   :  { %77 = vst [vmem:[#allocation2 + $0x198] sm:$0xff] %v4333_v3  ;;  %78 = vst [vmem:[#allocation2 + $0x1a0] sm:$0xff] %v4333_v3  ;;  %v191_v63 = vld [vmem:[%s6281_s0 + $0x128] sm:$0xff]  ;;  %v192_v0 = vld [vmem:[%s6281_s0 + $0x130] sm:$0xff] }
  0x1c   :  { %79 = vst [vmem:[#allocation2 + $0x1a8] sm:$0xff] %v4333_v3  ;;  %80 = vst [vmem:[#allocation2 + $0x1b0] sm:$0xff] %v4333_v3  ;;  %v193_v1 = vld [vmem:[%s6281_s0 + $0x138] sm:$0xff]  ;;  %v194_v2 = vld [vmem:[%s6281_s0 + $0x140] sm:$0xff] }
  0x1d   :  { %81 = vst [vmem:[#allocation2 + $0x1b8] sm:$0xff] %v4333_v3  ;;  %82 = vst [vmem:[#allocation2 + $0x1c0] sm:$0xff] %v4333_v3  ;;  %v196_v4 = vld [vmem:[%s6281_s0 + $0x150] sm:$0xff]  ;;  %v197_v5 = vld [vmem:[%s6281_s0 + $0x158] sm:$0xff]  ;;  %4245 = vmatpush3.bf16.msra.mxu0 %v4242_v47  ;;  %4328 = vmatpush3.bf16.msra.mxu1 %v4242_v47 }
  0x1e   :  { %83 = vst [vmem:[#allocation2 + $0x1c8] sm:$0xff] %v4333_v3  ;;  %84 = vst [vmem:[#allocation2 + $0x1d0] sm:$0xff] %v4333_v3  ;;  %v198_v6 = vld [vmem:[%s6281_s0 + $0x160] sm:$0xff]  ;;  %v199_v7 = vld [vmem:[%s6281_s0 + $0x168] sm:$0xff]  ;;  %4247 = vmatprep.subr.bf16.mxu0 %v4246_v60  ;;  %4321 = vmatprep.subr.bf16.mxu1 %v4246_v60 }
  0x1f   :  { %85 = vst [vmem:[#allocation2 + $0x1d8] sm:$0xff] %v4333_v3  ;;  %86 = vst [vmem:[#allocation2 + $0x1e0] sm:$0xff] %v4333_v3  ;;  %v218_v8 = vld [vmem:[%s6281_s0 + $0x200] sm:$0xff]  ;;  %v219_v9 = vld [vmem:[%s6281_s0 + $0x208] sm:$0xff] }
  0x20   :  { %87 = vst [vmem:[#allocation2 + $0x1e8] sm:$0xff] %v4333_v3  ;;  %88 = vst [vmem:[#allocation2 + $0x1f0] sm:$0xff] %v4333_v3  ;;  %v200_v20 = vld [vmem:[%s6281_s0 + $0x170] sm:$0xff]  ;;  %v201_v21 = vld [vmem:[%s6281_s0 + $0x178] sm:$0xff] }
  0x21   :  { %89 = vst [vmem:[#allocation2 + $0x1f8] sm:$0xff] %v4333_v3  ;;  %90 = vst [vmem:[#allocation2 + $0x200] sm:$0xff] %v4333_v3  ;;  %4249 = vmatpush3.bf16.msra.mxu0 %v4246_v60  ;;  %4329 = vmatpush3.bf16.msra.mxu1 %v4246_v60  ;;  %v202_v25 = vld [vmem:[%s6281_s0 + $0x180] sm:$0xff]  ;;  %v227_v38 = vld [vmem:[%s6281_s0 + $0x248] sm:$0xff] }
  0x22   :  { %91 = vst [vmem:[#allocation2 + $0x208] sm:$0xff] %v4333_v3  ;;  %92 = vst [vmem:[#allocation2 + $0x210] sm:$0xff] %v4333_v3  ;;  %v208_v42 = vld [vmem:[%s6281_s0 + $0x1b0] sm:$0xff]  ;;  %v209_v43 = vld [vmem:[%s6281_s0 + $0x1b8] sm:$0xff] }
  0x23   :  { %93 = vst [vmem:[#allocation2 + $0x218] sm:$0xff] %v4333_v3  ;;  %94 = vst [vmem:[#allocation2 + $0x220] sm:$0xff] %v4333_v3  ;;  %v228_v44 = vld [vmem:[%s6281_s0 + $0x250] sm:$0xff]  ;;  %v229_v45 = vld [vmem:[%s6281_s0 + $0x258] sm:$0xff] }
  0x24   :  { %95 = vst [vmem:[#allocation2 + $0x228] sm:$0xff] %v4333_v3  ;;  %96 = vst [vmem:[#allocation2 + $0x230] sm:$0xff] %v4333_v3  ;;  %v210_v46 = vld [vmem:[%s6281_s0 + $0x1c0] sm:$0xff]  ;;  %v211_v47 = vld [vmem:[%s6281_s0 + $0x1c8] sm:$0xff] }
  0x25   :  { %97 = vst [vmem:[#allocation2 + $0x238] sm:$0xff] %v4333_v3  ;;  %98 = vst [vmem:[#allocation2 + $0x240] sm:$0xff] %v4333_v3 }
  0x26   :  { %99 = vst [vmem:[#allocation2 + $0x248] sm:$0xff] %v4333_v3  ;;  %100 = vst [vmem:[#allocation2 + $0x250] sm:$0xff] %v4333_v3 }
  0x27   :  { %101 = vst [vmem:[#allocation2 + $0x258] sm:$0xff] %v4333_v3  ;;  %102 = vst [vmem:[#allocation2 + $0x260] sm:$0xff] %v4333_v3 }
  0x28   :  { %103 = vst [vmem:[#allocation2 + $0x268] sm:$0xff] %v4333_v3  ;;  %104 = vst [vmem:[#allocation2 + $0x270] sm:$0xff] %v4333_v3 }
  0x29   :  { %105 = vst [vmem:[#allocation2 + $0x278] sm:$0xff] %v4333_v3  ;;  %106 = vst [vmem:[#allocation2 + $0x280] sm:$0xff] %v4333_v3 }
  0x2a   :  { %107 = vst [vmem:[#allocation2 + $0x288] sm:$0xff] %v4333_v3  ;;  %108 = vst [vmem:[#allocation2 + $0x290] sm:$0xff] %v4333_v3 }
  0x2b   :  { %109 = vst [vmem:[#allocation2 + $0x298] sm:$0xff] %v4333_v3  ;;  %110 = vst [vmem:[#allocation2 + $0x2a0] sm:$0xff] %v4333_v3 }
  0x2c   :  { %111 = vst [vmem:[#allocation2 + $0x2a8] sm:$0xff] %v4333_v3  ;;  %112 = vst [vmem:[#allocation2 + $0x2b0] sm:$0xff] %v4333_v3 }
  0x2d   :  { %113 = vst [vmem:[#allocation2 + $0x2b8] sm:$0xff] %v4333_v3  ;;  %114 = vst [vmem:[#allocation2 + $0x2c0] sm:$0xff] %v4333_v3 }
  0x2e   :  { %115 = vst [vmem:[#allocation2 + $0x2c8] sm:$0xff] %v4333_v3  ;;  %116 = vst [vmem:[#allocation2 + $0x2d0] sm:$0xff] %v4333_v3 }
  0x2f   :  { %117 = vst [vmem:[#allocation2 + $0x2d8] sm:$0xff] %v4333_v3  ;;  %118 = vst [vmem:[#allocation2 + $0x2e0] sm:$0xff] %v4333_v3 }
  0x30   :  { %119 = vst [vmem:[#allocation2 + $0x2e8] sm:$0xff] %v4333_v3  ;;  %120 = vst [vmem:[#allocation2 + $0x2f0] sm:$0xff] %v4333_v3 }
  0x31   :  { %121 = vst [vmem:[#allocation2 + $0x2f8] sm:$0xff] %v4333_v3  ;;  %122 = vst [vmem:[#allocation2 + $0x300] sm:$0xff] %v4333_v3 }
  0x32   :  { %123 = vst [vmem:[#allocation2 + $0x308] sm:$0xff] %v4333_v3  ;;  %124 = vst [vmem:[#allocation2 + $0x310] sm:$0xff] %v4333_v3 }
  0x33   :  { %125 = vst [vmem:[#allocation2 + $0x318] sm:$0xff] %v4333_v3  ;;  %126 = vst [vmem:[#allocation2 + $0x320] sm:$0xff] %v4333_v3 }
  0x34   :  { %127 = vst [vmem:[#allocation2 + $0x328] sm:$0xff] %v4333_v3  ;;  %128 = vst [vmem:[#allocation2 + $0x330] sm:$0xff] %v4333_v3 }
  0x35   :  { %129 = vst [vmem:[#allocation2 + $0x338] sm:$0xff] %v4333_v3  ;;  %130 = vst [vmem:[#allocation2 + $0x340] sm:$0xff] %v4333_v3 }
  0x36   :  { %131 = vst [vmem:[#allocation2 + $0x348] sm:$0xff] %v4333_v3  ;;  %132 = vst [vmem:[#allocation2 + $0x350] sm:$0xff] %v4333_v3 }
  0x37   :  { %133 = vst [vmem:[#allocation2 + $0x358] sm:$0xff] %v4333_v3  ;;  %134 = vst [vmem:[#allocation2 + $0x360] sm:$0xff] %v4333_v3 }
  0x38   :  { %135 = vst [vmem:[#allocation2 + $0x368] sm:$0xff] %v4333_v3  ;;  %136 = vst [vmem:[#allocation2 + $0x370] sm:$0xff] %v4333_v3 }
  0x39   :  { %137 = vst [vmem:[#allocation2 + $0x378] sm:$0xff] %v4333_v3  ;;  %138 = vst [vmem:[#allocation2 + $0x380] sm:$0xff] %v4333_v3 }
  0x3a   :  { %139 = vst [vmem:[#allocation2 + $0x388] sm:$0xff] %v4333_v3  ;;  %140 = vst [vmem:[#allocation2 + $0x390] sm:$0xff] %v4333_v3 }
  0x3b   :  { %141 = vst [vmem:[#allocation2 + $0x398] sm:$0xff] %v4333_v3  ;;  %142 = vst [vmem:[#allocation2 + $0x3a0] sm:$0xff] %v4333_v3 }
  0x3c   :  { %143 = vst [vmem:[#allocation2 + $0x3a8] sm:$0xff] %v4333_v3  ;;  %144 = vst [vmem:[#allocation2 + $0x3b0] sm:$0xff] %v4333_v3 }
  0x3d   :  { %145 = vst [vmem:[#allocation2 + $0x3b8] sm:$0xff] %v4333_v3  ;;  %146 = vst [vmem:[#allocation2 + $0x3c0] sm:$0xff] %v4333_v3 }
  0x3e   :  { %147 = vst [vmem:[#allocation2 + $0x3c8] sm:$0xff] %v4333_v3  ;;  %148 = vst [vmem:[#allocation2 + $0x3d0] sm:$0xff] %v4333_v3 }
  0x3f   :  { %149 = vst [vmem:[#allocation2 + $0x3d8] sm:$0xff] %v4333_v3  ;;  %150 = vst [vmem:[#allocation2 + $0x3e0] sm:$0xff] %v4333_v3 }
  0x40   :  { %151 = vst [vmem:[#allocation2 + $0x3e8] sm:$0xff] %v4333_v3  ;;  %152 = vst [vmem:[#allocation2 + $0x3f0] sm:$0xff] %v4333_v3 }
  0x41   :  { %153 = vst [vmem:[#allocation2 + $0x3f8] sm:$0xff] %v4333_v3  ;;  %283 = vst.msk [vmem:[#allocation2] sm:$0xff] %vm282_vm0, %v154_v12  ;;  %v195_v3 = vld [vmem:[%s6281_s0 + $0x148] sm:$0xff] }
  0x42   :  { %284 = vst.msk [vmem:[#allocation2 + $0x8] sm:$0xff] %vm282_vm0, %v155_v13  ;;  %285 = vst.msk [vmem:[#allocation2 + $0x10] sm:$0xff] %vm282_vm0, %v156_v14 }
  0x43   :  { %286 = vst.msk [vmem:[#allocation2 + $0x18] sm:$0xff] %vm282_vm0, %v157_v15  ;;  %287 = vst.msk [vmem:[#allocation2 + $0x20] sm:$0xff] %vm282_vm0, %v158_v16  ;;  %v1395_v16 = vld [vmem:[%s6282_s3] sm:$0xff] }
  0x44   :  { %288 = vst.msk [vmem:[#allocation2 + $0x28] sm:$0xff] %vm282_vm0, %v159_v17  ;;  %289 = vst.msk [vmem:[#allocation2 + $0x30] sm:$0xff] %vm282_vm0, %v160_v18  ;;  %v1396_v17 = vld [vmem:[%s6282_s3 + $0x8] sm:$0xff] }
  0x45   :  { %290 = vst.msk [vmem:[#allocation2 + $0x38] sm:$0xff] %vm282_vm0, %v161_v19  ;;  %291 = vst.msk [vmem:[#allocation2 + $0x40] sm:$0xff] %vm282_vm0, %v162_v22  ;;  %v4250_v19 = vpack.c.bf16 %v1396_v17, %v1395_v16  ;;  %v220_v22 = vld [vmem:[%s6281_s0 + $0x210] sm:$0xff]  ;;  %v237_v16 = vld [vmem:[%s6281_s0 + $0x298] sm:$0xff] }
  0x46   :  { %292 = vst.msk [vmem:[#allocation2 + $0x48] sm:$0xff] %vm282_vm0, %v163_v23  ;;  %293 = vst.msk [vmem:[#allocation2 + $0x50] sm:$0xff] %vm282_vm0, %v164_v24  ;;  %v221_v24 = vld [vmem:[%s6281_s0 + $0x218] sm:$0xff]  ;;  %v238_v17 = vld [vmem:[%s6281_s0 + $0x2a0] sm:$0xff] }
  0x47   :  { %294 = vst.msk [vmem:[#allocation2 + $0x58] sm:$0xff] %vm282_vm0, %v165_v26  ;;  %295 = vst.msk [vmem:[#allocation2 + $0x60] sm:$0xff] %vm282_vm0, %v166_v27  ;;  %v203_v26 = vld [vmem:[%s6281_s0 + $0x188] sm:$0xff]  ;;  %4251 = vmatprep.subr.bf16.mxu1 %v4250_v19  ;;  %v222_v27 = vld [vmem:[%s6281_s0 + $0x220] sm:$0xff] }
  0x48   :  { %296 = vst.msk [vmem:[#allocation2 + $0x68] sm:$0xff] %vm282_vm0, %v167_v28  ;;  %297 = vst.msk [vmem:[#allocation2 + $0x70] sm:$0xff] %vm282_vm0, %v168_v29  ;;  %v411_v39 = vld [vmem:[#allocation2] sm:$0xff]  ;;  %v223_v28 = vld [vmem:[%s6281_s0 + $0x228] sm:$0xff] }
  0x49   :  { %298 = vst.msk [vmem:[#allocation2 + $0x78] sm:$0xff] %vm282_vm0, %v169_v30  ;;  %299 = vst.msk [vmem:[#allocation2 + $0x80] sm:$0xff] %vm282_vm0, %v170_v31  ;;  %3578 = vmatprep.mubr.f32.mxu0 %v411_v39  ;;  %v412_v10 = vld [vmem:[#allocation2 + $0x8] sm:$0xff]  ;;  %v413_v11 = vld [vmem:[#allocation2 + $0x10] sm:$0xff] }
  0x4a   :  { %300 = vst.msk [vmem:[#allocation2 + $0x88] sm:$0xff] %vm282_vm0, %v171_v32  ;;  %301 = vst.msk [vmem:[#allocation2 + $0x90] sm:$0xff] %vm282_vm0, %v172_v33  ;;  %3579 = vmatmul.mubr.f32.vlgmr.msra.gmra.mrb[0].mxu0 %v412_v10  ;;  %v414_v12 = vld [vmem:[#allocation2 + $0x18] sm:$0xff]  ;;  %v415_v13 = vld [vmem:[#allocation2 + $0x20] sm:$0xff] }
  0x4b   :  { %302 = vst.msk [vmem:[#allocation2 + $0x98] sm:$0xff] %vm282_vm0, %v173_v34  ;;  %303 = vst.msk [vmem:[#allocation2 + $0xa0] sm:$0xff] %vm282_vm0, %v174_v35  ;;  %3581 = vmatprep.mubr.f32.mxu0 %v413_v11  ;;  %v416_v18 = vld [vmem:[#allocation2 + $0x28] sm:$0xff]  ;;  %v417_v23 = vld [vmem:[#allocation2 + $0x30] sm:$0xff] }
  0x4c   :  { %304 = vst.msk [vmem:[#allocation2 + $0xa8] sm:$0xff] %vm282_vm0, %v175_v36  ;;  %305 = vst.msk [vmem:[#allocation2 + $0xb0] sm:$0xff] %vm282_vm0, %v176_v37  ;;  %v204_v29 = vld [vmem:[%s6281_s0 + $0x190] sm:$0xff]  ;;  %v205_v30 = vld [vmem:[%s6281_s0 + $0x198] sm:$0xff] }
  0x4d   :  { %306 = vst.msk [vmem:[#allocation2 + $0xb8] sm:$0xff] %vm282_vm0, %v177_v40  ;;  %307 = vst.msk [vmem:[#allocation2 + $0xc0] sm:$0xff] %vm282_vm0, %v178_v49  ;;  %v224_v31 = vld [vmem:[%s6281_s0 + $0x230] sm:$0xff]  ;;  %v225_v32 = vld [vmem:[%s6281_s0 + $0x238] sm:$0xff] }
  0x4e   :  { %308 = vst.msk [vmem:[#allocation2 + $0xc8] sm:$0xff] %vm282_vm0, %v179_v50  ;;  %309 = vst.msk [vmem:[#allocation2 + $0xd0] sm:$0xff] %vm282_vm0, %v180_v51  ;;  %3582 = vmatmul.mubr.f32.gmra.mrb[2].mxu0 %v414_v12  ;;  %v418_v33 = vld [vmem:[#allocation2 + $0x38] sm:$0xff]  ;;  %v206_v34 = vld [vmem:[%s6281_s0 + $0x1a0] sm:$0xff] }
  0x4f   :  { %310 = vst.msk [vmem:[#allocation2 + $0xd8] sm:$0xff] %vm282_vm0, %v181_v52  ;;  %311 = vst.msk [vmem:[#allocation2 + $0xe0] sm:$0xff] %vm282_vm0, %v182_v53  ;;  %3584 = vmatprep.mubr.f32.mxu0 %v415_v13  ;;  %v207_v35 = vld [vmem:[%s6281_s0 + $0x1a8] sm:$0xff]  ;;  %v226_v36 = vld [vmem:[%s6281_s0 + $0x240] sm:$0xff] }
  0x50   :  { %312 = vst.msk [vmem:[#allocation2 + $0xe8] sm:$0xff] %vm282_vm0, %v183_v54  ;;  %313 = vst.msk [vmem:[#allocation2 + $0xf0] sm:$0xff] %vm282_vm0, %v184_v55  ;;  %v419_v37 = vld [vmem:[#allocation2 + $0x40] sm:$0xff]  ;;  %v1397_v39 = vld [vmem:[%s6282_s3 + $0x10] sm:$0xff] }
  0x51   :  { %314 = vst.msk [vmem:[#allocation2 + $0xf8] sm:$0xff] %vm282_vm0, %v185_v56  ;;  %315 = vst.msk [vmem:[#allocation2 + $0x100] sm:$0xff] %vm282_vm0, %v186_v57  ;;  %v1398_v40 = vld [vmem:[%s6282_s3 + $0x18] sm:$0xff]  ;;  %v420_v50 = vld [vmem:[#allocation2 + $0x48] sm:$0xff] }
  0x52   :  { %316 = vst.msk [vmem:[#allocation2 + $0x108] sm:$0xff] %vm282_vm0, %v187_v58  ;;  %317 = vst.msk [vmem:[#allocation2 + $0x110] sm:$0xff] %vm282_vm0, %v188_v59  ;;  %3585 = vmatmul.mubr.f32.gmra.mrb[4].mxu0 %v416_v18  ;;  %v4254_v41 = vpack.c.bf16 %v1398_v40, %v1397_v39  ;;  %v421_v52 = vld [vmem:[#allocation2 + $0x50] sm:$0xff]  ;;  %v230_v55 = vld [vmem:[%s6281_s0 + $0x260] sm:$0xff] }
  0x53   :  { %318 = vst.msk [vmem:[#allocation2 + $0x118] sm:$0xff] %vm282_vm0, %v189_v61  ;;  %319 = vst.msk [vmem:[#allocation2 + $0x120] sm:$0xff] %vm282_vm0, %v190_v62  ;;  %3587 = vmatprep.mubr.f32.mxu0 %v417_v23  ;;  %v231_v56 = vld [vmem:[%s6281_s0 + $0x268] sm:$0xff]  ;;  %v422_v57 = vld [vmem:[#allocation2 + $0x58] sm:$0xff] }
  0x54   :  { %320 = vst.msk [vmem:[#allocation2 + $0x128] sm:$0xff] %vm282_vm0, %v191_v63  ;;  %321 = vst.msk [vmem:[#allocation2 + $0x130] sm:$0xff] %vm282_vm0, %v192_v0  ;;  %v423_v58 = vld [vmem:[#allocation2 + $0x60] sm:$0xff]  ;;  %v424_v61 = vld [vmem:[#allocation2 + $0x68] sm:$0xff] }
  0x55   :  { %322 = vst.msk [vmem:[#allocation2 + $0x138] sm:$0xff] %vm282_vm0, %v193_v1  ;;  %323 = vst.msk [vmem:[#allocation2 + $0x140] sm:$0xff] %vm282_vm0, %v194_v2  ;;  %v212_v62 = vld [vmem:[%s6281_s0 + $0x1d0] sm:$0xff]  ;;  %v213_v63 = vld [vmem:[%s6281_s0 + $0x1d8] sm:$0xff] }
  0x56   :  { %324 = vst.msk [vmem:[#allocation2 + $0x148] sm:$0xff] %vm282_vm0, %v195_v3  ;;  %325 = vst.msk [vmem:[#allocation2 + $0x150] sm:$0xff] %vm282_vm0, %v196_v4  ;;  %3588 = vmatmul.mubr.f32.gmra.mrb[6].mxu0 %v418_v33  ;;  %v232_v0 = vld [vmem:[%s6281_s0 + $0x270] sm:$0xff]  ;;  %v233_v3 = vld [vmem:[%s6281_s0 + $0x278] sm:$0xff] }
  0x57   :  { %326 = vst.msk [vmem:[#allocation2 + $0x158] sm:$0xff] %vm282_vm0, %v197_v5  ;;  %327 = vst.msk [vmem:[#allocation2 + $0x160] sm:$0xff] %vm282_vm0, %v198_v6  ;;  %3590 = vmatprep.mubr.f32.mxu0 %v419_v37  ;;  %v425_v1 = vld [vmem:[#allocation2 + $0x70] sm:$0xff]  ;;  %v214_v4 = vld [vmem:[%s6281_s0 + $0x1e0] sm:$0xff] }
  0x58   :  { %328 = vst.msk [vmem:[#allocation2 + $0x168] sm:$0xff] %vm282_vm0, %v199_v7  ;;  %347 = vst.msk [vmem:[#allocation2 + $0x200] sm:$0xff] %vm282_vm0, %v218_v8  ;;  %v215_v5 = vld [vmem:[%s6281_s0 + $0x1e8] sm:$0xff]  ;;  %v234_v7 = vld [vmem:[%s6281_s0 + $0x280] sm:$0xff] }
  0x59   :  { %348 = vst.msk [vmem:[#allocation2 + $0x208] sm:$0xff] %vm282_vm0, %v219_v9  ;;  %329 = vst.msk [vmem:[#allocation2 + $0x170] sm:$0xff] %vm282_vm0, %v200_v20  ;;  %v235_v8 = vld [vmem:[%s6281_s0 + $0x288] sm:$0xff]  ;;  %v1399_v9 = vld [vmem:[%s6282_s3 + $0x20] sm:$0xff] }
  0x5a   :  { %330 = vst.msk [vmem:[#allocation2 + $0x178] sm:$0xff] %vm282_vm0, %v201_v21  ;;  %349 = vst.msk [vmem:[#allocation2 + $0x210] sm:$0xff] %vm282_vm0, %v220_v22  ;;  %3591 = vmatmul.mubr.f32.gmra.mrb[8].mxu0 %v420_v50  ;;  %v1400_v10 = vld [vmem:[%s6282_s3 + $0x28] sm:$0xff]  ;;  %v216_v11 = vld [vmem:[%s6281_s0 + $0x1f0] sm:$0xff] }
  0x5b   :  { %350 = vst.msk [vmem:[#allocation2 + $0x218] sm:$0xff] %vm282_vm0, %v221_v24  ;;  %331 = vst.msk [vmem:[#allocation2 + $0x180] sm:$0xff] %vm282_vm0, %v202_v25  ;;  %3593 = vmatprep.mubr.f32.mxu0 %v421_v52  ;;  %v217_v12 = vld [vmem:[%s6281_s0 + $0x1f8] sm:$0xff]  ;;  %v427_v18 = vld [vmem:[#allocation2 + $0x80] sm:$0xff] }
  0x5c   :  { %332 = vst.msk [vmem:[#allocation2 + $0x188] sm:$0xff] %vm282_vm0, %v203_v26  ;;  %351 = vst.msk [vmem:[#allocation2 + $0x220] sm:$0xff] %vm282_vm0, %v222_v27  ;;  %v426_v13 = vld [vmem:[#allocation2 + $0x78] sm:$0xff]  ;;  %v239_v20 = vld [vmem:[%s6281_s0 + $0x2a8] sm:$0xff] }
  0x5d   :  { %352 = vst.msk [vmem:[#allocation2 + $0x228] sm:$0xff] %vm282_vm0, %v223_v28  ;;  %333 = vst.msk [vmem:[#allocation2 + $0x190] sm:$0xff] %vm282_vm0, %v204_v29  ;;  %v240_v21 = vld [vmem:[%s6281_s0 + $0x2b0] sm:$0xff]  ;;  %v241_v22 = vld [vmem:[%s6281_s0 + $0x2b8] sm:$0xff] }
  0x5e   :  { %334 = vst.msk [vmem:[#allocation2 + $0x198] sm:$0xff] %vm282_vm0, %v205_v30  ;;  %353 = vst.msk [vmem:[#allocation2 + $0x230] sm:$0xff] %vm282_vm0, %v224_v31  ;;  %3594 = vmatmul.mubr.f32.gmra.mrb[10].mxu0 %v422_v57  ;;  %v242_v23 = vld [vmem:[%s6281_s0 + $0x2c0] sm:$0xff]  ;;  %v243_v24 = vld [vmem:[%s6281_s0 + $0x2c8] sm:$0xff] }
  0x5f   :  { %v475_v14 = vld [vmem:[#allocation2 + $0x200] sm:$0xff]  ;;  %354 = vst.msk [vmem:[#allocation2 + $0x238] sm:$0xff] %vm282_vm0, %v225_v32  ;;  %335 = vst.msk [vmem:[#allocation2 + $0x1a0] sm:$0xff] %vm282_vm0, %v206_v34  ;;  %3596 = vmatprep.mubr.f32.mxu0 %v423_v58  ;;  %v1401_v25 = vld [vmem:[%s6282_s3 + $0x30] sm:$0xff] }
  0x60   :  { %3674 = vmatprep.mubr.f32.mxu1 %v475_v14  ;;  %v476_v15 = vld [vmem:[#allocation2 + $0x208] sm:$0xff]  ;;  %336 = vst.msk [vmem:[#allocation2 + $0x1a8] sm:$0xff] %vm282_vm0, %v207_v35  ;;  %355 = vst.msk [vmem:[#allocation2 + $0x240] sm:$0xff] %vm282_vm0, %v226_v36  ;;  %v4258_v14 = vpack.c.bf16 %v1400_v10, %v1399_v9  ;;  %v1402_v26 = vld [vmem:[%s6282_s3 + $0x38] sm:$0xff] }
  0x61   :  { %3675 = vmatmul.mubr.f32.vlgmr.msra.gmra.mrb[0].mxu1 %v476_v15  ;;  %356 = vst.msk [vmem:[#allocation2 + $0x248] sm:$0xff] %vm282_vm0, %v227_v38  ;;  %337 = vst.msk [vmem:[#allocation2 + $0x1b0] sm:$0xff] %vm282_vm0, %v208_v42  ;;  %v477_v48 = vld [vmem:[#allocation2 + $0x210] sm:$0xff]  ;;  %v4262_v28 = vpack.c.bf16 %v1402_v26, %v1401_v25  ;;  %v428_v29 = vld [vmem:[#allocation2 + $0x88] sm:$0xff] }
  0x62   :  { %4253 = vmatpush3.bf16.msra.mxu1 %v4250_v19  ;;  %338 = vst.msk [vmem:[#allocation2 + $0x1b8] sm:$0xff] %vm282_vm0, %v209_v43  ;;  %357 = vst.msk [vmem:[#allocation2 + $0x250] sm:$0xff] %vm282_vm0, %v228_v44  ;;  %3677 = vmatprep.mubr.f32.mxu1 %v477_v48  ;;  %v478_v49 = vld [vmem:[#allocation2 + $0x218] sm:$0xff]  ;;  %v236_v15 = vld [vmem:[%s6281_s0 + $0x290] sm:$0xff] }
  0x63   :  { %4255 = vmatprep.subr.bf16.mxu1 %v4254_v41  ;;  %358 = vst.msk [vmem:[#allocation2 + $0x258] sm:$0xff] %vm282_vm0, %v229_v45  ;;  %339 = vst.msk [vmem:[#allocation2 + $0x1c0] sm:$0xff] %vm282_vm0, %v210_v46  ;;  %v479_v51 = vld [vmem:[#allocation2 + $0x220] sm:$0xff]  ;;  %3597 = vmatmul.mubr.f32.gmra.mrb[12].mxu0 %v424_v61  ;;  %v244_v30 = vld [vmem:[%s6281_s0 + $0x2d0] sm:$0xff] }
  0x64   :  { %340 = vst.msk [vmem:[#allocation2 + $0x1c8] sm:$0xff] %vm282_vm0, %v211_v47  ;;  %v480_v53 = vld [vmem:[#allocation2 + $0x228] sm:$0xff]  ;;  %359 = vst.msk [vmem:[#allocation2 + $0x260] sm:$0xff] %vm282_vm0, %v230_v55  ;;  %3599 = vmatprep.mubr.f32.mxu0 %v425_v1  ;;  %v429_v31 = vld [vmem:[#allocation2 + $0x90] sm:$0xff] }
  0x65   :  { %3678 = vmatmul.mubr.f32.gmra.mrb[2].mxu1 %v478_v49  ;;  %v481_v54 = vld [vmem:[#allocation2 + $0x230] sm:$0xff]  ;;  %360 = vst.msk [vmem:[#allocation2 + $0x268] sm:$0xff] %vm282_vm0, %v231_v56  ;;  %341 = vst.msk [vmem:[#allocation2 + $0x1d0] sm:$0xff] %vm282_vm0, %v212_v62  ;;  %v245_v33 = vld [vmem:[%s6281_s0 + $0x2d8] sm:$0xff] }
  0x66   :  { %3680 = vmatprep.mubr.f32.mxu1 %v479_v51  ;;  %4257 = vmatpush3.bf16.msra.mxu1 %v4254_v41  ;;  %v482_v59 = vld [vmem:[#allocation2 + $0x238] sm:$0xff]  ;;  %342 = vst.msk [vmem:[#allocation2 + $0x1d8] sm:$0xff] %vm282_vm0, %v213_v63  ;;  %361 = vst.msk [vmem:[#allocation2 + $0x270] sm:$0xff] %vm282_vm0, %v232_v0  ;;  %v246_v35 = vld [vmem:[%s6281_s0 + $0x2e0] sm:$0xff] }
  0x67   :  { %v483_v60 = vld [vmem:[#allocation2 + $0x240] sm:$0xff]  ;;  %362 = vst.msk [vmem:[#allocation2 + $0x278] sm:$0xff] %vm282_vm0, %v233_v3  ;;  %343 = vst.msk [vmem:[#allocation2 + $0x1e0] sm:$0xff] %vm282_vm0, %v214_v4  ;;  %4259 = vmatprep.subr.bf16.mxu1 %v4258_v14  ;;  %3600 = vmatmul.mubr.f32.gmra.mrb[14].mxu0 %v426_v13  ;;  %v247_v36 = vld [vmem:[%s6281_s0 + $0x2e8] sm:$0xff] }
  0x68   :  { %v484_v2 = vld [vmem:[#allocation2 + $0x248] sm:$0xff]  ;;  %344 = vst.msk [vmem:[#allocation2 + $0x1e8] sm:$0xff] %vm282_vm0, %v215_v5  ;;  %363 = vst.msk [vmem:[#allocation2 + $0x280] sm:$0xff] %vm282_vm0, %v234_v7  ;;  %3602 = vmatprep.mubr.f32.mxu0 %v427_v18  ;;  %v430_v37 = vld [vmem:[#allocation2 + $0x98] sm:$0xff] }
  0x69   :  { %3681 = vmatmul.mubr.f32.gmra.mrb[4].mxu1 %v480_v53  ;;  %v485_v6 = vld [vmem:[#allocation2 + $0x250] sm:$0xff]  ;;  %364 = vst.msk [vmem:[#allocation2 + $0x288] sm:$0xff] %vm282_vm0, %v235_v8  ;;  %345 = vst.msk [vmem:[#allocation2 + $0x1f0] sm:$0xff] %vm282_vm0, %v216_v11  ;;  %v431_v38 = vld [vmem:[#allocation2 + $0xa0] sm:$0xff] }
  0x6a   :  { %3683 = vmatprep.mubr.f32.mxu1 %v481_v54  ;;  %346 = vst.msk [vmem:[#allocation2 + $0x1f8] sm:$0xff] %vm282_vm0, %v217_v12  ;;  %v486_v19 = vld [vmem:[#allocation2 + $0x258] sm:$0xff]  ;;  %365 = vst.msk [vmem:[#allocation2 + $0x290] sm:$0xff] %vm282_vm0, %v236_v15  ;;  %4261 = vmatpush3.bf16.msra.mxu1 %v4258_v14  ;;  %v248_v41 = vld [vmem:[%s6281_s0 + $0x2f0] sm:$0xff] }
  0x6b   :  { %366 = vst.msk [vmem:[#allocation2 + $0x298] sm:$0xff] %vm282_vm0, %v237_v16  ;;  %367 = vst.msk [vmem:[#allocation2 + $0x2a0] sm:$0xff] %vm282_vm0, %v238_v17  ;;  %v487_v27 = vld [vmem:[#allocation2 + $0x260] sm:$0xff]  ;;  %4263 = vmatprep.subr.bf16.mxu1 %v4262_v28  ;;  %3603 = vmatmul.mubr.f32.gmra.mrb[16].mxu0 %v428_v29  ;;  %v249_v42 = vld [vmem:[%s6281_s0 + $0x2f8] sm:$0xff] }
  0x6c   :  { %368 = vst.msk [vmem:[#allocation2 + $0x2a8] sm:$0xff] %vm282_vm0, %v239_v20  ;;  %369 = vst.msk [vmem:[#allocation2 + $0x2b0] sm:$0xff] %vm282_vm0, %v240_v21  ;;  %v488_v32 = vld [vmem:[#allocation2 + $0x268] sm:$0xff]  ;;  %3605 = vmatprep.mubr.f32.mxu0 %v429_v31  ;;  %v250_v44 = vld [vmem:[%s6281_s0 + $0x300] sm:$0xff] }
  0x6d   :  { %3684 = vmatmul.mubr.f32.gmra.mrb[6].mxu1 %v482_v59  ;;  %370 = vst.msk [vmem:[#allocation2 + $0x2b8] sm:$0xff] %vm282_vm0, %v241_v22  ;;  %371 = vst.msk [vmem:[#allocation2 + $0x2c0] sm:$0xff] %vm282_vm0, %v242_v23  ;;  %v489_v34 = vld [vmem:[#allocation2 + $0x270] sm:$0xff]  ;;  %v432_v43 = vld [vmem:[#allocation2 + $0xa8] sm:$0xff] }
  0x6e   :  { %3686 = vmatprep.mubr.f32.mxu1 %v483_v60  ;;  %372 = vst.msk [vmem:[#allocation2 + $0x2c8] sm:$0xff] %vm282_vm0, %v243_v24  ;;  %373 = vst.msk [vmem:[#allocation2 + $0x2d0] sm:$0xff] %vm282_vm0, %v244_v30  ;;  %4265 = vmatpush3.bf16.msra.mxu1 %v4262_v28  ;;  %v490_v39 = vld [vmem:[#allocation2 + $0x278] sm:$0xff]  ;;  %v251_v45 = vld [vmem:[%s6281_s0 + $0x308] sm:$0xff] }
  0x6f   :  { %374 = vst.msk [vmem:[#allocation2 + $0x2d8] sm:$0xff] %vm282_vm0, %v245_v33  ;;  %375 = vst.msk [vmem:[#allocation2 + $0x2e0] sm:$0xff] %vm282_vm0, %v246_v35  ;;  %v491_v40 = vld [vmem:[#allocation2 + $0x280] sm:$0xff]  ;;  %3606 = vmatmul.mubr.f32.gmra.mrb[18].mxu0 %v430_v37  ;;  %v433_v47 = vld [vmem:[#allocation2 + $0xb0] sm:$0xff] }
  0x70   :  { %376 = vst.msk [vmem:[#allocation2 + $0x2e8] sm:$0xff] %vm282_vm0, %v247_v36  ;;  %377 = vst.msk [vmem:[#allocation2 + $0x2f0] sm:$0xff] %vm282_vm0, %v248_v41  ;;  %v1403_v46 = vld [vmem:[%s6282_s3 + $0x40] sm:$0xff]  ;;  %v1404_v48 = vld [vmem:[%s6282_s3 + $0x48] sm:$0xff]  ;;  %3608 = vmatprep.mubr.f32.mxu0 %v431_v38 }
  0x71   :  { %3687 = vmatmul.mubr.f32.gmra.mrb[8].mxu1 %v484_v2  ;;  %378 = vst.msk [vmem:[#allocation2 + $0x2f8] sm:$0xff] %vm282_vm0, %v249_v42  ;;  %379 = vst.msk [vmem:[#allocation2 + $0x300] sm:$0xff] %vm282_vm0, %v250_v44  ;;  %v252_v49 = vld [vmem:[%s6281_s0 + $0x310] sm:$0xff]  ;;  %v253_v50 = vld [vmem:[%s6281_s0 + $0x318] sm:$0xff]  ;;  %v4266_v52 = vpack.c.bf16 %v1404_v48, %v1403_v46 }
  0x72   :  { %3689 = vmatprep.mubr.f32.mxu1 %v485_v6  ;;  %380 = vst.msk [vmem:[#allocation2 + $0x308] sm:$0xff] %vm282_vm0, %v251_v45  ;;  %v492_v51 = vld [vmem:[#allocation2 + $0x288] sm:$0xff]  ;;  %381 = vst.msk [vmem:[#allocation2 + $0x310] sm:$0xff] %vm282_vm0, %v252_v49  ;;  %v254_v53 = vld [vmem:[%s6281_s0 + $0x320] sm:$0xff] }
  0x73   :  { %382 = vst.msk [vmem:[#allocation2 + $0x318] sm:$0xff] %vm282_vm0, %v253_v50  ;;  %v255_v54 = vld [vmem:[%s6281_s0 + $0x328] sm:$0xff]  ;;  %v493_v55 = vld [vmem:[#allocation2 + $0x290] sm:$0xff]  ;;  %383 = vst.msk [vmem:[#allocation2 + $0x320] sm:$0xff] %vm282_vm0, %v254_v53  ;;  %4267 = vmatprep.subr.bf16.mxu1 %v4266_v52  ;;  %3609 = vmatmul.mubr.f32.gmra.mrb[20].mxu0 %v432_v43 }
  0x74   :  { %384 = vst.msk [vmem:[#allocation2 + $0x328] sm:$0xff] %vm282_vm0, %v255_v54  ;;  %v256_v56 = vld [vmem:[%s6281_s0 + $0x330] sm:$0xff]  ;;  %v257_v57 = vld [vmem:[%s6281_s0 + $0x338] sm:$0xff]  ;;  %v258_v58 = vld [vmem:[%s6281_s0 + $0x340] sm:$0xff]  ;;  %4269 = vmatpush3.bf16.msra.mxu1 %v4266_v52  ;;  %3611 = vmatprep.mubr.f32.mxu0 %v433_v47 }
  0x75   :  { %3690 = vmatmul.mubr.f32.gmra.mrb[10].mxu1 %v486_v19  ;;  %385 = vst.msk [vmem:[#allocation2 + $0x330] sm:$0xff] %vm282_vm0, %v256_v56  ;;  %386 = vst.msk [vmem:[#allocation2 + $0x338] sm:$0xff] %vm282_vm0, %v257_v57  ;;  %v259_v59 = vld [vmem:[%s6281_s0 + $0x348] sm:$0xff]  ;;  %v1405_v60 = vld [vmem:[%s6282_s3 + $0x50] sm:$0xff] }
  0x76   :  { %3692 = vmatprep.mubr.f32.mxu1 %v487_v27  ;;  %v434_v61 = vld [vmem:[#allocation2 + $0xb8] sm:$0xff]  ;;  %387 = vst.msk [vmem:[#allocation2 + $0x340] sm:$0xff] %vm282_vm0, %v258_v58  ;;  %388 = vst.msk [vmem:[#allocation2 + $0x348] sm:$0xff] %vm282_vm0, %v259_v59  ;;  %v260_v0 = vld [vmem:[%s6281_s0 + $0x350] sm:$0xff] }
  0x77   :  { %v1406_v62 = vld [vmem:[%s6282_s3 + $0x58] sm:$0xff]  ;;  %v262_v2 = vld [vmem:[%s6281_s0 + $0x360] sm:$0xff]  ;;  %389 = vst.msk [vmem:[#allocation2 + $0x350] sm:$0xff] %vm282_vm0, %v260_v0  ;;  %v263_v5 = vld [vmem:[%s6281_s0 + $0x368] sm:$0xff]  ;;  %3612 = vmatmul.mubr.f32.gmra.mrb[22].mxu0 %v434_v61 }
  0x78   :  { %v4270_v63 = vpack.c.bf16 %v1406_v62, %v1405_v60  ;;  %v261_v1 = vld [vmem:[%s6281_s0 + $0x358] sm:$0xff]  ;;  %v435_v3 = vld [vmem:[#allocation2 + $0xc0] sm:$0xff]  ;;  %391 = vst.msk [vmem:[#allocation2 + $0x360] sm:$0xff] %vm282_vm0, %v262_v2  ;;  %392 = vst.msk [vmem:[#allocation2 + $0x368] sm:$0xff] %vm282_vm0, %v263_v5 }
  0x79   :  { %3693 = vmatmul.mubr.f32.gmra.mrb[12].mxu1 %v488_v32  ;;  %v494_v4 = vld [vmem:[#allocation2 + $0x298] sm:$0xff]  ;;  %390 = vst.msk [vmem:[#allocation2 + $0x358] sm:$0xff] %vm282_vm0, %v261_v1  ;;  %v495_v6 = vld [vmem:[#allocation2 + $0x2a0] sm:$0xff]  ;;  %v264_v7 = vld [vmem:[%s6281_s0 + $0x370] sm:$0xff]  ;;  %3614 = vmatprep.mubr.f32.mxu0 %v435_v3 }
  0x7a   :  { %3695 = vmatprep.mubr.f32.mxu1 %v489_v34  ;;  %4271 = vmatprep.subr.bf16.mxu1 %v4270_v63  ;;  %393 = vst.msk [vmem:[#allocation2 + $0x370] sm:$0xff] %vm282_vm0, %v264_v7  ;;  %v265_v8 = vld [vmem:[%s6281_s0 + $0x378] sm:$0xff]  ;;  %v436_v9 = vld [vmem:[#allocation2 + $0xc8] sm:$0xff]  ;;  %v266_v10 = vld [vmem:[%s6281_s0 + $0x380] sm:$0xff] }
  0x7b   :  { %4273 = vmatpush3.bf16.msra.mxu1 %v4270_v63  ;;  %394 = vst.msk [vmem:[#allocation2 + $0x378] sm:$0xff] %vm282_vm0, %v265_v8  ;;  %v437_v11 = vld [vmem:[#allocation2 + $0xd0] sm:$0xff]  ;;  %v496_v12 = vld [vmem:[#allocation2 + $0x2a8] sm:$0xff]  ;;  %395 = vst.msk [vmem:[#allocation2 + $0x380] sm:$0xff] %vm282_vm0, %v266_v10  ;;  %3615 = vmatmul.mubr.f32.gmra.mrb[24].mxu0 %v436_v9 }
  0x7c   :  { %v267_v13 = vld [vmem:[%s6281_s0 + $0x388] sm:$0xff]  ;;  %v497_v14 = vld [vmem:[#allocation2 + $0x2b0] sm:$0xff]  ;;  %v1407_v15 = vld [vmem:[%s6282_s3 + $0x60] sm:$0xff]  ;;  %3617 = vmatprep.mubr.f32.mxu0 %v437_v11 }
  0x7d   :  { %3696 = vmatmul.mubr.f32.gmra.mrb[14].mxu1 %v490_v39  ;;  %396 = vst.msk [vmem:[#allocation2 + $0x388] sm:$0xff] %vm282_vm0, %v267_v13  ;;  %v1408_v16 = vld [vmem:[%s6282_s3 + $0x68] sm:$0xff]  ;;  %v268_v17 = vld [vmem:[%s6281_s0 + $0x390] sm:$0xff]  ;;  %v269_v18 = vld [vmem:[%s6281_s0 + $0x398] sm:$0xff] }
  0x7e   :  { %3698 = vmatprep.mubr.f32.mxu1 %v491_v40  ;;  %v438_v19 = vld [vmem:[#allocation2 + $0xd8] sm:$0xff]  ;;  %v439_v20 = vld [vmem:[#allocation2 + $0xe0] sm:$0xff]  ;;  %v4274_v21 = vpack.c.bf16 %v1408_v16, %v1407_v15  ;;  %397 = vst.msk [vmem:[#allocation2 + $0x390] sm:$0xff] %vm282_vm0, %v268_v17  ;;  %398 = vst.msk [vmem:[#allocation2 + $0x398] sm:$0xff] %vm282_vm0, %v269_v18 }
  0x7f   :  { %v498_v22 = vld [vmem:[#allocation2 + $0x2b8] sm:$0xff]  ;;  %v270_v23 = vld [vmem:[%s6281_s0 + $0x3a0] sm:$0xff]  ;;  %v271_v24 = vld [vmem:[%s6281_s0 + $0x3a8] sm:$0xff]  ;;  %3618 = vmatmul.mubr.f32.gmra.mrb[26].mxu0 %v438_v19 }
  0x80   :  { %v499_v25 = vld [vmem:[#allocation2 + $0x2c0] sm:$0xff]  ;;  %4275 = vmatprep.subr.bf16.mxu1 %v4274_v21  ;;  %399 = vst.msk [vmem:[#allocation2 + $0x3a0] sm:$0xff] %vm282_vm0, %v270_v23  ;;  %400 = vst.msk [vmem:[#allocation2 + $0x3a8] sm:$0xff] %vm282_vm0, %v271_v24  ;;  %v272_v26 = vld [vmem:[%s6281_s0 + $0x3b0] sm:$0xff]  ;;  %3620 = vmatprep.mubr.f32.mxu0 %v439_v20 }
  0x81   :  { %3699 = vmatmul.mubr.f32.gmra.mrb[16].mxu1 %v492_v51  ;;  %v273_v27 = vld [vmem:[%s6281_s0 + $0x3b8] sm:$0xff]  ;;  %v440_v28 = vld [vmem:[#allocation2 + $0xe8] sm:$0xff]  ;;  %401 = vst.msk [vmem:[#allocation2 + $0x3b0] sm:$0xff] %vm282_vm0, %v272_v26  ;;  %v274_v29 = vld [vmem:[%s6281_s0 + $0x3c0] sm:$0xff] }
  0x82   :  { %3701 = vmatprep.mubr.f32.mxu1 %v493_v55  ;;  %4277 = vmatpush3.bf16.msra.mxu1 %v4274_v21  ;;  %402 = vst.msk [vmem:[#allocation2 + $0x3b8] sm:$0xff] %vm282_vm0, %v273_v27  ;;  %v275_v30 = vld [vmem:[%s6281_s0 + $0x3c8] sm:$0xff]  ;;  %v441_v31 = vld [vmem:[#allocation2 + $0xf0] sm:$0xff]  ;;  %403 = vst.msk [vmem:[#allocation2 + $0x3c0] sm:$0xff] %vm282_vm0, %v274_v29 }
  0x83   :  { %404 = vst.msk [vmem:[#allocation2 + $0x3c8] sm:$0xff] %vm282_vm0, %v275_v30  ;;  %v1409_v32 = vld [vmem:[%s6282_s3 + $0x70] sm:$0xff]  ;;  %v1410_v33 = vld [vmem:[%s6282_s3 + $0x78] sm:$0xff]  ;;  %v500_v34 = vld [vmem:[#allocation2 + $0x2c8] sm:$0xff]  ;;  %3621 = vmatmul.mubr.f32.gmra.mrb[28].mxu0 %v440_v28 }
  0x84   :  { %v4278_v35 = vpack.c.bf16 %v1410_v33, %v1409_v32  ;;  %v276_v36 = vld [vmem:[%s6281_s0 + $0x3d0] sm:$0xff]  ;;  %v277_v37 = vld [vmem:[%s6281_s0 + $0x3d8] sm:$0xff]  ;;  %v278_v39 = vld [vmem:[%s6281_s0 + $0x3e0] sm:$0xff]  ;;  %3623 = vmatprep.mubr.f32.mxu0 %v441_v31 }
  0x85   :  { %3702 = vmatmul.mubr.f32.gmra.mrb[18].mxu1 %v494_v4  ;;  %v501_v38 = vld [vmem:[#allocation2 + $0x2d0] sm:$0xff]  ;;  %405 = vst.msk [vmem:[#allocation2 + $0x3d0] sm:$0xff] %vm282_vm0, %v276_v36  ;;  %406 = vst.msk [vmem:[#allocation2 + $0x3d8] sm:$0xff] %vm282_vm0, %v277_v37  ;;  %v279_v40 = vld [vmem:[%s6281_s0 + $0x3e8] sm:$0xff] }
  0x86   :  { %3704 = vmatprep.mubr.f32.mxu1 %v495_v6  ;;  %4279 = vmatprep.subr.bf16.mxu1 %v4278_v35  ;;  %407 = vst.msk [vmem:[#allocation2 + $0x3e0] sm:$0xff] %vm282_vm0, %v278_v39  ;;  %408 = vst.msk [vmem:[#allocation2 + $0x3e8] sm:$0xff] %vm282_vm0, %v279_v40  ;;  %v442_v41 = vld [vmem:[#allocation2 + $0xf8] sm:$0xff]  ;;  %v443_v42 = vld [vmem:[#allocation2 + $0x100] sm:$0xff] }
  0x87   :  { %v502_v43 = vld [vmem:[#allocation2 + $0x2d8] sm:$0xff]  ;;  %4281 = vmatpush3.bf16.msra.mxu1 %v4278_v35  ;;  %v503_v44 = vld [vmem:[#allocation2 + $0x2e0] sm:$0xff]  ;;  %3624 = vmatmul.mubr.f32.gmra.mrb[30].mxu0 %v442_v41  ;;  %v444_v45 = vld [vmem:[#allocation2 + $0x108] sm:$0xff] }
  0x88   :  { %3626 = vmatprep.mubr.f32.mxu0 %v443_v42  ;;  %v445_v46 = vld [vmem:[#allocation2 + $0x110] sm:$0xff]  ;;  %v504_v47 = vld [vmem:[#allocation2 + $0x2e8] sm:$0xff]  ;;  %v446_v49 = vld [vmem:[#allocation2 + $0x118] sm:$0xff] }
  0x89   :  { %3705 = vmatmul.mubr.f32.gmra.mrb[20].mxu1 %v496_v12  ;;  %v505_v48 = vld [vmem:[#allocation2 + $0x2f0] sm:$0xff]  ;;  %v447_v50 = vld [vmem:[#allocation2 + $0x120] sm:$0xff]  ;;  %v506_v51 = vld [vmem:[#allocation2 + $0x2f8] sm:$0xff] }
  0x8a   :  { %3707 = vmatprep.mubr.f32.mxu1 %v497_v14  ;;  %v507_v52 = vld [vmem:[#allocation2 + $0x300] sm:$0xff]  ;;  %v448_v53 = vld [vmem:[#allocation2 + $0x128] sm:$0xff]  ;;  %v449_v54 = vld [vmem:[#allocation2 + $0x130] sm:$0xff] }
  0x8b   :  { %3627 = vmatmul.mubr.f32.gmra.mrb[32].mxu0 %v444_v45  ;;  %v508_v55 = vld [vmem:[#allocation2 + $0x308] sm:$0xff]  ;;  %v509_v56 = vld [vmem:[#allocation2 + $0x310] sm:$0xff]  ;;  %v450_v57 = vld [vmem:[#allocation2 + $0x138] sm:$0xff] }
  0x8c   :  { %3629 = vmatprep.mubr.f32.mxu0 %v445_v46  ;;  %v451_v58 = vld [vmem:[#allocation2 + $0x140] sm:$0xff]  ;;  %v510_v59 = vld [vmem:[#allocation2 + $0x318] sm:$0xff]  ;;  %v280_v61 = vld [vmem:[%s6281_s0 + $0x3f0] sm:$0xff] }
  0x8d   :  { %3708 = vmatmul.mubr.f32.gmra.mrb[22].mxu1 %v498_v22  ;;  %v511_v60 = vld [vmem:[#allocation2 + $0x320] sm:$0xff]  ;;  %409 = vst.msk [vmem:[#allocation2 + $0x3f0] sm:$0xff] %vm282_vm0, %v280_v61  ;;  %v281_v62 = vld [vmem:[%s6281_s0 + $0x3f8] sm:$0xff]  ;;  %v452_v63 = vld [vmem:[#allocation2 + $0x148] sm:$0xff] }
  0x8e   :  { %3710 = vmatprep.mubr.f32.mxu1 %v499_v25  ;;  %410 = vst.msk [vmem:[#allocation2 + $0x3f8] sm:$0xff] %vm282_vm0, %v281_v62  ;;  %v453_v0 = vld [vmem:[#allocation2 + $0x150] sm:$0xff]  ;;  %v512_v1 = vld [vmem:[#allocation2 + $0x328] sm:$0xff]  ;;  %v454_v3 = vld [vmem:[#allocation2 + $0x158] sm:$0xff] }
  0x8f   :  { %3630 = vmatmul.mubr.f32.gmra.mrb[34].mxu0 %v446_v49  ;;  %v513_v2 = vld [vmem:[#allocation2 + $0x330] sm:$0xff]  ;;  %v455_v4 = vld [vmem:[#allocation2 + $0x160] sm:$0xff]  ;;  %v514_v5 = vld [vmem:[#allocation2 + $0x338] sm:$0xff] }
  0x90   :  { %3632 = vmatprep.mubr.f32.mxu0 %v447_v50  ;;  %v515_v6 = vld [vmem:[#allocation2 + $0x340] sm:$0xff]  ;;  %v456_v7 = vld [vmem:[#allocation2 + $0x168] sm:$0xff]  ;;  %v457_v8 = vld [vmem:[#allocation2 + $0x170] sm:$0xff] }
  0x91   :  { %3711 = vmatmul.mubr.f32.gmra.mrb[24].mxu1 %v500_v34  ;;  %v516_v9 = vld [vmem:[#allocation2 + $0x348] sm:$0xff]  ;;  %v517_v10 = vld [vmem:[#allocation2 + $0x350] sm:$0xff]  ;;  %v458_v11 = vld [vmem:[#allocation2 + $0x178] sm:$0xff] }
  0x92   :  { %3713 = vmatprep.mubr.f32.mxu1 %v501_v38  ;;  %v459_v12 = vld [vmem:[#allocation2 + $0x180] sm:$0xff]  ;;  %v518_v13 = vld [vmem:[#allocation2 + $0x358] sm:$0xff]  ;;  %v460_v15 = vld [vmem:[#allocation2 + $0x188] sm:$0xff] }
  0x93   :  { %3633 = vmatmul.mubr.f32.gmra.mrb[36].mxu0 %v448_v53  ;;  %v519_v14 = vld [vmem:[#allocation2 + $0x360] sm:$0xff]  ;;  %v461_v16 = vld [vmem:[#allocation2 + $0x190] sm:$0xff]  ;;  %v520_v17 = vld [vmem:[#allocation2 + $0x368] sm:$0xff] }
  0x94   :  { %3635 = vmatprep.mubr.f32.mxu0 %v449_v54  ;;  %v521_v18 = vld [vmem:[#allocation2 + $0x370] sm:$0xff]  ;;  %v462_v19 = vld [vmem:[#allocation2 + $0x198] sm:$0xff]  ;;  %v463_v20 = vld [vmem:[#allocation2 + $0x1a0] sm:$0xff] }
  0x95   :  { %3714 = vmatmul.mubr.f32.gmra.mrb[26].mxu1 %v502_v43  ;;  %v522_v21 = vld [vmem:[#allocation2 + $0x378] sm:$0xff]  ;;  %v523_v22 = vld [vmem:[#allocation2 + $0x380] sm:$0xff]  ;;  %v464_v23 = vld [vmem:[#allocation2 + $0x1a8] sm:$0xff] }
  0x96   :  { %3716 = vmatprep.mubr.f32.mxu1 %v503_v44  ;;  %v465_v24 = vld [vmem:[#allocation2 + $0x1b0] sm:$0xff]  ;;  %v524_v25 = vld [vmem:[#allocation2 + $0x388] sm:$0xff]  ;;  %v466_v27 = vld [vmem:[#allocation2 + $0x1b8] sm:$0xff] }
  0x97   :  { %3636 = vmatmul.mubr.f32.gmra.mrb[38].mxu0 %v450_v57  ;;  %v525_v26 = vld [vmem:[#allocation2 + $0x390] sm:$0xff]  ;;  %v467_v28 = vld [vmem:[#allocation2 + $0x1c0] sm:$0xff]  ;;  %v526_v29 = vld [vmem:[#allocation2 + $0x398] sm:$0xff] }
  0x98   :  { %3638 = vmatprep.mubr.f32.mxu0 %v451_v58  ;;  %v527_v30 = vld [vmem:[#allocation2 + $0x3a0] sm:$0xff]  ;;  %v468_v31 = vld [vmem:[#allocation2 + $0x1c8] sm:$0xff]  ;;  %v469_v32 = vld [vmem:[#allocation2 + $0x1d0] sm:$0xff] }
  0x99   :  { %3717 = vmatmul.mubr.f32.gmra.mrb[28].mxu1 %v504_v47  ;;  %v528_v33 = vld [vmem:[#allocation2 + $0x3a8] sm:$0xff]  ;;  %v529_v34 = vld [vmem:[#allocation2 + $0x3b0] sm:$0xff]  ;;  %v470_v35 = vld [vmem:[#allocation2 + $0x1d8] sm:$0xff] }
  0x9a   :  { %3719 = vmatprep.mubr.f32.mxu1 %v505_v48  ;;  %v471_v36 = vld [vmem:[#allocation2 + $0x1e0] sm:$0xff]  ;;  %v530_v37 = vld [vmem:[#allocation2 + $0x3b8] sm:$0xff]  ;;  %v472_v39 = vld [vmem:[#allocation2 + $0x1e8] sm:$0xff] }
  0x9b   :  { %3639 = vmatmul.mubr.f32.gmra.mrb[40].mxu0 %v452_v63  ;;  %v531_v38 = vld [vmem:[#allocation2 + $0x3c0] sm:$0xff]  ;;  %v473_v40 = vld [vmem:[#allocation2 + $0x1f0] sm:$0xff]  ;;  %v532_v41 = vld [vmem:[#allocation2 + $0x3c8] sm:$0xff] }
  0x9c   :  { %3641 = vmatprep.mubr.f32.mxu0 %v453_v0  ;;  %v533_v42 = vld [vmem:[#allocation2 + $0x3d0] sm:$0xff]  ;;  %v474_v43 = vld [vmem:[#allocation2 + $0x1f8] sm:$0xff]  ;;  %v535_v45 = vld [vmem:[#allocation2 + $0x3e0] sm:$0xff] }
  0x9d   :  { %3720 = vmatmul.mubr.f32.gmra.mrb[30].mxu1 %v506_v51  ;;  %v534_v44 = vld [vmem:[#allocation2 + $0x3d8] sm:$0xff]  ;;  %v536_v46 = vld [vmem:[#allocation2 + $0x3e8] sm:$0xff]  ;;  %v537_v47 = vld [vmem:[#allocation2 + $0x3f0] sm:$0xff] }
  0x9e   :  { %3722 = vmatprep.mubr.f32.mxu1 %v507_v52  ;;  %v538_v48 = vld [vmem:[#allocation2 + $0x3f8] sm:$0xff]  ;;  %v2251_v49 = vld [vmem:[%s6283_s5] sm:$0xff]  ;;  %v2252_v50 = vld [vmem:[%s6283_s5 + $0x8] sm:$0xff] }
  0x9f   :  { %3642 = vmatmul.mubr.f32.gmra.mrb[42].mxu0 %v454_v3  ;;  %v4282_v51 = vpack.c.bf16 %v2252_v50, %v2251_v49  ;;  %v2253_v52 = vld [vmem:[%s6283_s5 + $0x10] sm:$0xff]  ;;  %v2254_v53 = vld [vmem:[%s6283_s5 + $0x18] sm:$0xff]  ;;  %v2255_v57 = vld [vmem:[%s6283_s5 + $0x20] sm:$0xff] }
  0xa0   :  { %3644 = vmatprep.mubr.f32.mxu0 %v455_v4  ;;  %v4286_v54 = vpack.c.bf16 %v2254_v53, %v2253_v52  ;;  %v2256_v58 = vld [vmem:[%s6283_s5 + $0x28] sm:$0xff] }
  0xa1   :  { %3723 = vmatmul.mubr.f32.gmra.mrb[32].mxu1 %v508_v55  ;;  %4283 = vmatprep.subr.bf16.mxu0 %v4282_v51  ;;  %v5134_v55 = vld [vmem:[%s6284_s2] ss:$0 sm:$0xff]  ;;  %v4290_v61 = vpack.c.bf16 %v2256_v58, %v2255_v57 }
  0xa2   :  { %3725 = vmatprep.mubr.f32.mxu1 %v509_v56  ;;  %4285 = vmatpush3.bf16.msra.mxu0 %v4282_v51 }
  0xa3   :  { %3645 = vmatmul.mubr.f32.gmra.mrb[44].mxu0 %v456_v7  ;;  %4287 = vmatprep.subr.bf16.mxu0 %v4286_v54 }
  0xa4   :  { %3647 = vmatprep.mubr.f32.mxu0 %v457_v8 }
  0xa5   :  { %3726 = vmatmul.mubr.f32.gmra.mrb[34].mxu1 %v510_v59 }
  0xa6   :  { %3728 = vmatprep.mubr.f32.mxu1 %v511_v60  ;;  %4289 = vmatpush3.bf16.msra.mxu0 %v4286_v54 }
  0xa7   :  { %3648 = vmatmul.mubr.f32.gmra.mrb[46].mxu0 %v458_v11  ;;  %4291 = vmatprep.subr.bf16.mxu0 %v4290_v61 }
  0xa8   :  { %3650 = vmatprep.mubr.f32.mxu0 %v459_v12 }
  0xa9   :  { %3729 = vmatmul.mubr.f32.gmra.mrb[36].mxu1 %v512_v1 }
  0xaa   :  { %3731 = vmatprep.mubr.f32.mxu1 %v513_v2  ;;  %4293 = vmatpush3.bf16.msra.mxu0 %v4290_v61 }
  0xab   :  { %3651 = vmatmul.mubr.f32.gmra.mrb[48].mxu0 %v460_v15 }
  0xac   :  { %3653 = vmatprep.mubr.f32.mxu0 %v461_v16 }
  0xad   :  { %3732 = vmatmul.mubr.f32.gmra.mrb[38].mxu1 %v514_v5 }
  0xae   :  { %3734 = vmatprep.mubr.f32.mxu1 %v515_v6 }
  0xaf   :  { %3654 = vmatmul.mubr.f32.gmra.mrb[50].mxu0 %v462_v19 }
  0xb0   :  { %3656 = vmatprep.mubr.f32.mxu0 %v463_v20 }
  0xb1   :  { %3735 = vmatmul.mubr.f32.gmra.mrb[40].mxu1 %v516_v9 }
  0xb2   :  { %3737 = vmatprep.mubr.f32.mxu1 %v517_v10 }
  0xb3   :  { %3657 = vmatmul.mubr.f32.gmra.mrb[52].mxu0 %v464_v23  ;;  %v2257_v23 = vld [vmem:[%s6283_s5 + $0x30] sm:$0xff] }
  0xb4   :  { %3659 = vmatprep.mubr.f32.mxu0 %v465_v24  ;;  %v2258_v24 = vld [vmem:[%s6283_s5 + $0x38] sm:$0xff] }
  0xb5   :  { %3738 = vmatmul.mubr.f32.gmra.mrb[42].mxu1 %v518_v13 }
  0xb6   :  { %3740 = vmatprep.mubr.f32.mxu1 %v519_v14 }
  0xb7   :  { %3660 = vmatmul.mubr.f32.gmra.mrb[54].mxu0 %v466_v27 }
  0xb8   :  { %3662 = vmatprep.mubr.f32.mxu0 %v467_v28 }
  0xb9   :  { %3741 = vmatmul.mubr.f32.gmra.mrb[44].mxu1 %v520_v17 }
  0xba   :  { %3743 = vmatprep.mubr.f32.mxu1 %v521_v18 }
  0xbb   :  { %3663 = vmatmul.mubr.f32.gmra.mrb[56].mxu0 %v468_v31 }
  0xbc   :  { %3665 = vmatprep.mubr.f32.mxu0 %v469_v32 }
  0xbd   :  { %3744 = vmatmul.mubr.f32.gmra.mrb[46].mxu1 %v522_v21 }
  0xbe   :  { %3746 = vmatprep.mubr.f32.mxu1 %v523_v22 }
  0xbf   :  { %3666 = vmatmul.mubr.f32.gmra.mrb[58].mxu0 %v470_v35 }
  0xc0   :  { %3668 = vmatprep.mubr.f32.mxu0 %v471_v36 }
  0xc1   :  { %3747 = vmatmul.mubr.f32.gmra.mrb[48].mxu1 %v524_v25 }
  0xc2   :  { %3749 = vmatprep.mubr.f32.mxu1 %v525_v26 }
  0xc3   :  { %3669 = vmatmul.mubr.f32.gmra.mrb[60].mxu0 %v472_v39 }
  0xc4   :  { %3671 = vmatprep.mubr.f32.mxu0 %v473_v40 }
  0xc5   :  { %3750 = vmatmul.mubr.f32.gmra.mrb[50].mxu1 %v526_v29  ;;  %v4294_v29 = vpack.c.bf16 %v2258_v24, %v2257_v23 }
  0xc6   :  { %3752 = vmatprep.mubr.f32.mxu1 %v527_v30 }
  0xc7   :  { %3672 = vmatmul.mubr.f32.gmra.mrb[62].mxu0 %v474_v43  ;;  %4295 = vmatprep.subr.bf16.mxu0 %v4294_v29 }
  0xc8   :  { %4297 = vmatpush3.bf16.msra.mxu0 %v4294_v29 }
  0xc9   :  { %3753 = vmatmul.mubr.f32.gmra.mrb[52].mxu1 %v528_v33 }
  0xca   :  { %3755 = vmatprep.mubr.f32.mxu1 %v529_v34 }
  0xcd   :  { %3756 = vmatmul.mubr.f32.gmra.mrb[54].mxu1 %v530_v37 }
  0xce   :  { %3758 = vmatprep.mubr.f32.mxu1 %v531_v38 }
  0xd1   :  { %3759 = vmatmul.mubr.f32.gmra.mrb[56].mxu1 %v532_v41 }
  0xd2   :  { %3761 = vmatprep.mubr.f32.mxu1 %v533_v42 }
  0xd5   :  { %3762 = vmatmul.mubr.f32.gmra.mrb[58].mxu1 %v534_v44 }
  0xd6   :  { %3764 = vmatprep.mubr.f32.mxu1 %v535_v45 }
  0xd9   :  { %3765 = vmatmul.mubr.f32.gmra.mrb[60].mxu1 %v536_v46 }
  0xda   :  { %3767 = vmatprep.mubr.f32.mxu1 %v537_v47 }
  0xdd   :  { %3768 = vmatmul.mubr.f32.gmra.mrb[62].mxu1 %v538_v48 }
 0x11d   :  { %v3580_v56 = vpop.f32.mrb[0].mxu0 }
 0x11e   :  { %v634_v59 = vadd.f32 %v3580_v56, %v5134_v55  ;;  %v628_v60 = vpop.f32.mrb[1].mxu0 }
 0x11f   :  { %v629_v62 = vadd.f32 %v5134_v55, %v628_v60  ;;  %v2260_v60 = vld [vmem:[%s6283_s5 + $0x48] sm:$0xff] }
 0x120   :  { %v1268_v3 = vmax.f32 %v634_v59, 0.0  ;;  %v2259_v59 = vld [vmem:[%s6283_s5 + $0x40] sm:$0xff] }
 0x121   :  { %v1267_v0 = vmax.f32 %v629_v62, 0.0  ;;  %v3583_v1 = vpop.f32.mrb[2].mxu0 }
 0x122   :  { %v644_v4 = vadd.f32 %v3583_v1, %v5134_v55  ;;  %v638_v5 = vpop.f32.mrb[3].mxu0 }
 0x123   :  { %v639_v6 = vadd.f32 %v5134_v55, %v638_v5  ;;  %3802 = vmatprep.mubr.f32.mxu1 %v1267_v0 }
 0x124   :  { %3803 = vmatmul.mubr.f32.vlgmr.msra.gmra.mrb[64].mxu1 %v1268_v3  ;;  %v1270_v9 = vmax.f32 %v644_v4, 0.0  ;;  %v4298_v3 = vpack.c.bf16 %v2260_v60, %v2259_v59 }
 0x125   :  { %v1269_v7 = vmax.f32 %v639_v6, 0.0  ;;  %v3586_v8 = vpop.f32.mrb[4].mxu0 }
 0x126   :  { %v654_v10 = vadd.f32 %v3586_v8, %v5134_v55  ;;  %v648_v11 = vpop.f32.mrb[5].mxu0  ;;  %4299 = vmatprep.subr.bf16.mxu0 %v4298_v3 }
 0x127   :  { %v649_v12 = vadd.f32 %v5134_v55, %v648_v11  ;;  %3805 = vmatprep.mubr.f32.mxu1 %v1269_v7  ;;  %4301 = vmatpush3.bf16.msra.mxu0 %v4298_v3 }
 0x128   :  { %3806 = vmatmul.mubr.f32.gmra.mrb[66].mxu1 %v1270_v9  ;;  %v1272_v15 = vmax.f32 %v654_v10, 0.0 }
 0x129   :  { %v1271_v13 = vmax.f32 %v649_v12, 0.0  ;;  %v3589_v14 = vpop.f32.mrb[6].mxu0 }
 0x12a   :  { %v664_v16 = vadd.f32 %v3589_v14, %v5134_v55  ;;  %v658_v17 = vpop.f32.mrb[7].mxu0 }
 0x12b   :  { %v659_v19 = vadd.f32 %v5134_v55, %v658_v17  ;;  %3808 = vmatprep.mubr.f32.mxu1 %v1271_v13 }
 0x12c   :  { %3809 = vmatmul.mubr.f32.gmra.mrb[68].mxu1 %v1272_v15  ;;  %v1274_v25 = vmax.f32 %v664_v16, 0.0 }
 0x12d   :  { %v1273_v21 = vmax.f32 %v659_v19, 0.0  ;;  %v3592_v22 = vpop.f32.mrb[8].mxu0 }
 0x12e   :  { %v674_v26 = vadd.f32 %v3592_v22, %v5134_v55  ;;  %v668_v27 = vpop.f32.mrb[9].mxu0 }
 0x12f   :  { %v669_v30 = vadd.f32 %v5134_v55, %v668_v27  ;;  %3811 = vmatprep.mubr.f32.mxu1 %v1273_v21 }
 0x130   :  { %3812 = vmatmul.mubr.f32.gmra.mrb[70].mxu1 %v1274_v25  ;;  %v1276_v34 = vmax.f32 %v674_v26, 0.0 }
 0x131   :  { %v1275_v32 = vmax.f32 %v669_v30, 0.0  ;;  %v3595_v33 = vpop.f32.mrb[10].mxu0 }
 0x132   :  { %v684_v35 = vadd.f32 %v3595_v33, %v5134_v55  ;;  %v678_v36 = vpop.f32.mrb[11].mxu0 }
 0x133   :  { %v679_v38 = vadd.f32 %v5134_v55, %v678_v36  ;;  %3814 = vmatprep.mubr.f32.mxu1 %v1275_v32  ;;  %v2261_v36 = vld [vmem:[%s6283_s5 + $0x50] sm:$0xff] }
 0x134   :  { %v5144_v63 = vpop.f32.mrb[0].mxu1  ;;  %3815 = vmatmul.mubr.f32.gmra.mrb[72].mxu1 %v1276_v34  ;;  %v1278_v42 = vmax.f32 %v684_v35, 0.0 }
 0x135   :  { %v5146_v2 = vpop.f32.mrb[1].mxu1  ;;  %v1277_v40 = vmax.f32 %v679_v38, 0.0  ;;  %v2262_v38 = vld [vmem:[%s6283_s5 + $0x58] sm:$0xff] }
 0x136   :  { %v3598_v41 = vpop.f32.mrb[12].mxu0 }
 0x137   :  { %v694_v43 = vadd.f32 %v3598_v41, %v5134_v55  ;;  %v688_v44 = vpop.f32.mrb[13].mxu0  ;;  %3817 = vmatprep.mubr.f32.mxu1 %v1277_v40 }
 0x138   :  { %v5153_v18 = vpop.f32.mrb[2].mxu1  ;;  %v689_v46 = vadd.f32 %v5134_v55, %v688_v44  ;;  %3818 = vmatmul.mubr.f32.gmra.mrb[74].mxu1 %v1278_v42  ;;  %v4302_v44 = vpack.c.bf16 %v2262_v38, %v2261_v36 }
 0x139   :  { %v5156_v20 = vpop.f32.mrb[3].mxu1  ;;  %v1280_v50 = vmax.f32 %v694_v43, 0.0 }
 0x13a   :  { %v1279_v48 = vmax.f32 %v689_v46, 0.0  ;;  %v3601_v49 = vpop.f32.mrb[14].mxu0  ;;  %4303 = vmatprep.subr.bf16.mxu0 %v4302_v44 }
 0x13b   :  { %v704_v51 = vadd.f32 %v3601_v49, %v5134_v55  ;;  %v698_v52 = vpop.f32.mrb[15].mxu0  ;;  %4305 = vmatpush3.bf16.msra.mxu0 %v4302_v44 }
 0x13c   :  { %v5165_v28 = vpop.f32.mrb[4].mxu1  ;;  %v699_v54 = vadd.f32 %v5134_v55, %v698_v52  ;;  %3820 = vmatprep.mubr.f32.mxu1 %v1279_v48 }
 0x13d   :  { %v5168_v31 = vpop.f32.mrb[5].mxu1  ;;  %3821 = vmatmul.mubr.f32.gmra.mrb[76].mxu1 %v1280_v50  ;;  %v1282_v61 = vmax.f32 %v704_v51, 0.0 }
 0x13e   :  { %v1281_v57 = vmax.f32 %v699_v54, 0.0  ;;  %v3604_v58 = vpop.f32.mrb[16].mxu0 }
 0x13f   :  { %v714_v62 = vadd.f32 %v3604_v58, %v5134_v55  ;;  %v708_v0 = vpop.f32.mrb[17].mxu0 }
 0x140   :  { %v5171_v37 = vpop.f32.mrb[6].mxu1  ;;  %v709_v4 = vadd.f32 %v5134_v55, %v708_v0  ;;  %3823 = vmatprep.mubr.f32.mxu1 %v1281_v57 }
 0x141   :  { %v5174_v39 = vpop.f32.mrb[7].mxu1  ;;  %3824 = vmatmul.mubr.f32.gmra.mrb[78].mxu1 %v1282_v61  ;;  %v1284_v8 = vmax.f32 %v714_v62, 0.0 }
 0x142   :  { %v1283_v6 = vmax.f32 %v709_v4, 0.0  ;;  %v3607_v7 = vpop.f32.mrb[18].mxu0 }
 0x143   :  { %v724_v9 = vadd.f32 %v3607_v7, %v5134_v55  ;;  %v718_v10 = vpop.f32.mrb[19].mxu0 }
 0x144   :  { %v5177_v45 = vpop.f32.mrb[8].mxu1  ;;  %v719_v12 = vadd.f32 %v5134_v55, %v718_v10  ;;  %3826 = vmatprep.mubr.f32.mxu1 %v1283_v6 }
 0x145   :  { %v5180_v47 = vpop.f32.mrb[9].mxu1  ;;  %3827 = vmatmul.mubr.f32.gmra.mrb[80].mxu1 %v1284_v8  ;;  %v1286_v16 = vmax.f32 %v724_v9, 0.0 }
 0x146   :  { %v1285_v14 = vmax.f32 %v719_v12, 0.0  ;;  %v3610_v15 = vpop.f32.mrb[20].mxu0 }
 0x147   :  { %v734_v17 = vadd.f32 %v3610_v15, %v5134_v55  ;;  %v728_v19 = vpop.f32.mrb[21].mxu0 }
 0x148   :  { %v5183_v53 = vpop.f32.mrb[10].mxu1  ;;  %v729_v22 = vadd.f32 %v5134_v55, %v728_v19  ;;  %3829 = vmatprep.mubr.f32.mxu1 %v1285_v14 }
 0x149   :  { %v5186_v56 = vpop.f32.mrb[11].mxu1  ;;  %3830 = vmatmul.mubr.f32.gmra.mrb[82].mxu1 %v1286_v16  ;;  %v1288_v26 = vmax.f32 %v734_v17, 0.0 }
 0x14a   :  { %v1287_v24 = vmax.f32 %v729_v22, 0.0  ;;  %v3613_v25 = vpop.f32.mrb[22].mxu0 }
 0x14b   :  { %v744_v27 = vadd.f32 %v3613_v25, %v5134_v55  ;;  %v738_v29 = vpop.f32.mrb[23].mxu0  ;;  %v2264_v25 = vld [vmem:[%s6283_s5 + $0x68] sm:$0xff] }
 0x14c   :  { %v5195_v1 = vpop.f32.mrb[12].mxu1  ;;  %v739_v32 = vadd.f32 %v5134_v55, %v738_v29  ;;  %3832 = vmatprep.mubr.f32.mxu1 %v1287_v24  ;;  %v2263_v24 = vld [vmem:[%s6283_s5 + $0x60] sm:$0xff] }
 0x14d   :  { %v5198_v5 = vpop.f32.mrb[13].mxu1  ;;  %3833 = vmatmul.mubr.f32.gmra.mrb[84].mxu1 %v1288_v26  ;;  %v1290_v40 = vmax.f32 %v744_v27, 0.0 }
 0x14e   :  { %v1289_v34 = vmax.f32 %v739_v32, 0.0  ;;  %v3616_v35 = vpop.f32.mrb[24].mxu0 }
 0x14f   :  { %v754_v41 = vadd.f32 %v3616_v35, %v5134_v55  ;;  %v748_v42 = vpop.f32.mrb[25].mxu0 }
 0x150   :  { %v5201_v11 = vpop.f32.mrb[14].mxu1  ;;  %v749_v46 = vadd.f32 %v5134_v55, %v748_v42  ;;  %3835 = vmatprep.mubr.f32.mxu1 %v1289_v34  ;;  %v4306_v34 = vpack.c.bf16 %v2264_v25, %v2263_v24  ;;  %v2265_v24 = vld [vmem:[%s6283_s5 + $0x70] sm:$0xff]  ;;  %v2266_v25 = vld [vmem:[%s6283_s5 + $0x78] sm:$0xff] }
 0x151   :  { %v5204_v13 = vpop.f32.mrb[15].mxu1  ;;  %3836 = vmatmul.mubr.f32.gmra.mrb[86].mxu1 %v1290_v40  ;;  %v1292_v51 = vmax.f32 %v754_v41, 0.0 }
 0x152   :  { %v1291_v49 = vmax.f32 %v749_v46, 0.0  ;;  %v3619_v50 = vpop.f32.mrb[26].mxu0  ;;  %4307 = vmatprep.subr.bf16.mxu0 %v4306_v34 }
 0x153   :  { %v764_v52 = vadd.f32 %v3619_v50, %v5134_v55  ;;  %v758_v54 = vpop.f32.mrb[27].mxu0  ;;  %4309 = vmatpush3.bf16.msra.mxu0 %v4306_v34 }
 0x154   :  { %v5207_v21 = vpop.f32.mrb[16].mxu1  ;;  %v759_v58 = vadd.f32 %v5134_v55, %v758_v54  ;;  %3838 = vmatprep.mubr.f32.mxu1 %v1291_v49 }
 0x155   :  { %v5210_v23 = vpop.f32.mrb[17].mxu1  ;;  %3839 = vmatmul.mubr.f32.gmra.mrb[88].mxu1 %v1292_v51  ;;  %v1294_v62 = vmax.f32 %v764_v52, 0.0 }
 0x156   :  { %v1293_v60 = vmax.f32 %v759_v58, 0.0  ;;  %v3622_v61 = vpop.f32.mrb[28].mxu0 }
 0x157   :  { %v774_v0 = vadd.f32 %v3622_v61, %v5134_v55  ;;  %v768_v3 = vpop.f32.mrb[29].mxu0 }
 0x158   :  { %v5213_v30 = vpop.f32.mrb[18].mxu1  ;;  %v769_v6 = vadd.f32 %v5134_v55, %v768_v3  ;;  %3841 = vmatprep.mubr.f32.mxu1 %v1293_v60 }
 0x159   :  { %v5216_v33 = vpop.f32.mrb[19].mxu1  ;;  %3842 = vmatmul.mubr.f32.gmra.mrb[90].mxu1 %v1294_v62  ;;  %v1296_v10 = vmax.f32 %v774_v0, 0.0 }
 0x15a   :  { %v1295_v8 = vmax.f32 %v769_v6, 0.0  ;;  %v3625_v9 = vpop.f32.mrb[30].mxu0 }
 0x15b   :  { %v784_v12 = vadd.f32 %v3625_v9, %v5134_v55  ;;  %v778_v14 = vpop.f32.mrb[31].mxu0 }
 0x15c   :  { %v5225_v43 = vpop.f32.mrb[20].mxu1  ;;  %v779_v16 = vadd.f32 %v5134_v55, %v778_v14  ;;  %3844 = vmatprep.mubr.f32.mxu1 %v1295_v8 }
 0x15d   :  { %v5228_v48 = vpop.f32.mrb[21].mxu1  ;;  %3845 = vmatmul.mubr.f32.gmra.mrb[92].mxu1 %v1296_v10  ;;  %v1298_v26 = vmax.f32 %v784_v12, 0.0 }
 0x15e   :  { %v1297_v19 = vmax.f32 %v779_v16, 0.0  ;;  %v3628_v22 = vpop.f32.mrb[32].mxu0 }
 0x15f   :  { %v794_v27 = vadd.f32 %v3628_v22, %v5134_v55  ;;  %v788_v29 = vpop.f32.mrb[33].mxu0 }
 0x160   :  { %v5231_v57 = vpop.f32.mrb[22].mxu1  ;;  %v789_v35 = vadd.f32 %v5134_v55, %v788_v29  ;;  %3847 = vmatprep.mubr.f32.mxu1 %v1297_v19 }
 0x161   :  { %v5234_v59 = vpop.f32.mrb[23].mxu1  ;;  %3848 = vmatmul.mubr.f32.gmra.mrb[94].mxu1 %v1298_v26  ;;  %v1300_v41 = vmax.f32 %v794_v27, 0.0 }
 0x162   :  { %v1299_v38 = vmax.f32 %v789_v35, 0.0  ;;  %v3631_v40 = vpop.f32.mrb[34].mxu0  ;;  %v4310_v35 = vpack.c.bf16 %v2266_v25, %v2265_v24 }
 0x163   :  { %v804_v42 = vadd.f32 %v3631_v40, %v5134_v55  ;;  %v798_v44 = vpop.f32.mrb[35].mxu0 }
 0x164   :  { %v5237_v4 = vpop.f32.mrb[24].mxu1  ;;  %v799_v49 = vadd.f32 %v5134_v55, %v798_v44  ;;  %3850 = vmatprep.mubr.f32.mxu1 %v1299_v38  ;;  %4311 = vmatprep.subr.bf16.mxu0 %v4310_v35 }
 0x165   :  { %v5240_v7 = vpop.f32.mrb[25].mxu1  ;;  %3851 = vmatmul.mubr.f32.gmra.mrb[96].mxu1 %v1300_v41  ;;  %v1302_v54 = vmax.f32 %v804_v42, 0.0  ;;  %4313 = vmatpush3.bf16.msra.mxu0 %v4310_v35 }
 0x166   :  { %v1301_v51 = vmax.f32 %v799_v49, 0.0  ;;  %v3634_v52 = vpop.f32.mrb[36].mxu0 }
 0x167   :  { %v814_v58 = vadd.f32 %v3634_v52, %v5134_v55  ;;  %v808_v60 = vpop.f32.mrb[37].mxu0 }
 0x168   :  { %v5243_v15 = vpop.f32.mrb[26].mxu1  ;;  %v809_v62 = vadd.f32 %v5134_v55, %v808_v60  ;;  %3853 = vmatprep.mubr.f32.mxu1 %v1301_v51 }
 0x169   :  { %v5246_v17 = vpop.f32.mrb[27].mxu1  ;;  %3854 = vmatmul.mubr.f32.gmra.mrb[98].mxu1 %v1302_v54  ;;  %v1304_v8 = vmax.f32 %v814_v58, 0.0 }
 0x16a   :  { %v1303_v3 = vmax.f32 %v809_v62, 0.0  ;;  %v3637_v6 = vpop.f32.mrb[38].mxu0 }
 0x16b   :  { %v824_v9 = vadd.f32 %v3637_v6, %v5134_v55  ;;  %v818_v10 = vpop.f32.mrb[39].mxu0 }
 0x16c   :  { %v5255_v32 = vpop.f32.mrb[28].mxu1  ;;  %v819_v14 = vadd.f32 %v5134_v55, %v818_v10  ;;  %3856 = vmatprep.mubr.f32.mxu1 %v1303_v3 }
 0x16d   :  { %v5258_v36 = vpop.f32.mrb[29].mxu1  ;;  %3857 = vmatmul.mubr.f32.gmra.mrb[100].mxu1 %v1304_v8  ;;  %v1306_v26 = vmax.f32 %v824_v9, 0.0 }
 0x16e   :  { %v1305_v19 = vmax.f32 %v819_v14, 0.0  ;;  %v3640_v22 = vpop.f32.mrb[40].mxu0 }
 0x16f   :  { %v834_v27 = vadd.f32 %v3640_v22, %v5134_v55  ;;  %v828_v29 = vpop.f32.mrb[41].mxu0 }
 0x170   :  { %v5261_v46 = vpop.f32.mrb[30].mxu1  ;;  %v829_v38 = vadd.f32 %v5134_v55, %v828_v29  ;;  %3859 = vmatprep.mubr.f32.mxu1 %v1305_v19 }
 0x171   :  { %v5264_v50 = vpop.f32.mrb[31].mxu1  ;;  %3860 = vmatmul.mubr.f32.gmra.mrb[102].mxu1 %v1306_v26  ;;  %v1308_v44 = vmax.f32 %v834_v27, 0.0 }
 0x172   :  { %v1307_v41 = vmax.f32 %v829_v38, 0.0  ;;  %v3643_v42 = vpop.f32.mrb[42].mxu0 }
 0x173   :  { %v844_v49 = vadd.f32 %v3643_v42, %v5134_v55  ;;  %v838_v51 = vpop.f32.mrb[43].mxu0 }
 0x174   :  { %v5267_v61 = vpop.f32.mrb[32].mxu1  ;;  %v839_v54 = vadd.f32 %v5134_v55, %v838_v51  ;;  %3862 = vmatprep.mubr.f32.mxu1 %v1307_v41 }
 0x175   :  { %v5270_v0 = vpop.f32.mrb[33].mxu1  ;;  %3863 = vmatmul.mubr.f32.gmra.mrb[104].mxu1 %v1308_v44  ;;  %v1310_v3 = vmax.f32 %v844_v49, 0.0 }
 0x176   :  { %v1309_v60 = vmax.f32 %v839_v54, 0.0  ;;  %v3646_v62 = vpop.f32.mrb[44].mxu0 }
 0x177   :  { %v854_v6 = vadd.f32 %v3646_v62, %v5134_v55  ;;  %v848_v8 = vpop.f32.mrb[45].mxu0 }
 0x178   :  { %v5273_v12 = vpop.f32.mrb[34].mxu1  ;;  %v849_v10 = vadd.f32 %v5134_v55, %v848_v8  ;;  %3865 = vmatprep.mubr.f32.mxu1 %v1309_v60 }
 0x179   :  { %v5276_v16 = vpop.f32.mrb[35].mxu1  ;;  %3866 = vmatmul.mubr.f32.gmra.mrb[106].mxu1 %v1310_v3  ;;  %v1312_v24 = vmax.f32 %v854_v6, 0.0 }
 0x17a   :  { %v1311_v19 = vmax.f32 %v849_v10, 0.0  ;;  %v3649_v22 = vpop.f32.mrb[46].mxu0 }
 0x17b   :  { %v864_v25 = vadd.f32 %v3649_v22, %v5134_v55  ;;  %v858_v26 = vpop.f32.mrb[47].mxu0 }
 0x17c   :  { %v5285_v34 = vpop.f32.mrb[36].mxu1  ;;  %v859_v29 = vadd.f32 %v5134_v55, %v858_v26  ;;  %3868 = vmatprep.mubr.f32.mxu1 %v1311_v19 }
 0x17d   :  { %v5288_v40 = vpop.f32.mrb[37].mxu1  ;;  %3869 = vmatmul.mubr.f32.gmra.mrb[108].mxu1 %v1312_v24  ;;  %v1314_v42 = vmax.f32 %v864_v25, 0.0 }
 0x17e   :  { %v1313_v38 = vmax.f32 %v859_v29, 0.0  ;;  %v3652_v41 = vpop.f32.mrb[48].mxu0 }
 0x17f   :  { %v874_v44 = vadd.f32 %v3652_v41, %v5134_v55  ;;  %v868_v49 = vpop.f32.mrb[49].mxu0 }
 0x180   :  { %v5291_v52 = vpop.f32.mrb[38].mxu1  ;;  %v869_v54 = vadd.f32 %v5134_v55, %v868_v49  ;;  %3871 = vmatprep.mubr.f32.mxu1 %v1313_v38 }
 0x181   :  { %v5294_v58 = vpop.f32.mrb[39].mxu1  ;;  %3872 = vmatmul.mubr.f32.gmra.mrb[110].mxu1 %v1314_v42  ;;  %v1316_v6 = vmax.f32 %v874_v44, 0.0 }
 0x182   :  { %v1315_v62 = vmax.f32 %v869_v54, 0.0  ;;  %v3655_v3 = vpop.f32.mrb[50].mxu0 }
 0x183   :  { %v884_v8 = vadd.f32 %v3655_v3, %v5134_v55  ;;  %v878_v10 = vpop.f32.mrb[51].mxu0 }
 0x184   :  { %v5297_v9 = vpop.f32.mrb[40].mxu1  ;;  %v879_v22 = vadd.f32 %v5134_v55, %v878_v10  ;;  %3874 = vmatprep.mubr.f32.mxu1 %v1315_v62 }
 0x185   :  { %v5300_v14 = vpop.f32.mrb[41].mxu1  ;;  %3875 = vmatmul.mubr.f32.gmra.mrb[112].mxu1 %v1316_v6  ;;  %v1318_v29 = vmax.f32 %v884_v8, 0.0 }
 0x186   :  { %v1317_v25 = vmax.f32 %v879_v22, 0.0  ;;  %v3658_v26 = vpop.f32.mrb[52].mxu0 }
 0x187   :  { %v894_v38 = vadd.f32 %v3658_v26, %v5134_v55  ;;  %v888_v41 = vpop.f32.mrb[53].mxu0 }
 0x188   :  { %v5303_v27 = vpop.f32.mrb[42].mxu1  ;;  %v889_v44 = vadd.f32 %v5134_v55, %v888_v41  ;;  %3877 = vmatprep.mubr.f32.mxu1 %v1317_v25 }
 0x189   :  { %v5306_v35 = vpop.f32.mrb[43].mxu1  ;;  %3878 = vmatmul.mubr.f32.gmra.mrb[114].mxu1 %v1318_v29  ;;  %v1320_v62 = vmax.f32 %v894_v38, 0.0 }
 0x18a   :  { %v1319_v54 = vmax.f32 %v889_v44, 0.0  ;;  %v3661_v3 = vpop.f32.mrb[54].mxu0 }
 0x18b   :  { %v904_v10 = vadd.f32 %v3661_v3, %v5134_v55  ;;  %v898_v6 = vpop.f32.mrb[55].mxu0 }
 0x18c   :  { %v5309_v51 = vpop.f32.mrb[44].mxu1  ;;  %v899_v8 = vadd.f32 %v5134_v55, %v898_v6  ;;  %3880 = vmatprep.mubr.f32.mxu1 %v1319_v54 }
 0x18d   :  { %v5312_v60 = vpop.f32.mrb[45].mxu1  ;;  %3881 = vmatmul.mubr.f32.gmra.mrb[116].mxu1 %v1320_v62  ;;  %v1322_v25 = vmax.f32 %v904_v10, 0.0 }
 0x18e   :  { %v3664_v41 = vpop.f32.mrb[56].mxu0 }
 0x18f   :  { %v908_v29 = vpop.f32.mrb[57].mxu0 }
 0x190   :  { %v5315_v19 = vpop.f32.mrb[46].mxu1  ;;  %v909_v38 = vadd.f32 %v5134_v55, %v908_v29 }
 0x191   :  { %v5318_v24 = vpop.f32.mrb[47].mxu1 }
 0x192   :  { %v3667_v6 = vpop.f32.mrb[58].mxu0 }
 0x193   :  { %v918_v62 = vpop.f32.mrb[59].mxu0 }
 0x194   :  { %v5321_v42 = vpop.f32.mrb[48].mxu1  ;;  %v919_v10 = vadd.f32 %v5134_v55, %v918_v62 }
 0x195   :  { %6288 = vst [vmem:[#allocation3_spill] sm:$0xff] %v5321_v42  ;;  %v5324_v49 = vpop.f32.mrb[49].mxu1  ;;  %v1321_v42 = vmax.f32 %v899_v8, 0.0 }
 0x196   :  { %6289 = vst [vmem:[#allocation4_spill] sm:$0xff] %v5324_v49  ;;  %v914_v49 = vadd.f32 %v3664_v41, %v5134_v55  ;;  %v3670_v29 = vpop.f32.mrb[60].mxu0 }
 0x197   :  { %3883 = vmatprep.mubr.f32.mxu1 %v1321_v42 }
 0x198   :  { %v5327_v22 = vpop.f32.mrb[50].mxu1  ;;  %3884 = vmatmul.mubr.f32.gmra.mrb[118].mxu1 %v1322_v25  ;;  %v1324_v54 = vmax.f32 %v914_v49, 0.0  ;;  %v928_v25 = vpop.f32.mrb[61].mxu0 }
 0x199   :  { %6290 = vst [vmem:[#allocation5_spill] sm:$0xff] %v5327_v22  ;;  %v5330_v26 = vpop.f32.mrb[51].mxu1  ;;  %v1323_v22 = vmax.f32 %v909_v38, 0.0  ;;  %v929_v49 = vadd.f32 %v5134_v55, %v928_v25 }
 0x19a   :  { %6291 = vst [vmem:[#allocation6_spill] sm:$0xff] %v5330_v26  ;;  %v924_v26 = vadd.f32 %v3667_v6, %v5134_v55  ;;  %v3673_v62 = vpop.f32.mrb[62].mxu0 }
 0x19b   :  { %3886 = vmatprep.mubr.f32.mxu1 %v1323_v22 }
 0x19c   :  { %v5333_v44 = vpop.f32.mrb[52].mxu1  ;;  %3887 = vmatmul.mubr.f32.gmra.mrb[120].mxu1 %v1324_v54  ;;  %v1326_v42 = vmax.f32 %v924_v26, 0.0  ;;  %v938_v54 = vpop.f32.mrb[63].mxu0  ;;  %v949_v26 = vadd.f32 %v5134_v55, %v5146_v2 }
 0x19d   :  { %6292 = vst [vmem:[#allocation7_spill] sm:$0xff] %v5333_v44  ;;  %v5336_v3 = vpop.f32.mrb[53].mxu1  ;;  %v1325_v44 = vmax.f32 %v919_v10, 0.0 }
 0x19e   :  { %6293 = vst [vmem:[#allocation8_spill] sm:$0xff] %v5336_v3  ;;  %v934_v3 = vadd.f32 %v3670_v29, %v5134_v55  ;;  %v939_v29 = vadd.f32 %v5134_v55, %v938_v54 }
 0x19f   :  { %3889 = vmatprep.mubr.f32.mxu1 %v1325_v44 }
 0x1a0   :  { %v5339_v8 = vpop.f32.mrb[54].mxu1  ;;  %3890 = vmatmul.mubr.f32.gmra.mrb[122].mxu1 %v1326_v42  ;;  %v1328_v22 = vmax.f32 %v934_v3, 0.0  ;;  %v1329_v44 = vmax.f32 %v939_v29, 0.0  ;;  %v954_v42 = vadd.f32 %v5144_v63, %v5134_v55  ;;  %v969_v63 = vadd.f32 %v5134_v55, %v5168_v31 }
 0x1a1   :  { %6294 = vst [vmem:[#allocation9_spill] sm:$0xff] %v5339_v8  ;;  %v5342_v41 = vpop.f32.mrb[55].mxu1  ;;  %v1327_v8 = vmax.f32 %v929_v49, 0.0  ;;  %v1331_v49 = vmax.f32 %v949_v26, 0.0  ;;  %v974_v26 = vadd.f32 %v5165_v28, %v5134_v55  ;;  %v989_v31 = vadd.f32 %v5134_v55, %v5180_v47 }
 0x1a2   :  { %6295 = vst [vmem:[#allocation10_spill] sm:$0xff] %v5342_v41  ;;  %v944_v41 = vadd.f32 %v3673_v62, %v5134_v55  ;;  %v959_v62 = vadd.f32 %v5134_v55, %v5156_v20  ;;  %v1332_v2 = vmax.f32 %v954_v42, 0.0  ;;  %v1335_v29 = vmax.f32 %v969_v63, 0.0 }
 0x1a3   :  { %3892 = vmatprep.mubr.f32.mxu1 %v1327_v8  ;;  %v964_v8 = vadd.f32 %v5153_v18, %v5134_v55  ;;  %v1336_v18 = vmax.f32 %v974_v26, 0.0  ;;  %v984_v42 = vadd.f32 %v5171_v37, %v5134_v55  ;;  %v994_v28 = vadd.f32 %v5177_v45, %v5134_v55 }
 0x1a4   :  { %v5345_v38 = vpop.f32.mrb[56].mxu1  ;;  %3893 = vmatmul.mubr.f32.gmra.mrb[124].mxu1 %v1328_v22  ;;  %v1330_v25 = vmax.f32 %v944_v41, 0.0  ;;  %v1333_v54 = vmax.f32 %v959_v62, 0.0  ;;  %v1339_v62 = vmax.f32 %v989_v31, 0.0  ;;  %v1004_v37 = vadd.f32 %v5183_v53, %v5134_v55 }
 0x1a5   :  { %6296 = vst [vmem:[#allocation11_spill] sm:$0xff] %v5345_v38  ;;  %v5348_v6 = vpop.f32.mrb[57].mxu1  ;;  %3895 = vmatprep.mubr.f32.mxu1 %v1329_v44  ;;  %v1334_v20 = vmax.f32 %v964_v8, 0.0  ;;  %v979_v44 = vadd.f32 %v5134_v55, %v5174_v39  ;;  %v999_v39 = vadd.f32 %v5134_v55, %v5186_v56  ;;  %v1009_v47 = vadd.f32 %v5134_v55, %v5198_v5 }
 0x1a6   :  { %v1014_v45 = vadd.f32 %v5195_v1, %v5134_v55  ;;  %v1019_v56 = vadd.f32 %v5134_v55, %v5204_v13  ;;  %v1024_v53 = vadd.f32 %v5201_v11, %v5134_v55  ;;  %v1029_v5 = vadd.f32 %v5134_v55, %v5210_v23 }
 0x1a7   :  { %v1341_v8 = vmax.f32 %v999_v39, 0.0  ;;  %v1343_v63 = vmax.f32 %v1009_v47, 0.0  ;;  %v1034_v1 = vadd.f32 %v5207_v21, %v5134_v55  ;;  %v1039_v13 = vadd.f32 %v5134_v55, %v5216_v33 }
 0x1a8   :  { %v5351_v10 = vpop.f32.mrb[58].mxu1  ;;  %3896 = vmatmul.mubr.f32.gmra.mrb[126].mxu1 %v1330_v25  ;;  %v1337_v25 = vmax.f32 %v979_v44, 0.0  ;;  %v1345_v26 = vmax.f32 %v1019_v56, 0.0  ;;  %v1347_v44 = vmax.f32 %v1029_v5, 0.0  ;;  %v1044_v11 = vadd.f32 %v5213_v30, %v5134_v55 }
 0x1a9   :  { %6297 = vst [vmem:[#allocation12_spill] sm:$0xff] %v5351_v10  ;;  %v5356_v38 = vpop.f32.mrb[59].mxu1  ;;  %3898 = vmatprep.mubr.f32.mxu1 %v1331_v49  ;;  %v1338_v49 = vmax.f32 %v984_v42, 0.0  ;;  %v1349_v42 = vmax.f32 %v1039_v13, 0.0  ;;  %v1049_v23 = vadd.f32 %v5134_v55, %v5228_v48  ;;  %v1054_v21 = vadd.f32 %v5225_v43, %v5134_v55 }
 0x1aa   :  { %v1059_v33 = vadd.f32 %v5134_v55, %v5234_v59  ;;  %v1064_v30 = vadd.f32 %v5231_v57, %v5134_v55  ;;  %v1069_v48 = vadd.f32 %v5134_v55, %v5240_v7  ;;  %v1074_v43 = vadd.f32 %v5237_v4, %v5134_v55 }
 0x1ab   :  { %v1351_v31 = vmax.f32 %v1049_v23, 0.0  ;;  %v1079_v59 = vadd.f32 %v5134_v55, %v5246_v17  ;;  %v1084_v57 = vadd.f32 %v5243_v15, %v5134_v55  ;;  %v1089_v7 = vadd.f32 %v5134_v55, %v5258_v36 }
 0x1ac   :  { %v5360_v3 = vpop.f32.mrb[60].mxu1  ;;  %3899 = vmatmul.mubr.f32.gmra.mrb[128].mxu1 %v1332_v2  ;;  %v1340_v2 = vmax.f32 %v994_v28, 0.0  ;;  %v1353_v28 = vmax.f32 %v1059_v33, 0.0  ;;  %v1355_v39 = vmax.f32 %v1069_v48, 0.0  ;;  %v1094_v4 = vadd.f32 %v5255_v32, %v5134_v55 }
 0x1ad   :  { %v5364_v10 = vpop.f32.mrb[61].mxu1  ;;  %3901 = vmatprep.mubr.f32.mxu1 %v1333_v54  ;;  %v1342_v54 = vmax.f32 %v1004_v37, 0.0  ;;  %v1357_v37 = vmax.f32 %v1079_v59, 0.0  ;;  %v1359_v47 = vmax.f32 %v1089_v7, 0.0  ;;  %v1099_v17 = vadd.f32 %v5134_v55, %v5264_v50  ;;  %v6300_v7 = vld [vmem:[#allocation6_spill] sm:$0xff] }
 0x1ae   :  { %v1104_v15 = vadd.f32 %v5261_v46, %v5134_v55  ;;  %v1109_v36 = vadd.f32 %v5134_v55, %v5270_v0  ;;  %v1114_v32 = vadd.f32 %v5267_v61, %v5134_v55  ;;  %v1119_v50 = vadd.f32 %v5134_v55, %v5276_v16 }
 0x1af   :  { %v1124_v46 = vadd.f32 %v5273_v12, %v5134_v55  ;;  %v1129_v0 = vadd.f32 %v5134_v55, %v5288_v40  ;;  %v1134_v61 = vadd.f32 %v5285_v34, %v5134_v55  ;;  %v1139_v16 = vadd.f32 %v5134_v55, %v5294_v58 }
 0x1b0   :  { %v5368_v22 = vpop.f32.mrb[62].mxu1  ;;  %3902 = vmatmul.mubr.f32.gmra.mrb[130].mxu1 %v1334_v20  ;;  %v1344_v20 = vmax.f32 %v1014_v45, 0.0  ;;  %v1361_v45 = vmax.f32 %v1099_v17, 0.0  ;;  %v1363_v56 = vmax.f32 %v1109_v36, 0.0  ;;  %v1144_v12 = vadd.f32 %v5291_v52, %v5134_v55 }
 0x1b1   :  { %v5372_v41 = vpop.f32.mrb[63].mxu1  ;;  %3904 = vmatprep.mubr.f32.mxu1 %v1335_v29  ;;  %v1346_v29 = vmax.f32 %v1024_v53, 0.0  ;;  %v1365_v53 = vmax.f32 %v1119_v50, 0.0  ;;  %v1367_v5 = vmax.f32 %v1129_v0, 0.0  ;;  %v1149_v40 = vadd.f32 %v5134_v55, %v5300_v14  ;;  %v6302_v50 = vld [vmem:[#allocation8_spill] sm:$0xff] }
 0x1b2   :  { %v1154_v34 = vadd.f32 %v5297_v9, %v5134_v55  ;;  %v1159_v58 = vadd.f32 %v5134_v55, %v5306_v35  ;;  %v1164_v52 = vadd.f32 %v5303_v27, %v5134_v55  ;;  %v1169_v14 = vadd.f32 %v5134_v55, %v5312_v60  ;;  %v5457_v9 = vld [vmem:[%s6285_s4] ss:$0 sm:$0xff] }
 0x1b3   :  { %v1371_v13 = vmax.f32 %v1149_v40, 0.0  ;;  %v1174_v35 = vadd.f32 %v5309_v51, %v5134_v55  ;;  %v6304_v40 = vld [vmem:[#allocation10_spill] sm:$0xff] }
 0x1b4   :  { %3905 = vmatmul.mubr.f32.gmra.mrb[132].mxu1 %v1336_v18  ;;  %v1348_v18 = vmax.f32 %v1034_v1, 0.0  ;;  %v1369_v1 = vmax.f32 %v1139_v16, 0.0  ;;  %v1375_v23 = vmax.f32 %v1169_v14, 0.0 }
 0x1b5   :  { %3907 = vmatprep.mubr.f32.mxu1 %v1337_v25  ;;  %v1350_v25 = vmax.f32 %v1044_v11, 0.0  ;;  %v1373_v11 = vmax.f32 %v1159_v58, 0.0  ;;  %v1376_v33 = vmax.f32 %v1174_v35, 0.0 }
 0x1b8   :  { %3908 = vmatmul.mubr.f32.gmra.mrb[134].mxu1 %v1338_v49  ;;  %v1352_v49 = vmax.f32 %v1054_v21, 0.0 }
 0x1b9   :  { %3910 = vmatprep.mubr.f32.mxu1 %v1339_v62  ;;  %v1354_v62 = vmax.f32 %v1064_v30, 0.0 }
 0x1bc   :  { %3911 = vmatmul.mubr.f32.gmra.mrb[136].mxu1 %v1340_v2  ;;  %v1356_v2 = vmax.f32 %v1074_v43, 0.0 }
 0x1bd   :  { %3913 = vmatprep.mubr.f32.mxu1 %v1341_v8  ;;  %v1358_v8 = vmax.f32 %v1084_v57, 0.0  ;;  %v6299_v57 = vld [vmem:[#allocation3_spill] sm:$0xff] }
 0x1c0   :  { %3914 = vmatmul.mubr.f32.gmra.mrb[138].mxu1 %v1342_v54  ;;  %v1360_v54 = vmax.f32 %v1094_v4, 0.0 }
 0x1c1   :  { %3916 = vmatprep.mubr.f32.mxu1 %v1343_v63  ;;  %v1362_v63 = vmax.f32 %v1104_v15, 0.0 }
 0x1c4   :  { %3917 = vmatmul.mubr.f32.gmra.mrb[140].mxu1 %v1344_v20  ;;  %v1364_v20 = vmax.f32 %v1114_v32, 0.0  ;;  %v6301_v32 = vld [vmem:[#allocation5_spill] sm:$0xff] }
 0x1c5   :  { %3919 = vmatprep.mubr.f32.mxu1 %v1345_v26  ;;  %v1366_v26 = vmax.f32 %v1124_v46, 0.0 }
 0x1c8   :  { %3920 = vmatmul.mubr.f32.gmra.mrb[142].mxu1 %v1346_v29  ;;  %v1368_v29 = vmax.f32 %v1134_v61, 0.0 }
 0x1c9   :  { %3922 = vmatprep.mubr.f32.mxu1 %v1347_v44  ;;  %v1370_v44 = vmax.f32 %v1144_v12, 0.0 }
 0x1cc   :  { %3923 = vmatmul.mubr.f32.gmra.mrb[144].mxu1 %v1348_v18  ;;  %v1372_v18 = vmax.f32 %v1154_v34, 0.0 }
 0x1cd   :  { %3925 = vmatprep.mubr.f32.mxu1 %v1349_v42  ;;  %v1374_v42 = vmax.f32 %v1164_v52, 0.0 }
 0x1d0   :  { %3926 = vmatmul.mubr.f32.gmra.mrb[146].mxu1 %v1350_v25  ;;  %v1179_v25 = vadd.f32 %v5134_v55, %v5318_v24 }
 0x1d1   :  { %3928 = vmatprep.mubr.f32.mxu1 %v1351_v31 }
 0x1d2   :  { %v1377_v30 = vmax.f32 %v1179_v25, 0.0 }
 0x1d4   :  { %3929 = vmatmul.mubr.f32.gmra.mrb[148].mxu1 %v1352_v49  ;;  %v1184_v49 = vadd.f32 %v5315_v19, %v5134_v55 }
 0x1d5   :  { %3931 = vmatprep.mubr.f32.mxu1 %v1353_v28  ;;  %v6298_v28 = vld [vmem:[#allocation4_spill] sm:$0xff] }
 0x1d6   :  { %v1189_v51 = vadd.f32 %v5134_v55, %v6298_v28  ;;  %v6306_v28 = vld [vmem:[#allocation11_spill] sm:$0xff] }
 0x1d8   :  { %3932 = vmatmul.mubr.f32.gmra.mrb[150].mxu1 %v1354_v62  ;;  %v1379_v19 = vmax.f32 %v1189_v51, 0.0 }
 0x1d9   :  { %3934 = vmatprep.mubr.f32.mxu1 %v1355_v39 }
 0x1dc   :  { %3935 = vmatmul.mubr.f32.gmra.mrb[152].mxu1 %v1356_v2  ;;  %v1378_v2 = vmax.f32 %v1184_v49, 0.0 }
 0x1dd   :  { %3937 = vmatprep.mubr.f32.mxu1 %v1357_v37  ;;  %v1194_v37 = vadd.f32 %v6299_v57, %v5134_v55 }
 0x1df   :  { %v1380_v36 = vmax.f32 %v1194_v37, 0.0  ;;  %v6307_v37 = vld [vmem:[#allocation12_spill] sm:$0xff] }
 0x1e0   :  { %3938 = vmatmul.mubr.f32.gmra.mrb[154].mxu1 %v1358_v8  ;;  %v1199_v8 = vadd.f32 %v5134_v55, %v6300_v7 }
 0x1e1   :  { %3940 = vmatprep.mubr.f32.mxu1 %v1359_v47 }
 0x1e4   :  { %3941 = vmatmul.mubr.f32.gmra.mrb[156].mxu1 %v1360_v54 }
 0x1e5   :  { %3943 = vmatprep.mubr.f32.mxu1 %v1361_v45 }
 0x1e8   :  { %3944 = vmatmul.mubr.f32.gmra.mrb[158].mxu1 %v1362_v63  ;;  %v5480_v63 = vld [vmem:[%s6284_s2] ss:$0 sm:$0xff] }
 0x1e9   :  { %3946 = vmatprep.mubr.f32.mxu1 %v1363_v56  ;;  %v1204_v55 = vadd.f32 %v5480_v63, %v6301_v32  ;;  %v1381_v56 = vmax.f32 %v1199_v8, 0.0  ;;  %v1229_v25 = vadd.f32 %v5480_v63, %v5348_v6  ;;  %v1234_v51 = vadd.f32 %v5480_v63, %v6306_v28 }
 0x1ea   :  { %v1239_v6 = vadd.f32 %v5480_v63, %v5356_v38  ;;  %v1249_v38 = vadd.f32 %v5480_v63, %v5364_v10  ;;  %v1259_v10 = vadd.f32 %v5480_v63, %v5372_v41 }
 0x1eb   :  { %v1382_v16 = vmax.f32 %v1204_v55, 0.0  ;;  %v1388_v57 = vmax.f32 %v1234_v51, 0.0 }
 0x1ec   :  { %3947 = vmatmul.mubr.f32.gmra.mrb[160].mxu1 %v1364_v20  ;;  %v1209_v20 = vadd.f32 %v5480_v63, %v6302_v50  ;;  %v1389_v7 = vmax.f32 %v1239_v6, 0.0  ;;  %v1391_v32 = vmax.f32 %v1249_v38, 0.0 }
 0x1ed   :  { %3949 = vmatprep.mubr.f32.mxu1 %v1365_v53 }
 0x1f0   :  { %3950 = vmatmul.mubr.f32.gmra.mrb[162].mxu1 %v1366_v26 }
 0x1f1   :  { %3952 = vmatprep.mubr.f32.mxu1 %v1367_v5 }
 0x1f4   :  { %3953 = vmatmul.mubr.f32.gmra.mrb[164].mxu1 %v1368_v29  ;;  %v6303_v29 = vld [vmem:[#allocation7_spill] sm:$0xff] }
 0x1f5   :  { %3955 = vmatprep.mubr.f32.mxu1 %v1369_v1  ;;  %v1214_v12 = vadd.f32 %v5480_v63, %v6303_v29  ;;  %v1383_v1 = vmax.f32 %v1209_v20, 0.0 }
 0x1f7   :  { %v3804_v27 = vpop.f32.mrb[64].mxu1  ;;  %v1384_v14 = vmax.f32 %v1214_v12, 0.0 }
 0x1f8   :  { %3956 = vmatmul.mubr.f32.gmra.mrb[166].mxu1 %v1370_v44  ;;  %v1490_v21 = vadd.f32 %v3804_v27, %v5457_v9  ;;  %v1484_v31 = vpop.f32.mrb[65].mxu1  ;;  %v1219_v44 = vadd.f32 %v5480_v63, %v6304_v40 }
 0x1f9   :  { %3958 = vmatprep.mubr.f32.mxu1 %v1371_v13  ;;  %v1485_v60 = vadd.f32 %v5457_v9, %v1484_v31 }
 0x1fa   :  { %v2124_v43 = vmax.f32 %v1490_v21, 0.0 }
 0x1fb   :  { %v2123_v48 = vmax.f32 %v1485_v60, 0.0  ;;  %v3807_v62 = vpop.f32.mrb[66].mxu1 }
 0x1fc   :  { %3959 = vmatmul.mubr.f32.gmra.mrb[168].mxu1 %v1372_v18  ;;  %v1500_v24 = vadd.f32 %v3807_v62, %v5457_v9  ;;  %v1494_v39 = vpop.f32.mrb[67].mxu1 }
 0x1fd   :  { %3961 = vmatprep.mubr.f32.mxu1 %v1373_v11  ;;  %v1495_v59 = vadd.f32 %v5457_v9, %v1494_v39  ;;  %4026 = vmatprep.mubr.f32.mxu0 %v2123_v48  ;;  %v1387_v48 = vmax.f32 %v1229_v25, 0.0 }
 0x1fe   :  { %4027 = vmatmul.mubr.f32.vlgmr.msra.gmra.mrb[64].mxu0 %v2124_v43  ;;  %v2126_v17 = vmax.f32 %v1500_v24, 0.0 }
 0x1ff   :  { %v2125_v4 = vmax.f32 %v1495_v59, 0.0  ;;  %v3810_v47 = vpop.f32.mrb[68].mxu1 }
 0x200   :  { %3962 = vmatmul.mubr.f32.gmra.mrb[170].mxu1 %v1374_v42  ;;  %v1510_v54 = vadd.f32 %v3810_v47, %v5457_v9  ;;  %v1504_v15 = vpop.f32.mrb[69].mxu1  ;;  %v6305_v42 = vld [vmem:[#allocation9_spill] sm:$0xff] }
 0x201   :  { %3964 = vmatprep.mubr.f32.mxu1 %v1375_v23  ;;  %v1505_v45 = vadd.f32 %v5457_v9, %v1504_v15  ;;  %4029 = vmatprep.mubr.f32.mxu0 %v2125_v4  ;;  %v1224_v35 = vadd.f32 %v5480_v63, %v6305_v42  ;;  %v1385_v23 = vmax.f32 %v1219_v44, 0.0 }
 0x202   :  { %4030 = vmatmul.mubr.f32.gmra.mrb[66].mxu0 %v2126_v17  ;;  %v2128_v0 = vmax.f32 %v1510_v54, 0.0 }
 0x203   :  { %v2127_v46 = vmax.f32 %v1505_v45, 0.0  ;;  %v3813_v53 = vpop.f32.mrb[70].mxu1 }
 0x204   :  { %3965 = vmatmul.mubr.f32.gmra.mrb[172].mxu1 %v1376_v33  ;;  %v1520_v26 = vadd.f32 %v3813_v53, %v5457_v9  ;;  %v1514_v61 = vpop.f32.mrb[71].mxu1 }
 0x205   :  { %3967 = vmatprep.mubr.f32.mxu1 %v1377_v30  ;;  %v1515_v5 = vadd.f32 %v5457_v9, %v1514_v61  ;;  %4032 = vmatprep.mubr.f32.mxu0 %v2127_v46  ;;  %v1386_v30 = vmax.f32 %v1224_v35, 0.0 }
 0x206   :  { %4033 = vmatmul.mubr.f32.gmra.mrb[68].mxu0 %v2128_v0  ;;  %v2130_v58 = vmax.f32 %v1520_v26, 0.0  ;;  %v1393_v26 = vmax.f32 %v1259_v10, 0.0 }
 0x207   :  { %v2129_v34 = vmax.f32 %v1515_v5, 0.0  ;;  %v3816_v13 = vpop.f32.mrb[72].mxu1 }
 0x208   :  { %3968 = vmatmul.mubr.f32.gmra.mrb[174].mxu1 %v1378_v2  ;;  %v1530_v18 = vadd.f32 %v3816_v13, %v5457_v9  ;;  %v1524_v52 = vpop.f32.mrb[73].mxu1 }
 0x209   :  { %3970 = vmatprep.mubr.f32.mxu1 %v1379_v19  ;;  %v1525_v11 = vadd.f32 %v5457_v9, %v1524_v52  ;;  %4035 = vmatprep.mubr.f32.mxu0 %v2129_v34  ;;  %v1244_v19 = vadd.f32 %v5480_v63, %v6307_v37 }
 0x20a   :  { %4036 = vmatmul.mubr.f32.gmra.mrb[70].mxu0 %v2130_v58  ;;  %v2132_v31 = vmax.f32 %v1530_v18, 0.0 }
 0x20b   :  { %v2131_v27 = vmax.f32 %v1525_v11, 0.0  ;;  %v3819_v21 = vpop.f32.mrb[74].mxu1  ;;  %v1390_v45 = vmax.f32 %v1244_v19, 0.0 }
 0x20c   :  { %3971 = vmatmul.mubr.f32.gmra.mrb[176].mxu1 %v1380_v36  ;;  %v1540_v60 = vadd.f32 %v3819_v21, %v5457_v9  ;;  %v1534_v33 = vpop.f32.mrb[75].mxu1  ;;  %v1254_v36 = vadd.f32 %v5480_v63, %v5360_v3  ;;  %v1264_v3 = vadd.f32 %v5480_v63, %v5368_v22 }
 0x20d   :  { %3973 = vmatprep.mubr.f32.mxu1 %v1381_v56  ;;  %v1535_v49 = vadd.f32 %v5457_v9, %v1534_v33  ;;  %4038 = vmatprep.mubr.f32.mxu0 %v2131_v27 }
 0x20e   :  { %4039 = vmatmul.mubr.f32.gmra.mrb[72].mxu0 %v2132_v31  ;;  %v2134_v24 = vmax.f32 %v1540_v60, 0.0  ;;  %v1392_v0 = vmax.f32 %v1254_v36, 0.0 }
 0x20f   :  { %v2133_v62 = vmax.f32 %v1535_v49, 0.0 }
 0x210   :  { %3974 = vmatmul.mubr.f32.gmra.mrb[178].mxu1 %v1382_v16  ;;  %v3822_v43 = vpop.f32.mrb[76].mxu1 }
 0x211   :  { %3976 = vmatprep.mubr.f32.mxu1 %v1383_v1  ;;  %v1550_v39 = vadd.f32 %v3822_v43, %v5457_v9  ;;  %v1544_v59 = vpop.f32.mrb[77].mxu1  ;;  %4041 = vmatprep.mubr.f32.mxu0 %v2133_v62  ;;  %v1394_v1 = vmax.f32 %v1264_v3, 0.0 }
 0x212   :  { %v1545_v2 = vadd.f32 %v5457_v9, %v1544_v59  ;;  %4042 = vmatmul.mubr.f32.gmra.mrb[74].mxu0 %v2134_v24 }
 0x213   :  { %v2136_v47 = vmax.f32 %v1550_v39, 0.0 }
 0x214   :  { %3977 = vmatmul.mubr.f32.gmra.mrb[180].mxu1 %v1384_v14  ;;  %v2135_v8 = vmax.f32 %v1545_v2, 0.0  ;;  %v3825_v4 = vpop.f32.mrb[78].mxu1 }
 0x215   :  { %3979 = vmatprep.mubr.f32.mxu1 %v1385_v23  ;;  %v1560_v17 = vadd.f32 %v3825_v4, %v5457_v9  ;;  %v1554_v54 = vpop.f32.mrb[79].mxu1 }
 0x216   :  { %v1555_v15 = vadd.f32 %v5457_v9, %v1554_v54  ;;  %4044 = vmatprep.mubr.f32.mxu0 %v2135_v8 }
 0x217   :  { %4045 = vmatmul.mubr.f32.gmra.mrb[76].mxu0 %v2136_v47  ;;  %v2138_v50 = vmax.f32 %v1560_v17, 0.0 }
 0x218   :  { %3980 = vmatmul.mubr.f32.gmra.mrb[182].mxu1 %v1386_v30  ;;  %v2137_v55 = vmax.f32 %v1555_v15, 0.0  ;;  %v3828_v56 = vpop.f32.mrb[80].mxu1 }
 0x219   :  { %3982 = vmatprep.mubr.f32.mxu1 %v1387_v48  ;;  %v1570_v20 = vadd.f32 %v3828_v56, %v5457_v9  ;;  %v1564_v46 = vpop.f32.mrb[81].mxu1 }
 0x21a   :  { %v1565_v53 = vadd.f32 %v5457_v9, %v1564_v46  ;;  %4047 = vmatprep.mubr.f32.mxu0 %v2137_v55 }
 0x21b   :  { %4048 = vmatmul.mubr.f32.gmra.mrb[78].mxu0 %v2138_v50  ;;  %v2140_v41 = vmax.f32 %v1570_v20, 0.0 }
 0x21c   :  { %3983 = vmatmul.mubr.f32.gmra.mrb[184].mxu1 %v1388_v57  ;;  %v2139_v61 = vmax.f32 %v1565_v53, 0.0  ;;  %v3831_v5 = vpop.f32.mrb[82].mxu1 }
 0x21d   :  { %3985 = vmatprep.mubr.f32.mxu1 %v1389_v7  ;;  %v1580_v16 = vadd.f32 %v3831_v5, %v5457_v9  ;;  %v1574_v29 = vpop.f32.mrb[83].mxu1 }
 0x21e   :  { %v1575_v12 = vadd.f32 %v5457_v9, %v1574_v29  ;;  %4050 = vmatprep.mubr.f32.mxu0 %v2139_v61 }
 0x21f   :  { %4051 = vmatmul.mubr.f32.gmra.mrb[80].mxu0 %v2140_v41  ;;  %v2142_v34 = vmax.f32 %v1580_v16, 0.0 }
 0x220   :  { %3986 = vmatmul.mubr.f32.gmra.mrb[186].mxu1 %v1390_v45  ;;  %v2141_v40 = vmax.f32 %v1575_v12, 0.0  ;;  %v3834_v44 = vpop.f32.mrb[84].mxu1 }
 0x221   :  { %3988 = vmatprep.mubr.f32.mxu1 %v1391_v32  ;;  %v1590_v22 = vadd.f32 %v3834_v44, %v5457_v9  ;;  %v1584_v63 = vpop.f32.mrb[85].mxu1 }
 0x222   :  { %v1585_v13 = vadd.f32 %v5457_v9, %v1584_v63  ;;  %4053 = vmatprep.mubr.f32.mxu0 %v2141_v40 }
 0x223   :  { %4054 = vmatmul.mubr.f32.gmra.mrb[82].mxu0 %v2142_v34  ;;  %v2144_v52 = vmax.f32 %v1590_v22, 0.0 }
 0x224   :  { %3989 = vmatmul.mubr.f32.gmra.mrb[188].mxu1 %v1392_v0  ;;  %v2143_v58 = vmax.f32 %v1585_v13, 0.0  ;;  %v3837_v18 = vpop.f32.mrb[86].mxu1 }
 0x225   :  { %3991 = vmatprep.mubr.f32.mxu1 %v1393_v26  ;;  %v1600_v11 = vadd.f32 %v3837_v18, %v5457_v9  ;;  %v1594_v14 = vpop.f32.mrb[87].mxu1 }
 0x226   :  { %v1595_v42 = vadd.f32 %v5457_v9, %v1594_v14  ;;  %4056 = vmatprep.mubr.f32.mxu0 %v2143_v58 }
 0x227   :  { %4057 = vmatmul.mubr.f32.gmra.mrb[84].mxu0 %v2144_v52  ;;  %v2146_v25 = vmax.f32 %v1600_v11, 0.0 }
 0x228   :  { %3992 = vmatmul.mubr.f32.gmra.mrb[190].mxu1 %v1394_v1  ;;  %v2145_v35 = vmax.f32 %v1595_v42, 0.0  ;;  %v3840_v23 = vpop.f32.mrb[88].mxu1 }
 0x229   :  { %v1610_v27 = vadd.f32 %v3840_v23, %v5457_v9  ;;  %v1604_v21 = vpop.f32.mrb[89].mxu1 }
 0x22a   :  { %v1605_v31 = vadd.f32 %v5457_v9, %v1604_v21  ;;  %4059 = vmatprep.mubr.f32.mxu0 %v2145_v35 }
 0x22b   :  { %4060 = vmatmul.mubr.f32.gmra.mrb[86].mxu0 %v2146_v25  ;;  %v2148_v49 = vmax.f32 %v1610_v27, 0.0 }
 0x22c   :  { %v2147_v60 = vmax.f32 %v1605_v31, 0.0  ;;  %v3843_v33 = vpop.f32.mrb[90].mxu1 }
 0x22d   :  { %v1620_v30 = vadd.f32 %v3843_v33, %v5457_v9  ;;  %v1614_v28 = vpop.f32.mrb[91].mxu1 }
 0x22e   :  { %v1615_v51 = vadd.f32 %v5457_v9, %v1614_v28  ;;  %4062 = vmatprep.mubr.f32.mxu0 %v2147_v60 }
 0x22f   :  { %4063 = vmatmul.mubr.f32.gmra.mrb[88].mxu0 %v2148_v49  ;;  %v2150_v62 = vmax.f32 %v1620_v30, 0.0 }
 0x230   :  { %v2149_v48 = vmax.f32 %v1615_v51, 0.0  ;;  %v3846_v6 = vpop.f32.mrb[92].mxu1 }
 0x231   :  { %v1630_v43 = vadd.f32 %v3846_v6, %v5457_v9  ;;  %v1624_v24 = vpop.f32.mrb[93].mxu1 }
 0x232   :  { %v1625_v39 = vadd.f32 %v5457_v9, %v1624_v24  ;;  %4065 = vmatprep.mubr.f32.mxu0 %v2149_v48 }
 0x233   :  { %4066 = vmatmul.mubr.f32.gmra.mrb[90].mxu0 %v2150_v62  ;;  %v2152_v57 = vmax.f32 %v1630_v43, 0.0 }
 0x234   :  { %v2151_v59 = vmax.f32 %v1625_v39, 0.0  ;;  %v3849_v2 = vpop.f32.mrb[94].mxu1 }
 0x235   :  { %v1640_v37 = vadd.f32 %v3849_v2, %v5457_v9  ;;  %v1634_v19 = vpop.f32.mrb[95].mxu1 }
 0x236   :  { %v1635_v7 = vadd.f32 %v5457_v9, %v1634_v19  ;;  %4068 = vmatprep.mubr.f32.mxu0 %v2151_v59 }
 0x237   :  { %4069 = vmatmul.mubr.f32.gmra.mrb[92].mxu0 %v2152_v57  ;;  %v2154_v4 = vmax.f32 %v1640_v37, 0.0 }
 0x238   :  { %v2153_v38 = vmax.f32 %v1635_v7, 0.0  ;;  %v3852_v8 = vpop.f32.mrb[96].mxu1 }
 0x239   :  { %v1650_v47 = vadd.f32 %v3852_v8, %v5457_v9  ;;  %v1644_v17 = vpop.f32.mrb[97].mxu1 }
 0x23a   :  { %v1645_v54 = vadd.f32 %v5457_v9, %v1644_v17  ;;  %4071 = vmatprep.mubr.f32.mxu0 %v2153_v38 }
 0x23b   :  { %4072 = vmatmul.mubr.f32.gmra.mrb[94].mxu0 %v2154_v4  ;;  %v2156_v36 = vmax.f32 %v1650_v47, 0.0 }
 0x23c   :  { %v2155_v15 = vmax.f32 %v1645_v54, 0.0  ;;  %v3855_v45 = vpop.f32.mrb[98].mxu1 }
 0x23d   :  { %v1660_v32 = vadd.f32 %v3855_v45, %v5457_v9  ;;  %v1654_v10 = vpop.f32.mrb[99].mxu1 }
 0x23e   :  { %v1655_v55 = vadd.f32 %v5457_v9, %v1654_v10  ;;  %4074 = vmatprep.mubr.f32.mxu0 %v2155_v15 }
 0x23f   :  { %4075 = vmatmul.mubr.f32.gmra.mrb[96].mxu0 %v2156_v36  ;;  %v2158_v20 = vmax.f32 %v1660_v32, 0.0 }
 0x240   :  { %v2157_v56 = vmax.f32 %v1655_v55, 0.0  ;;  %v3858_v50 = vpop.f32.mrb[100].mxu1 }
 0x241   :  { %v1670_v46 = vadd.f32 %v3858_v50, %v5457_v9  ;;  %v1664_v53 = vpop.f32.mrb[101].mxu1 }
 0x242   :  { %v1665_v0 = vadd.f32 %v5457_v9, %v1664_v53  ;;  %4077 = vmatprep.mubr.f32.mxu0 %v2157_v56 }
 0x243   :  { %4078 = vmatmul.mubr.f32.gmra.mrb[98].mxu0 %v2158_v20  ;;  %v2160_v61 = vmax.f32 %v1670_v46, 0.0 }
 0x244   :  { %v2159_v3 = vmax.f32 %v1665_v0, 0.0  ;;  %v3861_v26 = vpop.f32.mrb[102].mxu1 }
 0x245   :  { %v1680_v5 = vadd.f32 %v3861_v26, %v5457_v9  ;;  %v1674_v41 = vpop.f32.mrb[103].mxu1 }
 0x246   :  { %v1675_v16 = vadd.f32 %v5457_v9, %v1674_v41  ;;  %4080 = vmatprep.mubr.f32.mxu0 %v2159_v3 }
 0x247   :  { %4081 = vmatmul.mubr.f32.gmra.mrb[100].mxu0 %v2160_v61  ;;  %v2162_v1 = vmax.f32 %v1680_v5, 0.0 }
 0x248   :  { %v2161_v29 = vmax.f32 %v1675_v16, 0.0  ;;  %v3864_v12 = vpop.f32.mrb[104].mxu1 }
 0x249   :  { %v1690_v40 = vadd.f32 %v3864_v12, %v5457_v9  ;;  %v1684_v44 = vpop.f32.mrb[105].mxu1 }
 0x24a   :  { %v1685_v34 = vadd.f32 %v5457_v9, %v1684_v44  ;;  %4083 = vmatprep.mubr.f32.mxu0 %v2161_v29 }
 0x24b   :  { %4084 = vmatmul.mubr.f32.gmra.mrb[102].mxu0 %v2162_v1  ;;  %v2164_v13 = vmax.f32 %v1690_v40, 0.0 }
 0x24c   :  { %v2163_v22 = vmax.f32 %v1685_v34, 0.0  ;;  %v3867_v63 = vpop.f32.mrb[106].mxu1 }
 0x24d   :  { %v1700_v58 = vadd.f32 %v3867_v63, %v5457_v9  ;;  %v1694_v18 = vpop.f32.mrb[107].mxu1 }
 0x24e   :  { %v1695_v52 = vadd.f32 %v5457_v9, %v1694_v18  ;;  %4086 = vmatprep.mubr.f32.mxu0 %v2163_v22 }
 0x24f   :  { %4087 = vmatmul.mubr.f32.gmra.mrb[104].mxu0 %v2164_v13  ;;  %v2166_v42 = vmax.f32 %v1700_v58, 0.0 }
 0x250   :  { %v2165_v11 = vmax.f32 %v1695_v52, 0.0  ;;  %v3870_v14 = vpop.f32.mrb[108].mxu1 }
 0x251   :  { %v1710_v35 = vadd.f32 %v3870_v14, %v5457_v9  ;;  %v1704_v23 = vpop.f32.mrb[109].mxu1 }
 0x252   :  { %v1705_v25 = vadd.f32 %v5457_v9, %v1704_v23  ;;  %4089 = vmatprep.mubr.f32.mxu0 %v2165_v11 }
 0x253   :  { %4090 = vmatmul.mubr.f32.gmra.mrb[106].mxu0 %v2166_v42  ;;  %v2168_v31 = vmax.f32 %v1710_v35, 0.0 }
 0x254   :  { %v2167_v27 = vmax.f32 %v1705_v25, 0.0  ;;  %v3873_v21 = vpop.f32.mrb[110].mxu1 }
 0x255   :  { %v1720_v60 = vadd.f32 %v3873_v21, %v5457_v9  ;;  %v1714_v33 = vpop.f32.mrb[111].mxu1 }
 0x256   :  { %v1715_v49 = vadd.f32 %v5457_v9, %v1714_v33  ;;  %4092 = vmatprep.mubr.f32.mxu0 %v2167_v27 }
 0x257   :  { %4093 = vmatmul.mubr.f32.gmra.mrb[108].mxu0 %v2168_v31  ;;  %v2170_v51 = vmax.f32 %v1720_v60, 0.0 }
 0x258   :  { %v2169_v30 = vmax.f32 %v1715_v49, 0.0  ;;  %v3876_v28 = vpop.f32.mrb[112].mxu1 }
 0x259   :  { %v1730_v48 = vadd.f32 %v3876_v28, %v5457_v9  ;;  %v1724_v6 = vpop.f32.mrb[113].mxu1 }
 0x25a   :  { %v1725_v62 = vadd.f32 %v5457_v9, %v1724_v6  ;;  %4095 = vmatprep.mubr.f32.mxu0 %v2169_v30 }
 0x25b   :  { %4096 = vmatmul.mubr.f32.gmra.mrb[110].mxu0 %v2170_v51  ;;  %v2172_v39 = vmax.f32 %v1730_v48, 0.0 }
 0x25c   :  { %v2171_v43 = vmax.f32 %v1725_v62, 0.0  ;;  %v3879_v24 = vpop.f32.mrb[114].mxu1 }
 0x25d   :  { %v1740_v59 = vadd.f32 %v3879_v24, %v5457_v9  ;;  %v1734_v2 = vpop.f32.mrb[115].mxu1 }
 0x25e   :  { %v1735_v57 = vadd.f32 %v5457_v9, %v1734_v2  ;;  %4098 = vmatprep.mubr.f32.mxu0 %v2171_v43 }
 0x25f   :  { %4099 = vmatmul.mubr.f32.gmra.mrb[112].mxu0 %v2172_v39  ;;  %v2174_v7 = vmax.f32 %v1740_v59, 0.0 }
 0x260   :  { %v2173_v37 = vmax.f32 %v1735_v57, 0.0  ;;  %v3882_v19 = vpop.f32.mrb[116].mxu1 }
 0x261   :  { %v1750_v38 = vadd.f32 %v3882_v19, %v5457_v9  ;;  %v1744_v8 = vpop.f32.mrb[117].mxu1 }
 0x262   :  { %v1745_v4 = vadd.f32 %v5457_v9, %v1744_v8  ;;  %4101 = vmatprep.mubr.f32.mxu0 %v2173_v37 }
 0x263   :  { %4102 = vmatmul.mubr.f32.gmra.mrb[114].mxu0 %v2174_v7  ;;  %v2176_v54 = vmax.f32 %v1750_v38, 0.0 }
 0x264   :  { %v2175_v47 = vmax.f32 %v1745_v4, 0.0 }
 0x266   :  { %4104 = vmatprep.mubr.f32.mxu0 %v2175_v47 }
 0x267   :  { %4105 = vmatmul.mubr.f32.gmra.mrb[116].mxu0 %v2176_v54 }
 0x26b   :  { %v3885_v17 = vpop.f32.mrb[118].mxu1 }
 0x26c   :  { %v1760_v15 = vadd.f32 %v3885_v17, %v5457_v9  ;;  %v1754_v45 = vpop.f32.mrb[119].mxu1 }
 0x26d   :  { %v1755_v36 = vadd.f32 %v5457_v9, %v1754_v45 }
 0x26e   :  { %v2178_v55 = vmax.f32 %v1760_v15, 0.0 }
 0x26f   :  { %v2177_v32 = vmax.f32 %v1755_v36, 0.0  ;;  %v3888_v10 = vpop.f32.mrb[120].mxu1 }
 0x270   :  { %v1770_v56 = vadd.f32 %v3888_v10, %v5457_v9  ;;  %v1764_v50 = vpop.f32.mrb[121].mxu1 }
 0x271   :  { %v1765_v20 = vadd.f32 %v5457_v9, %v1764_v50  ;;  %4107 = vmatprep.mubr.f32.mxu0 %v2177_v32 }
 0x272   :  { %4108 = vmatmul.mubr.f32.gmra.mrb[118].mxu0 %v2178_v55  ;;  %v2180_v0 = vmax.f32 %v1770_v56, 0.0 }
 0x273   :  { %v2179_v46 = vmax.f32 %v1765_v20, 0.0  ;;  %v3891_v53 = vpop.f32.mrb[122].mxu1 }
 0x274   :  { %v1780_v3 = vadd.f32 %v3891_v53, %v5457_v9  ;;  %v1774_v26 = vpop.f32.mrb[123].mxu1 }
 0x275   :  { %v1775_v61 = vadd.f32 %v5457_v9, %v1774_v26  ;;  %4110 = vmatprep.mubr.f32.mxu0 %v2179_v46 }
 0x276   :  { %4111 = vmatmul.mubr.f32.gmra.mrb[120].mxu0 %v2180_v0  ;;  %v2182_v16 = vmax.f32 %v1780_v3, 0.0 }
 0x277   :  { %v2181_v5 = vmax.f32 %v1775_v61, 0.0  ;;  %v3894_v41 = vpop.f32.mrb[124].mxu1 }
 0x278   :  { %v1790_v29 = vadd.f32 %v3894_v41, %v5457_v9  ;;  %v1784_v12 = vpop.f32.mrb[125].mxu1 }
 0x279   :  { %v1785_v1 = vadd.f32 %v5457_v9, %v1784_v12  ;;  %4113 = vmatprep.mubr.f32.mxu0 %v2181_v5 }
 0x27a   :  { %4114 = vmatmul.mubr.f32.gmra.mrb[122].mxu0 %v2182_v16  ;;  %v2184_v34 = vmax.f32 %v1790_v29, 0.0 }
 0x27b   :  { %v2183_v40 = vmax.f32 %v1785_v1, 0.0  ;;  %v3897_v44 = vpop.f32.mrb[126].mxu1 }
 0x27c   :  { %v1800_v22 = vadd.f32 %v3897_v44, %v5457_v9  ;;  %v1794_v63 = vpop.f32.mrb[127].mxu1 }
 0x27d   :  { %v1795_v13 = vadd.f32 %v5457_v9, %v1794_v63  ;;  %4116 = vmatprep.mubr.f32.mxu0 %v2183_v40 }
 0x27e   :  { %4117 = vmatmul.mubr.f32.gmra.mrb[124].mxu0 %v2184_v34  ;;  %v2186_v52 = vmax.f32 %v1800_v22, 0.0 }
 0x27f   :  { %v2185_v58 = vmax.f32 %v1795_v13, 0.0  ;;  %v3900_v18 = vpop.f32.mrb[128].mxu1 }
 0x280   :  { %v1810_v11 = vadd.f32 %v3900_v18, %v5457_v9  ;;  %v1804_v14 = vpop.f32.mrb[129].mxu1 }
 0x281   :  { %v1805_v42 = vadd.f32 %v5457_v9, %v1804_v14  ;;  %4119 = vmatprep.mubr.f32.mxu0 %v2185_v58 }
 0x282   :  { %4120 = vmatmul.mubr.f32.gmra.mrb[126].mxu0 %v2186_v52  ;;  %v2188_v25 = vmax.f32 %v1810_v11, 0.0 }
 0x283   :  { %v2187_v35 = vmax.f32 %v1805_v42, 0.0  ;;  %v3903_v23 = vpop.f32.mrb[130].mxu1 }
 0x284   :  { %v1820_v27 = vadd.f32 %v3903_v23, %v5457_v9  ;;  %v1814_v21 = vpop.f32.mrb[131].mxu1 }
 0x285   :  { %v1815_v31 = vadd.f32 %v5457_v9, %v1814_v21  ;;  %4122 = vmatprep.mubr.f32.mxu0 %v2187_v35 }
 0x286   :  { %4123 = vmatmul.mubr.f32.gmra.mrb[128].mxu0 %v2188_v25  ;;  %v2190_v49 = vmax.f32 %v1820_v27, 0.0 }
 0x287   :  { %v2189_v60 = vmax.f32 %v1815_v31, 0.0  ;;  %v3906_v33 = vpop.f32.mrb[132].mxu1 }
 0x288   :  { %v1830_v30 = vadd.f32 %v3906_v33, %v5457_v9  ;;  %v1824_v28 = vpop.f32.mrb[133].mxu1 }
 0x289   :  { %v1825_v51 = vadd.f32 %v5457_v9, %v1824_v28  ;;  %4125 = vmatprep.mubr.f32.mxu0 %v2189_v60 }
 0x28a   :  { %4126 = vmatmul.mubr.f32.gmra.mrb[130].mxu0 %v2190_v49  ;;  %v2192_v62 = vmax.f32 %v1830_v30, 0.0 }
 0x28b   :  { %v2191_v48 = vmax.f32 %v1825_v51, 0.0  ;;  %v3909_v6 = vpop.f32.mrb[134].mxu1 }
 0x28c   :  { %v1840_v43 = vadd.f32 %v3909_v6, %v5457_v9  ;;  %v1834_v24 = vpop.f32.mrb[135].mxu1 }
 0x28d   :  { %v1835_v39 = vadd.f32 %v5457_v9, %v1834_v24  ;;  %4128 = vmatprep.mubr.f32.mxu0 %v2191_v48 }
 0x28e   :  { %4129 = vmatmul.mubr.f32.gmra.mrb[132].mxu0 %v2192_v62  ;;  %v2194_v57 = vmax.f32 %v1840_v43, 0.0 }
 0x28f   :  { %v2193_v59 = vmax.f32 %v1835_v39, 0.0  ;;  %v3912_v2 = vpop.f32.mrb[136].mxu1 }
 0x290   :  { %v1850_v37 = vadd.f32 %v3912_v2, %v5457_v9  ;;  %v1844_v19 = vpop.f32.mrb[137].mxu1 }
 0x291   :  { %v1845_v7 = vadd.f32 %v5457_v9, %v1844_v19  ;;  %4131 = vmatprep.mubr.f32.mxu0 %v2193_v59 }
 0x292   :  { %4132 = vmatmul.mubr.f32.gmra.mrb[134].mxu0 %v2194_v57  ;;  %v2196_v4 = vmax.f32 %v1850_v37, 0.0 }
 0x293   :  { %v2195_v38 = vmax.f32 %v1845_v7, 0.0  ;;  %v3915_v8 = vpop.f32.mrb[138].mxu1 }
 0x294   :  { %v1860_v47 = vadd.f32 %v3915_v8, %v5457_v9  ;;  %v1854_v17 = vpop.f32.mrb[139].mxu1 }
 0x295   :  { %v1855_v54 = vadd.f32 %v5457_v9, %v1854_v17  ;;  %4134 = vmatprep.mubr.f32.mxu0 %v2195_v38 }
 0x296   :  { %4135 = vmatmul.mubr.f32.gmra.mrb[136].mxu0 %v2196_v4  ;;  %v2198_v36 = vmax.f32 %v1860_v47, 0.0 }
 0x297   :  { %v2197_v15 = vmax.f32 %v1855_v54, 0.0  ;;  %v3918_v45 = vpop.f32.mrb[140].mxu1 }
 0x298   :  { %v1870_v32 = vadd.f32 %v3918_v45, %v5457_v9  ;;  %v1864_v10 = vpop.f32.mrb[141].mxu1 }
 0x299   :  { %v1865_v55 = vadd.f32 %v5457_v9, %v1864_v10  ;;  %4137 = vmatprep.mubr.f32.mxu0 %v2197_v15 }
 0x29a   :  { %4138 = vmatmul.mubr.f32.gmra.mrb[138].mxu0 %v2198_v36  ;;  %v2200_v20 = vmax.f32 %v1870_v32, 0.0 }
 0x29b   :  { %v2199_v56 = vmax.f32 %v1865_v55, 0.0  ;;  %v3921_v50 = vpop.f32.mrb[142].mxu1 }
 0x29c   :  { %v1880_v46 = vadd.f32 %v3921_v50, %v5457_v9  ;;  %v1874_v53 = vpop.f32.mrb[143].mxu1 }
 0x29d   :  { %v1875_v0 = vadd.f32 %v5457_v9, %v1874_v53  ;;  %4140 = vmatprep.mubr.f32.mxu0 %v2199_v56 }
 0x29e   :  { %4141 = vmatmul.mubr.f32.gmra.mrb[140].mxu0 %v2200_v20  ;;  %v2202_v61 = vmax.f32 %v1880_v46, 0.0 }
 0x29f   :  { %v2201_v3 = vmax.f32 %v1875_v0, 0.0  ;;  %v3924_v26 = vpop.f32.mrb[144].mxu1 }
 0x2a0   :  { %v1890_v5 = vadd.f32 %v3924_v26, %v5457_v9  ;;  %v1884_v41 = vpop.f32.mrb[145].mxu1 }
 0x2a1   :  { %v1885_v16 = vadd.f32 %v5457_v9, %v1884_v41  ;;  %4143 = vmatprep.mubr.f32.mxu0 %v2201_v3 }
 0x2a2   :  { %4144 = vmatmul.mubr.f32.gmra.mrb[142].mxu0 %v2202_v61  ;;  %v2204_v1 = vmax.f32 %v1890_v5, 0.0 }
 0x2a3   :  { %v2203_v29 = vmax.f32 %v1885_v16, 0.0  ;;  %v3927_v12 = vpop.f32.mrb[146].mxu1 }
 0x2a4   :  { %v1900_v40 = vadd.f32 %v3927_v12, %v5457_v9  ;;  %v1894_v44 = vpop.f32.mrb[147].mxu1 }
 0x2a5   :  { %v1895_v34 = vadd.f32 %v5457_v9, %v1894_v44  ;;  %4146 = vmatprep.mubr.f32.mxu0 %v2203_v29 }
 0x2a6   :  { %4147 = vmatmul.mubr.f32.gmra.mrb[144].mxu0 %v2204_v1  ;;  %v2206_v13 = vmax.f32 %v1900_v40, 0.0 }
 0x2a7   :  { %v2205_v22 = vmax.f32 %v1895_v34, 0.0  ;;  %v3930_v63 = vpop.f32.mrb[148].mxu1 }
 0x2a8   :  { %v1910_v58 = vadd.f32 %v3930_v63, %v5457_v9  ;;  %v1904_v18 = vpop.f32.mrb[149].mxu1 }
 0x2a9   :  { %v1905_v52 = vadd.f32 %v5457_v9, %v1904_v18  ;;  %4149 = vmatprep.mubr.f32.mxu0 %v2205_v22 }
 0x2aa   :  { %4150 = vmatmul.mubr.f32.gmra.mrb[146].mxu0 %v2206_v13  ;;  %v2208_v42 = vmax.f32 %v1910_v58, 0.0 }
 0x2ab   :  { %v2207_v11 = vmax.f32 %v1905_v52, 0.0  ;;  %v3933_v14 = vpop.f32.mrb[150].mxu1 }
 0x2ac   :  { %v1920_v35 = vadd.f32 %v3933_v14, %v5457_v9  ;;  %v1914_v23 = vpop.f32.mrb[151].mxu1 }
 0x2ad   :  { %v1915_v25 = vadd.f32 %v5457_v9, %v1914_v23  ;;  %4152 = vmatprep.mubr.f32.mxu0 %v2207_v11 }
 0x2ae   :  { %4153 = vmatmul.mubr.f32.gmra.mrb[148].mxu0 %v2208_v42  ;;  %v2210_v31 = vmax.f32 %v1920_v35, 0.0 }
 0x2af   :  { %v2209_v27 = vmax.f32 %v1915_v25, 0.0  ;;  %v3936_v21 = vpop.f32.mrb[152].mxu1  ;;  %v5613_v25 = vld [vmem:[%s6286_s6] ss:$0 sm:$0xff] }
 0x2b0   :  { %v1930_v60 = vadd.f32 %v3936_v21, %v5457_v9  ;;  %v1924_v33 = vpop.f32.mrb[153].mxu1 }
 0x2b1   :  { %v1925_v49 = vadd.f32 %v5457_v9, %v1924_v33  ;;  %4155 = vmatprep.mubr.f32.mxu0 %v2209_v27 }
 0x2b2   :  { %4156 = vmatmul.mubr.f32.gmra.mrb[150].mxu0 %v2210_v31  ;;  %v2212_v51 = vmax.f32 %v1930_v60, 0.0 }
 0x2b3   :  { %v2211_v30 = vmax.f32 %v1925_v49, 0.0  ;;  %v3939_v28 = vpop.f32.mrb[154].mxu1 }
 0x2b4   :  { %v1940_v48 = vadd.f32 %v3939_v28, %v5457_v9  ;;  %v1934_v6 = vpop.f32.mrb[155].mxu1 }
 0x2b5   :  { %v1935_v62 = vadd.f32 %v5457_v9, %v1934_v6  ;;  %4158 = vmatprep.mubr.f32.mxu0 %v2211_v30 }
 0x2b6   :  { %4159 = vmatmul.mubr.f32.gmra.mrb[152].mxu0 %v2212_v51  ;;  %v2214_v39 = vmax.f32 %v1940_v48, 0.0 }
 0x2b7   :  { %v2213_v43 = vmax.f32 %v1935_v62, 0.0  ;;  %v3942_v24 = vpop.f32.mrb[156].mxu1 }
 0x2b8   :  { %v1950_v59 = vadd.f32 %v3942_v24, %v5457_v9  ;;  %v1944_v2 = vpop.f32.mrb[157].mxu1  ;;  %v5631_v24 = vld [vmem:[%s6285_s4] ss:$0 sm:$0xff] }
 0x2b9   :  { %v1945_v57 = vadd.f32 %v5457_v9, %v1944_v2  ;;  %4161 = vmatprep.mubr.f32.mxu0 %v2213_v43 }
 0x2ba   :  { %4162 = vmatmul.mubr.f32.gmra.mrb[154].mxu0 %v2214_v39  ;;  %v2216_v7 = vmax.f32 %v1950_v59, 0.0 }
 0x2bb   :  { %v2215_v37 = vmax.f32 %v1945_v57, 0.0  ;;  %v3945_v19 = vpop.f32.mrb[158].mxu1 }
 0x2bc   :  { %v1960_v38 = vadd.f32 %v3945_v19, %v5457_v9  ;;  %v1954_v8 = vpop.f32.mrb[159].mxu1 }
 0x2bd   :  { %v1955_v4 = vadd.f32 %v5457_v9, %v1954_v8  ;;  %4164 = vmatprep.mubr.f32.mxu0 %v2215_v37 }
 0x2be   :  { %4165 = vmatmul.mubr.f32.gmra.mrb[156].mxu0 %v2216_v7  ;;  %v2218_v54 = vmax.f32 %v1960_v38, 0.0 }
 0x2bf   :  { %v2217_v47 = vmax.f32 %v1955_v4, 0.0  ;;  %v3948_v17 = vpop.f32.mrb[160].mxu1 }
 0x2c0   :  { %v1970_v15 = vadd.f32 %v3948_v17, %v5457_v9  ;;  %v1964_v45 = vpop.f32.mrb[161].mxu1 }
 0x2c1   :  { %v1965_v36 = vadd.f32 %v5457_v9, %v1964_v45  ;;  %4167 = vmatprep.mubr.f32.mxu0 %v2217_v47 }
 0x2c2   :  { %4168 = vmatmul.mubr.f32.gmra.mrb[158].mxu0 %v2218_v54  ;;  %v2220_v55 = vmax.f32 %v1970_v15, 0.0 }
 0x2c3   :  { %v2219_v32 = vmax.f32 %v1965_v36, 0.0  ;;  %v3951_v10 = vpop.f32.mrb[162].mxu1 }
 0x2c4   :  { %v1980_v56 = vadd.f32 %v3951_v10, %v5457_v9  ;;  %v1974_v50 = vpop.f32.mrb[163].mxu1 }
 0x2c5   :  { %v1975_v20 = vadd.f32 %v5457_v9, %v1974_v50  ;;  %4170 = vmatprep.mubr.f32.mxu0 %v2219_v32 }
 0x2c6   :  { %4171 = vmatmul.mubr.f32.gmra.mrb[160].mxu0 %v2220_v55  ;;  %v2222_v0 = vmax.f32 %v1980_v56, 0.0 }
 0x2c7   :  { %v2221_v46 = vmax.f32 %v1975_v20, 0.0  ;;  %v3954_v53 = vpop.f32.mrb[164].mxu1 }
 0x2c8   :  { %v1990_v3 = vadd.f32 %v3954_v53, %v5457_v9  ;;  %v1984_v26 = vpop.f32.mrb[165].mxu1 }
 0x2c9   :  { %v1985_v61 = vadd.f32 %v5457_v9, %v1984_v26  ;;  %4173 = vmatprep.mubr.f32.mxu0 %v2221_v46 }
 0x2ca   :  { %4174 = vmatmul.mubr.f32.gmra.mrb[162].mxu0 %v2222_v0  ;;  %v2224_v16 = vmax.f32 %v1990_v3, 0.0 }
 0x2cb   :  { %v2223_v5 = vmax.f32 %v1985_v61, 0.0  ;;  %v3957_v41 = vpop.f32.mrb[166].mxu1 }
 0x2cc   :  { %v2000_v29 = vadd.f32 %v3957_v41, %v5457_v9  ;;  %v1994_v12 = vpop.f32.mrb[167].mxu1 }
 0x2cd   :  { %v1995_v1 = vadd.f32 %v5457_v9, %v1994_v12  ;;  %4176 = vmatprep.mubr.f32.mxu0 %v2223_v5 }
 0x2ce   :  { %4177 = vmatmul.mubr.f32.gmra.mrb[164].mxu0 %v2224_v16  ;;  %v2226_v34 = vmax.f32 %v2000_v29, 0.0 }
 0x2cf   :  { %v2225_v40 = vmax.f32 %v1995_v1, 0.0  ;;  %v3960_v44 = vpop.f32.mrb[168].mxu1 }
 0x2d0   :  { %v2010_v22 = vadd.f32 %v3960_v44, %v5457_v9  ;;  %v2004_v63 = vpop.f32.mrb[169].mxu1 }
 0x2d1   :  { %v2005_v13 = vadd.f32 %v5457_v9, %v2004_v63  ;;  %4179 = vmatprep.mubr.f32.mxu0 %v2225_v40  ;;  %v4028_v33 = vpop.f32.mrb[64].mxu0 }
 0x2d2   :  { %4180 = vmatmul.mubr.f32.gmra.mrb[166].mxu0 %v2226_v34  ;;  %v2228_v52 = vmax.f32 %v2010_v22, 0.0  ;;  %v2346_v49 = vadd.f32 %v4028_v33, %v5613_v25  ;;  %v2340_v30 = vpop.f32.mrb[65].mxu0 }
 0x2d3   :  { %v2227_v58 = vmax.f32 %v2005_v13, 0.0  ;;  %v3963_v18 = vpop.f32.mrb[170].mxu1  ;;  %v2341_v51 = vadd.f32 %v5613_v25, %v2340_v30 }
 0x2d4   :  { %v2020_v11 = vadd.f32 %v3963_v18, %v5457_v9  ;;  %v2014_v14 = vpop.f32.mrb[171].mxu1  ;;  %2980 = vst.msk [vmem:[%s6287_s7 + $0x8] sm:$0xff] %vm282_vm0, %v2346_v49 }
 0x2d5   :  { %v2015_v42 = vadd.f32 %v5457_v9, %v2014_v14  ;;  %4182 = vmatprep.mubr.f32.mxu0 %v2227_v58  ;;  %2979 = vst.msk [vmem:[%s6287_s7] sm:$0xff] %vm282_vm0, %v2341_v51  ;;  %v4031_v59 = vpop.f32.mrb[66].mxu0 }
 0x2d6   :  { %4183 = vmatmul.mubr.f32.gmra.mrb[168].mxu0 %v2228_v52  ;;  %v2230_v27 = vmax.f32 %v2020_v11, 0.0  ;;  %v2356_v2 = vadd.f32 %v4031_v59, %v5613_v25  ;;  %v2350_v57 = vpop.f32.mrb[67].mxu0 }
 0x2d7   :  { %v2229_v35 = vmax.f32 %v2015_v42, 0.0  ;;  %v3966_v23 = vpop.f32.mrb[172].mxu1  ;;  %v2351_v37 = vadd.f32 %v5613_v25, %v2350_v57 }
 0x2d8   :  { %v2030_v21 = vadd.f32 %v3966_v23, %v5457_v9  ;;  %v2024_v31 = vpop.f32.mrb[173].mxu1  ;;  %2982 = vst.msk [vmem:[%s6287_s7 + $0x18] sm:$0xff] %vm282_vm0, %v2356_v2 }
 0x2d9   :  { %v2025_v60 = vadd.f32 %v5457_v9, %v2024_v31  ;;  %4185 = vmatprep.mubr.f32.mxu0 %v2229_v35  ;;  %2981 = vst.msk [vmem:[%s6287_s7 + $0x10] sm:$0xff] %vm282_vm0, %v2351_v37  ;;  %v4034_v47 = vpop.f32.mrb[68].mxu0 }
 0x2da   :  { %4186 = vmatmul.mubr.f32.gmra.mrb[170].mxu0 %v2230_v27  ;;  %v2232_v6 = vmax.f32 %v2030_v21, 0.0  ;;  %v2366_v17 = vadd.f32 %v4034_v47, %v5613_v25  ;;  %v2360_v54 = vpop.f32.mrb[69].mxu0 }
 0x2db   :  { %v2231_v28 = vmax.f32 %v2025_v60, 0.0  ;;  %v3969_v48 = vpop.f32.mrb[174].mxu1  ;;  %v2361_v45 = vadd.f32 %v5613_v25, %v2360_v54 }
 0x2dc   :  { %v2040_v62 = vadd.f32 %v3969_v48, %v5457_v9  ;;  %v2034_v43 = vpop.f32.mrb[175].mxu1  ;;  %2984 = vst.msk [vmem:[%s6287_s7 + $0x28] sm:$0xff] %vm282_vm0, %v2366_v17 }
 0x2dd   :  { %v2035_v39 = vadd.f32 %v5631_v24, %v2034_v43  ;;  %4188 = vmatprep.mubr.f32.mxu0 %v2231_v28  ;;  %2983 = vst.msk [vmem:[%s6287_s7 + $0x20] sm:$0xff] %vm282_vm0, %v2361_v45  ;;  %v4037_v50 = vpop.f32.mrb[70].mxu0 }
 0x2de   :  { %4189 = vmatmul.mubr.f32.gmra.mrb[172].mxu0 %v2232_v6  ;;  %v2234_v7 = vmax.f32 %v2040_v62, 0.0  ;;  %v2376_v20 = vadd.f32 %v4037_v50, %v5613_v25  ;;  %v2370_v46 = vpop.f32.mrb[71].mxu0 }
 0x2df   :  { %v2233_v9 = vmax.f32 %v2035_v39, 0.0  ;;  %v3972_v19 = vpop.f32.mrb[176].mxu1  ;;  %v2371_v0 = vadd.f32 %v5613_v25, %v2370_v46 }
 0x2e0   :  { %v2050_v38 = vadd.f32 %v5631_v24, %v3972_v19  ;;  %v2044_v8 = vpop.f32.mrb[177].mxu1  ;;  %2986 = vst.msk [vmem:[%s6287_s7 + $0x38] sm:$0xff] %vm282_vm0, %v2376_v20 }
 0x2e1   :  { %v2045_v4 = vadd.f32 %v5631_v24, %v2044_v8  ;;  %4191 = vmatprep.mubr.f32.mxu0 %v2233_v9  ;;  %2985 = vst.msk [vmem:[%s6287_s7 + $0x30] sm:$0xff] %vm282_vm0, %v2371_v0  ;;  %v4040_v16 = vpop.f32.mrb[72].mxu0 }
 0x2e2   :  { %4192 = vmatmul.mubr.f32.gmra.mrb[174].mxu0 %v2234_v7  ;;  %v2236_v32 = vmax.f32 %v2050_v38, 0.0  ;;  %v2386_v29 = vadd.f32 %v4040_v16, %v5613_v25  ;;  %v2380_v12 = vpop.f32.mrb[73].mxu0 }
 0x2e3   :  { %v2235_v15 = vmax.f32 %v2045_v4, 0.0  ;;  %v3975_v36 = vpop.f32.mrb[178].mxu1  ;;  %v2381_v40 = vadd.f32 %v5613_v25, %v2380_v12 }
 0x2e4   :  { %v2060_v10 = vadd.f32 %v5631_v24, %v3975_v36  ;;  %v2054_v55 = vpop.f32.mrb[179].mxu1  ;;  %2988 = vst.msk [vmem:[%s6287_s7 + $0x48] sm:$0xff] %vm282_vm0, %v2386_v29 }
 0x2e5   :  { %v2055_v56 = vadd.f32 %v5631_v24, %v2054_v55  ;;  %4194 = vmatprep.mubr.f32.mxu0 %v2235_v15  ;;  %2987 = vst.msk [vmem:[%s6287_s7 + $0x40] sm:$0xff] %vm282_vm0, %v2381_v40  ;;  %v4043_v58 = vpop.f32.mrb[74].mxu0 }
 0x2e6   :  { %4195 = vmatmul.mubr.f32.gmra.mrb[176].mxu0 %v2236_v32  ;;  %v2238_v26 = vmax.f32 %v2060_v10, 0.0  ;;  %v2396_v18 = vadd.f32 %v4043_v58, %v5613_v25  ;;  %v2390_v52 = vpop.f32.mrb[75].mxu0 }
 0x2e7   :  { %v2237_v53 = vmax.f32 %v2055_v56, 0.0  ;;  %v3978_v3 = vpop.f32.mrb[180].mxu1  ;;  %v2391_v14 = vadd.f32 %v5613_v25, %v2390_v52 }
 0x2e8   :  { %v2070_v61 = vadd.f32 %v5631_v24, %v3978_v3  ;;  %v2064_v5 = vpop.f32.mrb[181].mxu1  ;;  %2990 = vst.msk [vmem:[%s6287_s7 + $0x58] sm:$0xff] %vm282_vm0, %v2396_v18 }
 0x2e9   :  { %v2065_v41 = vadd.f32 %v5631_v24, %v2064_v5  ;;  %4197 = vmatprep.mubr.f32.mxu0 %v2237_v53  ;;  %2989 = vst.msk [vmem:[%s6287_s7 + $0x50] sm:$0xff] %vm282_vm0, %v2391_v14 }
 0x2ea   :  { %4198 = vmatmul.mubr.f32.gmra.mrb[178].mxu0 %v2238_v26  ;;  %v2240_v34 = vmax.f32 %v2070_v61, 0.0  ;;  %v4046_v31 = vpop.f32.mrb[76].mxu0 }
 0x2eb   :  { %v2239_v1 = vmax.f32 %v2065_v41, 0.0  ;;  %v3981_v44 = vpop.f32.mrb[182].mxu1  ;;  %v2406_v60 = vadd.f32 %v4046_v31, %v5613_v25  ;;  %v2400_v33 = vpop.f32.mrb[77].mxu0 }
 0x2ec   :  { %v2080_v22 = vadd.f32 %v5631_v24, %v3981_v44  ;;  %v2074_v63 = vpop.f32.mrb[183].mxu1  ;;  %v2401_v30 = vadd.f32 %v5613_v25, %v2400_v33 }
 0x2ed   :  { %v2075_v13 = vadd.f32 %v5631_v24, %v2074_v63  ;;  %4200 = vmatprep.mubr.f32.mxu0 %v2239_v1  ;;  %2992 = vst.msk [vmem:[%s6287_s7 + $0x68] sm:$0xff] %vm282_vm0, %v2406_v60 }
 0x2ee   :  { %4201 = vmatmul.mubr.f32.gmra.mrb[180].mxu0 %v2240_v34  ;;  %v2242_v35 = vmax.f32 %v2080_v22, 0.0  ;;  %2991 = vst.msk [vmem:[%s6287_s7 + $0x60] sm:$0xff] %vm282_vm0, %v2401_v30  ;;  %v4049_v43 = vpop.f32.mrb[78].mxu0 }
 0x2ef   :  { %v2241_v11 = vmax.f32 %v2075_v13, 0.0  ;;  %v3984_v42 = vpop.f32.mrb[184].mxu1  ;;  %v2416_v39 = vadd.f32 %v4049_v43, %v5613_v25  ;;  %v2410_v59 = vpop.f32.mrb[79].mxu0 }
 0x2f0   :  { %v2090_v23 = vadd.f32 %v5631_v24, %v3984_v42  ;;  %v2084_v27 = vpop.f32.mrb[185].mxu1  ;;  %v2411_v57 = vadd.f32 %v5613_v25, %v2410_v59 }
 0x2f1   :  { %v2085_v21 = vadd.f32 %v5631_v24, %v2084_v27  ;;  %4203 = vmatprep.mubr.f32.mxu0 %v2241_v11  ;;  %2994 = vst.msk [vmem:[%s6287_s7 + $0x78] sm:$0xff] %vm282_vm0, %v2416_v39 }
 0x2f2   :  { %4204 = vmatmul.mubr.f32.gmra.mrb[182].mxu0 %v2242_v35  ;;  %v2244_v51 = vmax.f32 %v2090_v23, 0.0  ;;  %2993 = vst.msk [vmem:[%s6287_s7 + $0x70] sm:$0xff] %vm282_vm0, %v2411_v57  ;;  %v4052_v8 = vpop.f32.mrb[80].mxu0 }
 0x2f3   :  { %v2243_v49 = vmax.f32 %v2085_v21, 0.0  ;;  %v3987_v28 = vpop.f32.mrb[186].mxu1  ;;  %v2426_v4 = vadd.f32 %v4052_v8, %v5613_v25  ;;  %v2420_v47 = vpop.f32.mrb[81].mxu0 }
 0x2f4   :  { %v2100_v48 = vadd.f32 %v5631_v24, %v3987_v28  ;;  %v2094_v6 = vpop.f32.mrb[187].mxu1  ;;  %v2421_v54 = vadd.f32 %v5613_v25, %v2420_v47 }
 0x2f5   :  { %v2095_v62 = vadd.f32 %v5631_v24, %v2094_v6  ;;  %4206 = vmatprep.mubr.f32.mxu0 %v2243_v49  ;;  %2996 = vst.msk [vmem:[%s6287_s7 + $0x88] sm:$0xff] %vm282_vm0, %v2426_v4 }
 0x2f6   :  { %4207 = vmatmul.mubr.f32.gmra.mrb[184].mxu0 %v2244_v51  ;;  %v2246_v37 = vmax.f32 %v2100_v48, 0.0  ;;  %2995 = vst.msk [vmem:[%s6287_s7 + $0x80] sm:$0xff] %vm282_vm0, %v2421_v54  ;;  %v4055_v55 = vpop.f32.mrb[82].mxu0 }
 0x2f7   :  { %v2245_v2 = vmax.f32 %v2095_v62, 0.0  ;;  %v3990_v9 = vpop.f32.mrb[188].mxu1  ;;  %v2436_v56 = vadd.f32 %v4055_v55, %v5613_v25  ;;  %v2430_v50 = vpop.f32.mrb[83].mxu0 }
 0x2f8   :  { %v2110_v19 = vadd.f32 %v5631_v24, %v3990_v9  ;;  %v2104_v7 = vpop.f32.mrb[189].mxu1  ;;  %v2431_v46 = vadd.f32 %v5613_v25, %v2430_v50 }
 0x2f9   :  { %v2105_v38 = vadd.f32 %v5631_v24, %v2104_v7  ;;  %4209 = vmatprep.mubr.f32.mxu0 %v2245_v2  ;;  %2998 = vst.msk [vmem:[%s6287_s7 + $0x98] sm:$0xff] %vm282_vm0, %v2436_v56 }
 0x2fa   :  { %4210 = vmatmul.mubr.f32.gmra.mrb[186].mxu0 %v2246_v37  ;;  %v2248_v45 = vmax.f32 %v2110_v19, 0.0  ;;  %2997 = vst.msk [vmem:[%s6287_s7 + $0x90] sm:$0xff] %vm282_vm0, %v2431_v46 }
 0x2fb   :  { %v2247_v17 = vmax.f32 %v2105_v38, 0.0  ;;  %v3993_v15 = vpop.f32.mrb[190].mxu1 }
 0x2fc   :  { %v2120_v36 = vadd.f32 %v5631_v24, %v3993_v15  ;;  %v2114_v32 = vpop.f32.mrb[191].mxu1 }
 0x2fd   :  { %v2115_v10 = vadd.f32 %v5631_v24, %v2114_v32  ;;  %4212 = vmatprep.mubr.f32.mxu0 %v2247_v17  ;;  %v4058_v24 = vpop.f32.mrb[84].mxu0 }
 0x2fe   :  { %4213 = vmatmul.mubr.f32.gmra.mrb[188].mxu0 %v2248_v45  ;;  %v2250_v53 = vmax.f32 %v2120_v36, 0.0  ;;  %v2446_v0 = vadd.f32 %v4058_v24, %v5613_v25  ;;  %v2440_v3 = vpop.f32.mrb[85].mxu0 }
 0x2ff   :  { %v2249_v20 = vmax.f32 %v2115_v10, 0.0  ;;  %v2441_v26 = vadd.f32 %v5613_v25, %v2440_v3  ;;  %v4061_v61 = vpop.f32.mrb[86].mxu0 }
 0x300   :  { %3000 = vst.msk [vmem:[%s6287_s7 + $0xa8] sm:$0xff] %vm282_vm0, %v2446_v0  ;;  %v2456_v5 = vadd.f32 %v4061_v61, %v5613_v25  ;;  %v2450_v41 = vpop.f32.mrb[87].mxu0 }
 0x301   :  { %4215 = vmatprep.mubr.f32.mxu0 %v2249_v20  ;;  %2999 = vst.msk [vmem:[%s6287_s7 + $0xa0] sm:$0xff] %vm282_vm0, %v2441_v26  ;;  %v2451_v16 = vadd.f32 %v5613_v25, %v2450_v41 }
 0x302   :  { %4216 = vmatmul.mubr.f32.gmra.mrb[190].mxu0 %v2250_v53  ;;  %3002 = vst.msk [vmem:[%s6287_s7 + $0xb8] sm:$0xff] %vm282_vm0, %v2456_v5  ;;  %v4064_v29 = vpop.f32.mrb[88].mxu0 }
 0x303   :  { %3001 = vst.msk [vmem:[%s6287_s7 + $0xb0] sm:$0xff] %vm282_vm0, %v2451_v16  ;;  %v2466_v12 = vadd.f32 %v4064_v29, %v5613_v25  ;;  %v2460_v1 = vpop.f32.mrb[89].mxu0 }
 0x304   :  { %v2461_v40 = vadd.f32 %v5613_v25, %v2460_v1 }
 0x305   :  { %3004 = vst.msk [vmem:[%s6287_s7 + $0xc8] sm:$0xff] %vm282_vm0, %v2466_v12 }
 0x306   :  { %3003 = vst.msk [vmem:[%s6287_s7 + $0xc0] sm:$0xff] %vm282_vm0, %v2461_v40  ;;  %v4067_v44 = vpop.f32.mrb[90].mxu0 }
 0x307   :  { %v2476_v34 = vadd.f32 %v4067_v44, %v5613_v25  ;;  %v2470_v22 = vpop.f32.mrb[91].mxu0 }
 0x308   :  { %v2471_v63 = vadd.f32 %v5613_v25, %v2470_v22 }
 0x309   :  { %3006 = vst.msk [vmem:[%s6287_s7 + $0xd8] sm:$0xff] %vm282_vm0, %v2476_v34 }
 0x30a   :  { %3005 = vst.msk [vmem:[%s6287_s7 + $0xd0] sm:$0xff] %vm282_vm0, %v2471_v63  ;;  %v4070_v13 = vpop.f32.mrb[92].mxu0 }
 0x30b   :  { %v2486_v58 = vadd.f32 %v4070_v13, %v5613_v25  ;;  %v2480_v18 = vpop.f32.mrb[93].mxu0 }
 0x30c   :  { %v2481_v52 = vadd.f32 %v5613_v25, %v2480_v18 }
 0x30d   :  { %3008 = vst.msk [vmem:[%s6287_s7 + $0xe8] sm:$0xff] %vm282_vm0, %v2486_v58 }
 0x30e   :  { %3007 = vst.msk [vmem:[%s6287_s7 + $0xe0] sm:$0xff] %vm282_vm0, %v2481_v52  ;;  %v4073_v11 = vpop.f32.mrb[94].mxu0 }
 0x30f   :  { %v2496_v14 = vadd.f32 %v4073_v11, %v5613_v25  ;;  %v2490_v42 = vpop.f32.mrb[95].mxu0 }
 0x310   :  { %v2491_v35 = vadd.f32 %v5613_v25, %v2490_v42 }
 0x311   :  { %3010 = vst.msk [vmem:[%s6287_s7 + $0xf8] sm:$0xff] %vm282_vm0, %v2496_v14 }
 0x312   :  { %3009 = vst.msk [vmem:[%s6287_s7 + $0xf0] sm:$0xff] %vm282_vm0, %v2491_v35  ;;  %v4076_v23 = vpop.f32.mrb[96].mxu0 }
 0x313   :  { %v2506_v27 = vadd.f32 %v4076_v23, %v5613_v25  ;;  %v2500_v21 = vpop.f32.mrb[97].mxu0 }
 0x314   :  { %v2501_v31 = vadd.f32 %v5613_v25, %v2500_v21 }
 0x315   :  { %3012 = vst.msk [vmem:[%s6287_s7 + $0x108] sm:$0xff] %vm282_vm0, %v2506_v27 }
 0x316   :  { %3011 = vst.msk [vmem:[%s6287_s7 + $0x100] sm:$0xff] %vm282_vm0, %v2501_v31  ;;  %v4079_v60 = vpop.f32.mrb[98].mxu0 }
 0x317   :  { %v2516_v33 = vadd.f32 %v4079_v60, %v5613_v25  ;;  %v2510_v49 = vpop.f32.mrb[99].mxu0 }
 0x318   :  { %v2511_v30 = vadd.f32 %v5613_v25, %v2510_v49 }
 0x319   :  { %3014 = vst.msk [vmem:[%s6287_s7 + $0x118] sm:$0xff] %vm282_vm0, %v2516_v33 }
 0x31a   :  { %3013 = vst.msk [vmem:[%s6287_s7 + $0x110] sm:$0xff] %vm282_vm0, %v2511_v30  ;;  %v4082_v28 = vpop.f32.mrb[100].mxu0 }
 0x31b   :  { %v2526_v51 = vadd.f32 %v4082_v28, %v5613_v25  ;;  %v2520_v48 = vpop.f32.mrb[101].mxu0 }
 0x31c   :  { %v2521_v6 = vadd.f32 %v5613_v25, %v2520_v48 }
 0x31d   :  { %3016 = vst.msk [vmem:[%s6287_s7 + $0x128] sm:$0xff] %vm282_vm0, %v2526_v51 }
 0x31e   :  { %3015 = vst.msk [vmem:[%s6287_s7 + $0x120] sm:$0xff] %vm282_vm0, %v2521_v6  ;;  %v4085_v62 = vpop.f32.mrb[102].mxu0 }
 0x31f   :  { %v2536_v43 = vadd.f32 %v4085_v62, %v5613_v25  ;;  %v2530_v39 = vpop.f32.mrb[103].mxu0 }
 0x320   :  { %v2531_v59 = vadd.f32 %v5613_v25, %v2530_v39 }
 0x321   :  { %3018 = vst.msk [vmem:[%s6287_s7 + $0x138] sm:$0xff] %vm282_vm0, %v2536_v43 }
 0x322   :  { %3017 = vst.msk [vmem:[%s6287_s7 + $0x130] sm:$0xff] %vm282_vm0, %v2531_v59  ;;  %v4088_v2 = vpop.f32.mrb[104].mxu0 }
 0x323   :  { %v2546_v57 = vadd.f32 %v4088_v2, %v5613_v25  ;;  %v2540_v9 = vpop.f32.mrb[105].mxu0 }
 0x324   :  { %v2541_v37 = vadd.f32 %v5613_v25, %v2540_v9 }
 0x325   :  { %3020 = vst.msk [vmem:[%s6287_s7 + $0x148] sm:$0xff] %vm282_vm0, %v2546_v57 }
 0x326   :  { %3019 = vst.msk [vmem:[%s6287_s7 + $0x140] sm:$0xff] %vm282_vm0, %v2541_v37  ;;  %v4091_v19 = vpop.f32.mrb[106].mxu0 }
 0x327   :  { %v2556_v7 = vadd.f32 %v4091_v19, %v5613_v25  ;;  %v2550_v38 = vpop.f32.mrb[107].mxu0 }
 0x328   :  { %v2551_v8 = vadd.f32 %v5613_v25, %v2550_v38 }
 0x329   :  { %3022 = vst.msk [vmem:[%s6287_s7 + $0x158] sm:$0xff] %vm282_vm0, %v2556_v7 }
 0x32a   :  { %3021 = vst.msk [vmem:[%s6287_s7 + $0x150] sm:$0xff] %vm282_vm0, %v2551_v8  ;;  %v4094_v4 = vpop.f32.mrb[108].mxu0 }
 0x32b   :  { %v2566_v47 = vadd.f32 %v4094_v4, %v5613_v25  ;;  %v2560_v17 = vpop.f32.mrb[109].mxu0 }
 0x32c   :  { %v2561_v54 = vadd.f32 %v5613_v25, %v2560_v17 }
 0x32d   :  { %3024 = vst.msk [vmem:[%s6287_s7 + $0x168] sm:$0xff] %vm282_vm0, %v2566_v47 }
 0x32e   :  { %3023 = vst.msk [vmem:[%s6287_s7 + $0x160] sm:$0xff] %vm282_vm0, %v2561_v54  ;;  %v4097_v15 = vpop.f32.mrb[110].mxu0 }
 0x32f   :  { %v2576_v45 = vadd.f32 %v4097_v15, %v5613_v25  ;;  %v2570_v36 = vpop.f32.mrb[111].mxu0 }
 0x330   :  { %v2571_v32 = vadd.f32 %v5613_v25, %v2570_v36 }
 0x331   :  { %3026 = vst.msk [vmem:[%s6287_s7 + $0x178] sm:$0xff] %vm282_vm0, %v2576_v45 }
 0x332   :  { %3025 = vst.msk [vmem:[%s6287_s7 + $0x170] sm:$0xff] %vm282_vm0, %v2571_v32  ;;  %v4100_v10 = vpop.f32.mrb[112].mxu0 }
 0x333   :  { %v2586_v55 = vadd.f32 %v4100_v10, %v5613_v25  ;;  %v2580_v56 = vpop.f32.mrb[113].mxu0 }
 0x334   :  { %v2581_v50 = vadd.f32 %v5613_v25, %v2580_v56 }
 0x335   :  { %3028 = vst.msk [vmem:[%s6287_s7 + $0x188] sm:$0xff] %vm282_vm0, %v2586_v55 }
 0x336   :  { %3027 = vst.msk [vmem:[%s6287_s7 + $0x180] sm:$0xff] %vm282_vm0, %v2581_v50  ;;  %v4103_v20 = vpop.f32.mrb[114].mxu0 }
 0x337   :  { %v2596_v46 = vadd.f32 %v4103_v20, %v5613_v25  ;;  %v2590_v53 = vpop.f32.mrb[115].mxu0 }
 0x338   :  { %v2591_v24 = vadd.f32 %v5613_v25, %v2590_v53 }
 0x339   :  { %3030 = vst.msk [vmem:[%s6287_s7 + $0x198] sm:$0xff] %vm282_vm0, %v2596_v46 }
 0x33a   :  { %3029 = vst.msk [vmem:[%s6287_s7 + $0x190] sm:$0xff] %vm282_vm0, %v2591_v24  ;;  %v4106_v0 = vpop.f32.mrb[116].mxu0 }
 0x33b   :  { %v2606_v3 = vadd.f32 %v4106_v0, %v5613_v25  ;;  %v2600_v26 = vpop.f32.mrb[117].mxu0 }
 0x33c   :  { %v2601_v61 = vadd.f32 %v5613_v25, %v2600_v26 }
 0x33d   :  { %3032 = vst.msk [vmem:[%s6287_s7 + $0x1a8] sm:$0xff] %vm282_vm0, %v2606_v3 }
 0x33e   :  { %3031 = vst.msk [vmem:[%s6287_s7 + $0x1a0] sm:$0xff] %vm282_vm0, %v2601_v61 }
 0x345   :  { %v4109_v5 = vpop.f32.mrb[118].mxu0 }
 0x346   :  { %v2616_v41 = vadd.f32 %v4109_v5, %v5613_v25  ;;  %v2610_v16 = vpop.f32.mrb[119].mxu0 }
 0x347   :  { %v2611_v29 = vadd.f32 %v5613_v25, %v2610_v16 }
 0x348   :  { %3034 = vst.msk [vmem:[%s6287_s7 + $0x1b8] sm:$0xff] %vm282_vm0, %v2616_v41 }
 0x349   :  { %3033 = vst.msk [vmem:[%s6287_s7 + $0x1b0] sm:$0xff] %vm282_vm0, %v2611_v29  ;;  %v4112_v12 = vpop.f32.mrb[120].mxu0 }
 0x34a   :  { %v2626_v1 = vadd.f32 %v4112_v12, %v5613_v25  ;;  %v2620_v40 = vpop.f32.mrb[121].mxu0 }
 0x34b   :  { %v2621_v44 = vadd.f32 %v5613_v25, %v2620_v40 }
 0x34c   :  { %3036 = vst.msk [vmem:[%s6287_s7 + $0x1c8] sm:$0xff] %vm282_vm0, %v2626_v1 }
 0x34d   :  { %3035 = vst.msk [vmem:[%s6287_s7 + $0x1c0] sm:$0xff] %vm282_vm0, %v2621_v44  ;;  %v4115_v34 = vpop.f32.mrb[122].mxu0 }
 0x34e   :  { %v2636_v22 = vadd.f32 %v4115_v34, %v5613_v25  ;;  %v2630_v63 = vpop.f32.mrb[123].mxu0 }
 0x34f   :  { %v2631_v13 = vadd.f32 %v5613_v25, %v2630_v63 }
 0x350   :  { %3038 = vst.msk [vmem:[%s6287_s7 + $0x1d8] sm:$0xff] %vm282_vm0, %v2636_v22 }
 0x351   :  { %3037 = vst.msk [vmem:[%s6287_s7 + $0x1d0] sm:$0xff] %vm282_vm0, %v2631_v13  ;;  %v4118_v58 = vpop.f32.mrb[124].mxu0 }
 0x352   :  { %v2646_v18 = vadd.f32 %v4118_v58, %v5613_v25  ;;  %v2640_v52 = vpop.f32.mrb[125].mxu0 }
 0x353   :  { %v2641_v11 = vadd.f32 %v5613_v25, %v2640_v52 }
 0x354   :  { %3040 = vst.msk [vmem:[%s6287_s7 + $0x1e8] sm:$0xff] %vm282_vm0, %v2646_v18 }
 0x355   :  { %3039 = vst.msk [vmem:[%s6287_s7 + $0x1e0] sm:$0xff] %vm282_vm0, %v2641_v11  ;;  %v4121_v14 = vpop.f32.mrb[126].mxu0 }
 0x356   :  { %v2656_v42 = vadd.f32 %v4121_v14, %v5613_v25  ;;  %v2650_v35 = vpop.f32.mrb[127].mxu0 }
 0x357   :  { %v2651_v23 = vadd.f32 %v5613_v25, %v2650_v35 }
 0x358   :  { %3042 = vst.msk [vmem:[%s6287_s7 + $0x1f8] sm:$0xff] %vm282_vm0, %v2656_v42 }
 0x359   :  { %3041 = vst.msk [vmem:[%s6287_s7 + $0x1f0] sm:$0xff] %vm282_vm0, %v2651_v23  ;;  %v4124_v27 = vpop.f32.mrb[128].mxu0 }
 0x35a   :  { %v2666_v21 = vadd.f32 %v4124_v27, %v5613_v25  ;;  %v2660_v31 = vpop.f32.mrb[129].mxu0 }
 0x35b   :  { %v2661_v60 = vadd.f32 %v5613_v25, %v2660_v31 }
 0x35c   :  { %3044 = vst.msk [vmem:[%s6287_s7 + $0x208] sm:$0xff] %vm282_vm0, %v2666_v21 }
 0x35d   :  { %3043 = vst.msk [vmem:[%s6287_s7 + $0x200] sm:$0xff] %vm282_vm0, %v2661_v60  ;;  %v4127_v33 = vpop.f32.mrb[130].mxu0 }
 0x35e   :  { %v2676_v49 = vadd.f32 %v4127_v33, %v5613_v25  ;;  %v2670_v30 = vpop.f32.mrb[131].mxu0 }
 0x35f   :  { %v2671_v28 = vadd.f32 %v5613_v25, %v2670_v30 }
 0x360   :  { %3046 = vst.msk [vmem:[%s6287_s7 + $0x218] sm:$0xff] %vm282_vm0, %v2676_v49 }
 0x361   :  { %3045 = vst.msk [vmem:[%s6287_s7 + $0x210] sm:$0xff] %vm282_vm0, %v2671_v28  ;;  %v4130_v51 = vpop.f32.mrb[132].mxu0 }
 0x362   :  { %v2686_v48 = vadd.f32 %v4130_v51, %v5613_v25  ;;  %v2680_v6 = vpop.f32.mrb[133].mxu0 }
 0x363   :  { %v2681_v62 = vadd.f32 %v5613_v25, %v2680_v6 }
 0x364   :  { %3048 = vst.msk [vmem:[%s6287_s7 + $0x228] sm:$0xff] %vm282_vm0, %v2686_v48 }
 0x365   :  { %3047 = vst.msk [vmem:[%s6287_s7 + $0x220] sm:$0xff] %vm282_vm0, %v2681_v62  ;;  %v4133_v43 = vpop.f32.mrb[134].mxu0 }
 0x366   :  { %v2696_v39 = vadd.f32 %v4133_v43, %v5613_v25  ;;  %v2690_v59 = vpop.f32.mrb[135].mxu0 }
 0x367   :  { %v2691_v2 = vadd.f32 %v5613_v25, %v2690_v59 }
 0x368   :  { %3050 = vst.msk [vmem:[%s6287_s7 + $0x238] sm:$0xff] %vm282_vm0, %v2696_v39 }
 0x369   :  { %3049 = vst.msk [vmem:[%s6287_s7 + $0x230] sm:$0xff] %vm282_vm0, %v2691_v2  ;;  %v4136_v57 = vpop.f32.mrb[136].mxu0 }
 0x36a   :  { %v2706_v9 = vadd.f32 %v4136_v57, %v5613_v25  ;;  %v2700_v37 = vpop.f32.mrb[137].mxu0 }
 0x36b   :  { %v2701_v19 = vadd.f32 %v5613_v25, %v2700_v37 }
 0x36c   :  { %3052 = vst.msk [vmem:[%s6287_s7 + $0x248] sm:$0xff] %vm282_vm0, %v2706_v9 }
 0x36d   :  { %3051 = vst.msk [vmem:[%s6287_s7 + $0x240] sm:$0xff] %vm282_vm0, %v2701_v19  ;;  %v4139_v7 = vpop.f32.mrb[138].mxu0 }
 0x36e   :  { %v2716_v38 = vadd.f32 %v4139_v7, %v5613_v25  ;;  %v2710_v8 = vpop.f32.mrb[139].mxu0 }
 0x36f   :  { %v2711_v4 = vadd.f32 %v5613_v25, %v2710_v8 }
 0x370   :  { %3054 = vst.msk [vmem:[%s6287_s7 + $0x258] sm:$0xff] %vm282_vm0, %v2716_v38 }
 0x371   :  { %3053 = vst.msk [vmem:[%s6287_s7 + $0x250] sm:$0xff] %vm282_vm0, %v2711_v4  ;;  %v4142_v47 = vpop.f32.mrb[140].mxu0 }
 0x372   :  { %v2726_v17 = vadd.f32 %v4142_v47, %v5613_v25  ;;  %v2720_v54 = vpop.f32.mrb[141].mxu0 }
 0x373   :  { %v2721_v15 = vadd.f32 %v5613_v25, %v2720_v54 }
 0x374   :  { %3056 = vst.msk [vmem:[%s6287_s7 + $0x268] sm:$0xff] %vm282_vm0, %v2726_v17 }
 0x375   :  { %3055 = vst.msk [vmem:[%s6287_s7 + $0x260] sm:$0xff] %vm282_vm0, %v2721_v15  ;;  %v4145_v45 = vpop.f32.mrb[142].mxu0 }
 0x376   :  { %v2736_v36 = vadd.f32 %v4145_v45, %v5613_v25  ;;  %v2730_v32 = vpop.f32.mrb[143].mxu0 }
 0x377   :  { %v2731_v10 = vadd.f32 %v5613_v25, %v2730_v32 }
 0x378   :  { %3058 = vst.msk [vmem:[%s6287_s7 + $0x278] sm:$0xff] %vm282_vm0, %v2736_v36 }
 0x379   :  { %3057 = vst.msk [vmem:[%s6287_s7 + $0x270] sm:$0xff] %vm282_vm0, %v2731_v10  ;;  %v4148_v55 = vpop.f32.mrb[144].mxu0 }
 0x37a   :  { %v2746_v56 = vadd.f32 %v4148_v55, %v5613_v25  ;;  %v2740_v50 = vpop.f32.mrb[145].mxu0 }
 0x37b   :  { %v2741_v20 = vadd.f32 %v5613_v25, %v2740_v50 }
 0x37c   :  { %3060 = vst.msk [vmem:[%s6287_s7 + $0x288] sm:$0xff] %vm282_vm0, %v2746_v56 }
 0x37d   :  { %3059 = vst.msk [vmem:[%s6287_s7 + $0x280] sm:$0xff] %vm282_vm0, %v2741_v20  ;;  %v4151_v46 = vpop.f32.mrb[146].mxu0 }
 0x37e   :  { %v2756_v53 = vadd.f32 %v4151_v46, %v5613_v25  ;;  %v2750_v24 = vpop.f32.mrb[147].mxu0 }
 0x37f   :  { %v2751_v0 = vadd.f32 %v5613_v25, %v2750_v24 }
 0x380   :  { %3062 = vst.msk [vmem:[%s6287_s7 + $0x298] sm:$0xff] %vm282_vm0, %v2756_v53 }
 0x381   :  { %3061 = vst.msk [vmem:[%s6287_s7 + $0x290] sm:$0xff] %vm282_vm0, %v2751_v0  ;;  %v4154_v3 = vpop.f32.mrb[148].mxu0 }
 0x382   :  { %v2766_v26 = vadd.f32 %v4154_v3, %v5613_v25  ;;  %v2760_v61 = vpop.f32.mrb[149].mxu0 }
 0x383   :  { %v2761_v5 = vadd.f32 %v5613_v25, %v2760_v61 }
 0x384   :  { %3064 = vst.msk [vmem:[%s6287_s7 + $0x2a8] sm:$0xff] %vm282_vm0, %v2766_v26 }
 0x385   :  { %3063 = vst.msk [vmem:[%s6287_s7 + $0x2a0] sm:$0xff] %vm282_vm0, %v2761_v5  ;;  %v4157_v41 = vpop.f32.mrb[150].mxu0 }
 0x386   :  { %v2776_v16 = vadd.f32 %v4157_v41, %v5613_v25  ;;  %v2770_v29 = vpop.f32.mrb[151].mxu0 }
 0x387   :  { %v2771_v12 = vadd.f32 %v5613_v25, %v2770_v29 }
 0x388   :  { %3066 = vst.msk [vmem:[%s6287_s7 + $0x2b8] sm:$0xff] %vm282_vm0, %v2776_v16 }
 0x389   :  { %3065 = vst.msk [vmem:[%s6287_s7 + $0x2b0] sm:$0xff] %vm282_vm0, %v2771_v12  ;;  %v4160_v1 = vpop.f32.mrb[152].mxu0 }
 0x38a   :  { %v2786_v40 = vadd.f32 %v4160_v1, %v5613_v25  ;;  %v2780_v44 = vpop.f32.mrb[153].mxu0 }
 0x38b   :  { %v2781_v34 = vadd.f32 %v5613_v25, %v2780_v44 }
 0x38c   :  { %3068 = vst.msk [vmem:[%s6287_s7 + $0x2c8] sm:$0xff] %vm282_vm0, %v2786_v40 }
 0x38d   :  { %3067 = vst.msk [vmem:[%s6287_s7 + $0x2c0] sm:$0xff] %vm282_vm0, %v2781_v34  ;;  %v4163_v22 = vpop.f32.mrb[154].mxu0 }
 0x38e   :  { %v2796_v63 = vadd.f32 %v4163_v22, %v5613_v25  ;;  %v2790_v13 = vpop.f32.mrb[155].mxu0 }
 0x38f   :  { %v2791_v58 = vadd.f32 %v5613_v25, %v2790_v13 }
 0x390   :  { %3070 = vst.msk [vmem:[%s6287_s7 + $0x2d8] sm:$0xff] %vm282_vm0, %v2796_v63 }
 0x391   :  { %3069 = vst.msk [vmem:[%s6287_s7 + $0x2d0] sm:$0xff] %vm282_vm0, %v2791_v58  ;;  %v4166_v18 = vpop.f32.mrb[156].mxu0 }
 0x392   :  { %v2806_v52 = vadd.f32 %v4166_v18, %v5613_v25  ;;  %v2800_v11 = vpop.f32.mrb[157].mxu0 }
 0x393   :  { %v2801_v14 = vadd.f32 %v5613_v25, %v2800_v11 }
 0x394   :  { %3072 = vst.msk [vmem:[%s6287_s7 + $0x2e8] sm:$0xff] %vm282_vm0, %v2806_v52 }
 0x395   :  { %3071 = vst.msk [vmem:[%s6287_s7 + $0x2e0] sm:$0xff] %vm282_vm0, %v2801_v14  ;;  %v4169_v42 = vpop.f32.mrb[158].mxu0 }
 0x396   :  { %v2816_v35 = vadd.f32 %v4169_v42, %v5613_v25  ;;  %v2810_v23 = vpop.f32.mrb[159].mxu0 }
 0x397   :  { %v2811_v27 = vadd.f32 %v5613_v25, %v2810_v23 }
 0x398   :  { %3074 = vst.msk [vmem:[%s6287_s7 + $0x2f8] sm:$0xff] %vm282_vm0, %v2816_v35 }
 0x399   :  { %3073 = vst.msk [vmem:[%s6287_s7 + $0x2f0] sm:$0xff] %vm282_vm0, %v2811_v27  ;;  %v4172_v21 = vpop.f32.mrb[160].mxu0 }
 0x39a   :  { %v2826_v31 = vadd.f32 %v4172_v21, %v5613_v25  ;;  %v2820_v60 = vpop.f32.mrb[161].mxu0 }
 0x39b   :  { %v2821_v33 = vadd.f32 %v5613_v25, %v2820_v60 }
 0x39c   :  { %3076 = vst.msk [vmem:[%s6287_s7 + $0x308] sm:$0xff] %vm282_vm0, %v2826_v31 }
 0x39d   :  { %3075 = vst.msk [vmem:[%s6287_s7 + $0x300] sm:$0xff] %vm282_vm0, %v2821_v33  ;;  %v4175_v49 = vpop.f32.mrb[162].mxu0 }
 0x39e   :  { %v2836_v30 = vadd.f32 %v4175_v49, %v5613_v25  ;;  %v2830_v28 = vpop.f32.mrb[163].mxu0 }
 0x39f   :  { %v2831_v51 = vadd.f32 %v5613_v25, %v2830_v28 }
 0x3a0   :  { %3078 = vst.msk [vmem:[%s6287_s7 + $0x318] sm:$0xff] %vm282_vm0, %v2836_v30 }
 0x3a1   :  { %3077 = vst.msk [vmem:[%s6287_s7 + $0x310] sm:$0xff] %vm282_vm0, %v2831_v51  ;;  %v4178_v48 = vpop.f32.mrb[164].mxu0 }
 0x3a2   :  { %v2846_v6 = vadd.f32 %v4178_v48, %v5613_v25  ;;  %v2840_v62 = vpop.f32.mrb[165].mxu0 }
 0x3a3   :  { %v2841_v43 = vadd.f32 %v5613_v25, %v2840_v62 }
 0x3a4   :  { %3080 = vst.msk [vmem:[%s6287_s7 + $0x328] sm:$0xff] %vm282_vm0, %v2846_v6 }
 0x3a5   :  { %3079 = vst.msk [vmem:[%s6287_s7 + $0x320] sm:$0xff] %vm282_vm0, %v2841_v43  ;;  %v4181_v39 = vpop.f32.mrb[166].mxu0 }
 0x3a6   :  { %v2856_v59 = vadd.f32 %v4181_v39, %v5613_v25  ;;  %v2850_v2 = vpop.f32.mrb[167].mxu0 }
 0x3a7   :  { %v2851_v57 = vadd.f32 %v5613_v25, %v2850_v2 }
 0x3a8   :  { %3082 = vst.msk [vmem:[%s6287_s7 + $0x338] sm:$0xff] %vm282_vm0, %v2856_v59 }
 0x3a9   :  { %3081 = vst.msk [vmem:[%s6287_s7 + $0x330] sm:$0xff] %vm282_vm0, %v2851_v57  ;;  %v4184_v9 = vpop.f32.mrb[168].mxu0 }
 0x3aa   :  { %v2866_v37 = vadd.f32 %v4184_v9, %v5613_v25  ;;  %v2860_v19 = vpop.f32.mrb[169].mxu0 }
 0x3ab   :  { %v2861_v7 = vadd.f32 %v5613_v25, %v2860_v19 }
 0x3ac   :  { %3084 = vst.msk [vmem:[%s6287_s7 + $0x348] sm:$0xff] %vm282_vm0, %v2866_v37 }
 0x3ad   :  { %3083 = vst.msk [vmem:[%s6287_s7 + $0x340] sm:$0xff] %vm282_vm0, %v2861_v7  ;;  %v4187_v38 = vpop.f32.mrb[170].mxu0 }
 0x3ae   :  { %v2876_v8 = vadd.f32 %v4187_v38, %v5613_v25  ;;  %v2870_v4 = vpop.f32.mrb[171].mxu0 }
 0x3af   :  { %v2871_v47 = vadd.f32 %v5613_v25, %v2870_v4 }
 0x3b0   :  { %3086 = vst.msk [vmem:[%s6287_s7 + $0x358] sm:$0xff] %vm282_vm0, %v2876_v8 }
 0x3b1   :  { %3085 = vst.msk [vmem:[%s6287_s7 + $0x350] sm:$0xff] %vm282_vm0, %v2871_v47  ;;  %v4190_v17 = vpop.f32.mrb[172].mxu0 }
 0x3b2   :  { %v2886_v54 = vadd.f32 %v4190_v17, %v5613_v25  ;;  %v2880_v15 = vpop.f32.mrb[173].mxu0 }
 0x3b3   :  { %v2881_v45 = vadd.f32 %v5613_v25, %v2880_v15 }
 0x3b4   :  { %3088 = vst.msk [vmem:[%s6287_s7 + $0x368] sm:$0xff] %vm282_vm0, %v2886_v54 }
 0x3b5   :  { %3087 = vst.msk [vmem:[%s6287_s7 + $0x360] sm:$0xff] %vm282_vm0, %v2881_v45  ;;  %v4193_v36 = vpop.f32.mrb[174].mxu0 }
 0x3b6   :  { %v2896_v32 = vadd.f32 %v4193_v36, %v5613_v25  ;;  %v2890_v10 = vpop.f32.mrb[175].mxu0 }
 0x3b7   :  { %v2891_v55 = vadd.f32 %v5613_v25, %v2890_v10 }
 0x3b8   :  { %3090 = vst.msk [vmem:[%s6287_s7 + $0x378] sm:$0xff] %vm282_vm0, %v2896_v32 }
 0x3b9   :  { %3089 = vst.msk [vmem:[%s6287_s7 + $0x370] sm:$0xff] %vm282_vm0, %v2891_v55  ;;  %v4196_v56 = vpop.f32.mrb[176].mxu0 }
 0x3ba   :  { %v2906_v50 = vadd.f32 %v4196_v56, %v5613_v25  ;;  %v2900_v20 = vpop.f32.mrb[177].mxu0 }
 0x3bb   :  { %v2901_v46 = vadd.f32 %v5613_v25, %v2900_v20 }
 0x3bc   :  { %3092 = vst.msk [vmem:[%s6287_s7 + $0x388] sm:$0xff] %vm282_vm0, %v2906_v50 }
 0x3bd   :  { %3091 = vst.msk [vmem:[%s6287_s7 + $0x380] sm:$0xff] %vm282_vm0, %v2901_v46  ;;  %v4199_v53 = vpop.f32.mrb[178].mxu0 }
 0x3be   :  { %v2916_v24 = vadd.f32 %v4199_v53, %v5613_v25  ;;  %v2910_v0 = vpop.f32.mrb[179].mxu0 }
 0x3bf   :  { %v2911_v3 = vadd.f32 %v5613_v25, %v2910_v0 }
 0x3c0   :  { %3094 = vst.msk [vmem:[%s6287_s7 + $0x398] sm:$0xff] %vm282_vm0, %v2916_v24 }
 0x3c1   :  { %3093 = vst.msk [vmem:[%s6287_s7 + $0x390] sm:$0xff] %vm282_vm0, %v2911_v3  ;;  %v4202_v26 = vpop.f32.mrb[180].mxu0 }
 0x3c2   :  { %v2926_v61 = vadd.f32 %v4202_v26, %v5613_v25  ;;  %v2920_v5 = vpop.f32.mrb[181].mxu0 }
 0x3c3   :  { %v2921_v41 = vadd.f32 %v5613_v25, %v2920_v5 }
 0x3c4   :  { %3096 = vst.msk [vmem:[%s6287_s7 + $0x3a8] sm:$0xff] %vm282_vm0, %v2926_v61 }
 0x3c5   :  { %3095 = vst.msk [vmem:[%s6287_s7 + $0x3a0] sm:$0xff] %vm282_vm0, %v2921_v41  ;;  %v4205_v16 = vpop.f32.mrb[182].mxu0 }
 0x3c6   :  { %v2936_v29 = vadd.f32 %v4205_v16, %v5613_v25  ;;  %v2930_v12 = vpop.f32.mrb[183].mxu0 }
 0x3c7   :  { %v2931_v1 = vadd.f32 %v5613_v25, %v2930_v12 }
 0x3c8   :  { %3098 = vst.msk [vmem:[%s6287_s7 + $0x3b8] sm:$0xff] %vm282_vm0, %v2936_v29 }
 0x3c9   :  { %3097 = vst.msk [vmem:[%s6287_s7 + $0x3b0] sm:$0xff] %vm282_vm0, %v2931_v1  ;;  %v4208_v40 = vpop.f32.mrb[184].mxu0 }
 0x3ca   :  { %v2946_v44 = vadd.f32 %v4208_v40, %v5613_v25  ;;  %v2940_v34 = vpop.f32.mrb[185].mxu0 }
 0x3cb   :  { %v2941_v22 = vadd.f32 %v5613_v25, %v2940_v34 }
 0x3cc   :  { %3100 = vst.msk [vmem:[%s6287_s7 + $0x3c8] sm:$0xff] %vm282_vm0, %v2946_v44 }
 0x3cd   :  { %3099 = vst.msk [vmem:[%s6287_s7 + $0x3c0] sm:$0xff] %vm282_vm0, %v2941_v22  ;;  %v4211_v63 = vpop.f32.mrb[186].mxu0 }
 0x3ce   :  { %v2956_v13 = vadd.f32 %v4211_v63, %v5613_v25  ;;  %v2950_v58 = vpop.f32.mrb[187].mxu0 }
 0x3cf   :  { %v2951_v18 = vadd.f32 %v5613_v25, %v2950_v58 }
 0x3d0   :  { %3102 = vst.msk [vmem:[%s6287_s7 + $0x3d8] sm:$0xff] %vm282_vm0, %v2956_v13 }
 0x3d1   :  { %3101 = vst.msk [vmem:[%s6287_s7 + $0x3d0] sm:$0xff] %vm282_vm0, %v2951_v18  ;;  %v4214_v52 = vpop.f32.mrb[188].mxu0 }
 0x3d2   :  { %v2966_v11 = vadd.f32 %v4214_v52, %v5613_v25  ;;  %v2960_v14 = vpop.f32.mrb[189].mxu0 }
 0x3d3   :  { %v2961_v42 = vadd.f32 %v5613_v25, %v2960_v14 }
 0x3d4   :  { %3104 = vst.msk [vmem:[%s6287_s7 + $0x3e8] sm:$0xff] %vm282_vm0, %v2966_v11 }
 0x3d5   :  { %3103 = vst.msk [vmem:[%s6287_s7 + $0x3e0] sm:$0xff] %vm282_vm0, %v2961_v42  ;;  %v4217_v35 = vpop.f32.mrb[190].mxu0 }
 0x3d6   :  { %v2976_v23 = vadd.f32 %v4217_v35, %v5613_v25  ;;  %v2970_v27 = vpop.f32.mrb[191].mxu0 }
 0x3d7   :  { %v2971_v21 = vadd.f32 %v5613_v25, %v2970_v27 }
 0x3d8   :  { %3106 = vst.msk [vmem:[%s6287_s7 + $0x3f8] sm:$0xff] %vm282_vm0, %v2976_v23 }
 0x3d9   :  { %3105 = vst.msk [vmem:[%s6287_s7 + $0x3f0] sm:$0xff] %vm282_vm0, %v2971_v21 }

</bundles_post_ra>
